<compile_context>
chip_gen: v7x
topology: tpu7x:2x2x1
jax: 0.10.0
libtpu: 0.0.40
codegen_flags: <defaults>
</compile_context>

<pallas_src>
import functools
import math

import numpy as np
import jax
import jax.numpy as jnp
from jax import lax
from jax.experimental import pallas as pl
from jax.experimental.pallas import tpu as pltpu


def _layer_norm(x, gamma, beta, eps):
    mu = jnp.mean(x, axis=-1, keepdims=True)
    xc = x - mu
    var = jnp.mean(xc * xc, axis=-1, keepdims=True)
    return xc * lax.rsqrt(var + eps) * gamma + beta


def _encoder_kernel(x_ref, mcol_ref, mbias_ref, pos_ref,
                    wqkv_ref, bqkv_ref, wo_ref, bo_ref,
                    g1_ref, be1_ref, g2_ref, be2_ref,
                    fw1_ref, fb1_ref, fw2_ref, fb2_ref,
                    out_ref, x_sc, ctx_sc,
                    *, n_heads, block_b, seq_len, embeddings_scale, eps):
    l = pl.program_id(1)
    n_l = pl.num_programs(1)
    Bb, S = block_b, seq_len
    E = x_ref.shape[-1]
    dh = E // n_heads
    cdt = wqkv_ref.dtype                     # compute dtype of the big matmuls

    mcol = mcol_ref[...]                     # (Bb*S, 1) f32 padding mask

    # ---- l == 0: embedding scale + positional add + input mask -> scratch ----
    @pl.when(l == 0)
    def _init():
        x0 = x_ref[...].astype(jnp.float32)              # (Bb, S, E)
        if embeddings_scale:
            x0 = x0 * jnp.float32(math.sqrt(E))
        x0 = x0 + pos_ref[...].astype(jnp.float32)
        x_sc[...] = x0.reshape(Bb * S, E) * mcol

    x = x_sc[...]                            # (Bb*S, E) f32, carried across layers

    # ---------------- multi-head self-attention ----------------
    # fused full-width QKV projection (1/sqrt(dh) already folded into Wq/bq)
    qkv = jnp.dot(x.astype(cdt), wqkv_ref[0],
                  preferred_element_type=jnp.float32) + bqkv_ref[0]   # (Bb*S, 3E)

    # Per-row / per-head attention on small (S,S) tiles.  The static unroll is
    # bounded to Bb*n_heads bodies per grid step because layers are a grid axis.
    for b_i in range(Bb):
        r = slice(b_i * S, (b_i + 1) * S)
        bias_b = mbias_ref[b_i]              # (1, S) additive key-padding bias
        for h in range(n_heads):
            q_h = qkv[r, h * dh:(h + 1) * dh]                     # (S, dh)
            k_h = qkv[r, E + h * dh:E + (h + 1) * dh]
            v_h = qkv[r, 2 * E + h * dh:2 * E + (h + 1) * dh]
            # q_h @ k_h^T without materialising a transpose
            logits = lax.dot_general(q_h, k_h, (((1,), (1,)), ((), ())),
                                     preferred_element_type=jnp.float32)  # (S,S)
            logits = logits + bias_b
            m = jnp.max(logits, axis=-1, keepdims=True)
            p = jnp.exp(logits - m)
            attn = p * pl.reciprocal(jnp.sum(p, axis=-1, keepdims=True),
                                     approx=True)
            # write head context at lane offset h*dh -> one full-width out-proj
            ctx_sc[r, h * dh:(h + 1) * dh] = jnp.dot(
                attn, v_h, preferred_element_type=jnp.float32)

    # single full-width output projection
    x = x + jnp.dot(ctx_sc[...].astype(cdt), wo_ref[0],
                    preferred_element_type=jnp.float32) + bo_ref[0]
    x = _layer_norm(x, g1_ref[0], be1_ref[0], eps)

    # ---------------- position-wise feed-forward ----------------
    h1 = jnp.maximum(
        jnp.dot(x.astype(cdt), fw1_ref[0],
                preferred_element_type=jnp.float32) + fb1_ref[0], 0.0)
    x = x + jnp.dot(h1.astype(cdt), fw2_ref[0],
                    preferred_element_type=jnp.float32) + fb2_ref[0]
    x = _layer_norm(x, g2_ref[0], be2_ref[0], eps)
    x = x * mcol
    x_sc[...] = x

    # ---- l == L-1: masked mean over the sequence (reduction=True) ----
    @pl.when(l == n_l - 1)
    def _finalize():
        xr = x.reshape(Bb, S, E)
        mr = mcol.reshape(Bb, S, 1)
        div = jnp.maximum(jnp.sum(mr, axis=1), 1e-20)    # (Bb, 1)
        out_ref[...] = jnp.sum(xr, axis=1) / div         # dense (Bb, E) store


def transformer_encoder_pallas(input_ids, params, *, n_heads, padding_idx=0,
                               embeddings_scale=False, block_b=8,
                               param_dtype=jnp.float32):
    """TransformerEncoder.forward with reduction=True.  Returns (B, E) float32."""
    ids = input_ids.astype(jnp.int32)
    B, S = ids.shape
    emb = params['embedding']
    E = emb.shape[1]
    L = params['wq'].shape[0]
    F = params['ffn_w1'].shape[2]
    dh = E // n_heads
    assert E % n_heads == 0

    Bb = min(block_b, B)
    assert B % Bb == 0, "batch must be divisible by the batch block"
    assert S % 8 == 0, "seq_len should be a multiple of 8 for dense sublane tiling"
    nb = B // Bb

    mask_f = (ids != padding_idx).astype(jnp.float32)             # (B, S)
    # TODO(synk): the vocab-sized embedding gather stays in XLA (jnp.take); a
    # fully fused version needs an in-kernel DMA gather over the table.
    x = jnp.take(emb, ids, axis=0).astype(jnp.float32)            # (B, S, E)
    pos = params['pos_embedding'][:S].astype(jnp.float32)         # (S, E)
    mask_col = mask_f.reshape(B * S, 1)                           # (B*S, 1)
    mask_bias = jnp.where(mask_f[:, None, :] > 0.5, 0.0,
                          -1e20).astype(jnp.float32)              # (B, 1, S)

    # Fold 1/sqrt(dh) into Wq/bq; fuse Q/K/V into one (E, 3E) weight.
    inv_scale = jnp.float32(1.0 / math.sqrt(dh))
    big = lambda a: a.astype(param_dtype)          # large weights -> param_dtype
    f32 = lambda a: a.astype(jnp.float32)          # biases / LN params stay f32
    wqkv = big(jnp.concatenate(
        [params['wq'] * inv_scale, params['wk'], params['wv']], axis=-1))
    bqkv = f32(jnp.concatenate(
        [params['bq'] * inv_scale, params['bk'], params['bv']], axis=-1))
    wo, fw1, fw2 = big(params['wo']), big(params['ffn_w1']), big(params['ffn_w2'])
    bo, fb1, fb2 = f32(params['bo']), f32(params['ffn_b1']), f32(params['ffn_b2'])
    g1, be1 = f32(params['ln1_g']), f32(params['ln1_b'])
    g2, be2 = f32(params['ln2_g']), f32(params['ln2_b'])

    def layer_spec(d1, d2):                       # per-layer weight, streamed by l
        return pl.BlockSpec((1, d1, d2), lambda b, l: (l, 0, 0))

    in_specs = [
        pl.BlockSpec((Bb, S, E), lambda b, l: (b, 0, 0)),     # embedded tokens
        pl.BlockSpec((Bb * S, 1), lambda b, l: (b, 0)),       # padding mask (col)
        pl.BlockSpec((Bb, 1, S), lambda b, l: (b, 0, 0)),     # additive key mask
        pl.BlockSpec((S, E), lambda b, l: (0, 0)),            # positional codes
        layer_spec(E, 3 * E),                                 # wqkv
        layer_spec(1, 3 * E),                                 # bqkv
        layer_spec(E, E),                                     # wo
        layer_spec(1, E),                                     # bo
        layer_spec(1, E), layer_spec(1, E),                   # ln1 gamma / beta
        layer_spec(1, E), layer_spec(1, E),                   # ln2 gamma / beta
        layer_spec(E, F), layer_spec(1, F),                   # ffn w1 / b1
        layer_spec(F, E), layer_spec(1, E),                   # ffn w2 / b2
    ]

    # VMEM budget from the actual per-step working set (double-buffered layer
    # weights + activation blocks + scratch), capped at 56 MiB for v7x safety.
    wbytes = jnp.dtype(param_dtype).itemsize
    layer_w = (E * 3 * E + E * E + E * F + F * E) * wbytes \
        + (3 * E + E + 4 * E + F + E) * 4
    act = (Bb * S * E + Bb * S + Bb * S + S * E + Bb * E) * 4
    scratch = 2 * Bb * S * E * 4
    est = 2 * (layer_w + act) + scratch
    vmem_limit = int(min(max(4 * est, 16 << 20), 56 << 20))

    kernel = functools.partial(
        _encoder_kernel, n_heads=n_heads, block_b=Bb, seq_len=S,
        embeddings_scale=embeddings_scale, eps=1e-5)

    out = pl.pallas_call(
        kernel,
        out_shape=jax.ShapeDtypeStruct((B, E), jnp.float32),
        grid=(nb, L),
        in_specs=in_specs,
        out_specs=pl.BlockSpec((Bb, E), lambda b, l: (b, 0)),
        scratch_shapes=[pltpu.VMEM((Bb * S, E), jnp.float32),   # x carried over layers
                        pltpu.VMEM((Bb * S, E), jnp.float32)],  # per-head context
        compiler_params=pltpu.CompilerParams(
            dimension_semantics=("parallel", "arbitrary"),
            vmem_limit_bytes=vmem_limit),
    )(x, mask_col, mask_bias, pos,
      wqkv, bqkv, wo, bo, g1, be1, g2, be2, fw1, fb1, fw2, fb2)
    return out


def _reference(input_ids, params, *, n_heads, padding_idx=0,
               embeddings_scale=False, eps=1e-5):
    """Float64 numpy replica of the PyTorch TransformerEncoder forward."""
    ids = np.asarray(input_ids)
    B, S = ids.shape
    p = {k: np.asarray(v, np.float64) for k, v in params.items()}
    emb = p['embedding']
    E = emb.shape[1]
    L = p['wq'].shape[0]
    dh = E // n_heads
    scale = math.sqrt(dh)
    mask = (ids != padding_idx).astype(np.float64)               # (B, S)

    x = emb[ids]
    if embeddings_scale:
        x = x * math.sqrt(E)
    x = (x + p['pos_embedding'][:S][None]) * mask[:, :, None]

    def ln(t, g, b):
        mu = t.mean(-1, keepdims=True)
        var = ((t - mu) ** 2).mean(-1, keepdims=True)
        return (t - mu) / np.sqrt(var + eps) * g + b

    for l in range(L):
        q = x @ p['wq'][l] + p['bq'][l]
        k = x @ p['wk'][l] + p['bk'][l]
        v = x @ p['wv'][l] + p['bv'][l]
        att = np.zeros_like(x)
        for h in range(n_heads):
            sl = slice(h * dh, (h + 1) * dh)
            logits = np.einsum('bid,bjd->bij', q[..., sl], k[..., sl])
            logits = np.where(mask[:, None, :] > 0, logits, -1e20) / scale
            m = logits.max(-1, keepdims=True)
            e = np.exp(logits - m)
            a = e / e.sum(-1, keepdims=True)
            ctx = np.einsum('bij,bjd->bid', a, v[..., sl])
            att += ctx @ p['wo'][l][sl, :]
        att += p['bo'][l]
        x = ln(x + att, p['ln1_g'][l], p['ln1_b'][l])
        h1 = np.maximum(x @ p['ffn_w1'][l] + p['ffn_b1'][l], 0.0)
        x = ln(x + h1 @ p['ffn_w2'][l] + p['ffn_b2'][l],
               p['ln2_g'][l], p['ln2_b'][l])
        x = x * mask[:, :, None]
    divisor = np.clip(mask.sum(1, keepdims=True), 1e-20, None)
    return x.sum(1) / divisor


if __name__ == "__main__":
    B, S, E, F = 16, 16, 32, 64
    N_HEADS, N_LAYERS = 2, 2
    VOCAB, N_POS, PAD = 64, 64, 0

    key = jax.random.PRNGKey(0)
    ks = jax.random.split(key, 18)

    ids = jax.random.randint(ks[0], (B, S), 1, VOCAB, dtype=jnp.int32)
    ids = ids.at[1, 12:].set(PAD)            # ragged rows exercise the mask
    ids = ids.at[10, 5:].set(PAD)

    def xavier(k, shape):
        s = math.sqrt(2.0 / (shape[-2] + shape[-1]))
        return s * jax.random.normal(k, shape, jnp.float32)

    emb = (E ** -0.5) * jax.random.normal(ks[1], (VOCAB, E), jnp.float32)
    emb = emb.at[PAD].set(0.0)               # nn.Embedding(padding_idx=0)

    # create_position_codes (sinusoidal), learn_positional_embeddings=False
    pe = np.array([[pos / np.power(10000, 2 * (j // 2) / E) for j in range(E)]
                   for pos in range(N_POS)])
    pos_tbl = np.zeros((N_POS, E), np.float32)
    pos_tbl[:, 0::2] = np.sin(pe[:, 0::2])
    pos_tbl[:, 1::2] = np.cos(pe[:, 1::2])

    params = {
        'embedding': emb,
        'pos_embedding': jnp.asarray(pos_tbl),
        # Linear weights stored pre-transposed as (in, out); biases as (1, out).
        'wq': xavier(ks[2], (N_LAYERS, E, E)),
        'wk': xavier(ks[3], (N_LAYERS, E, E)),
        'wv': xavier(ks[4], (N_LAYERS, E, E)),
        'wo': xavier(ks[5], (N_LAYERS, E, E)),
        'bq': 0.1 * jax.random.normal(ks[6], (N_LAYERS, 1, E), jnp.float32),
        'bk': 0.1 * jax.random.normal(ks[7], (N_LAYERS, 1, E), jnp.float32),
        'bv': 0.1 * jax.random.normal(ks[8], (N_LAYERS, 1, E), jnp.float32),
        'bo': 0.1 * jax.random.normal(ks[9], (N_LAYERS, 1, E), jnp.float32),
        'ln1_g': 1.0 + 0.1 * jax.random.normal(ks[10], (N_LAYERS, 1, E), jnp.float32),
        'ln1_b': 0.1 * jax.random.normal(ks[11], (N_LAYERS, 1, E), jnp.float32),
        'ln2_g': 1.0 + 0.1 * jax.random.normal(ks[12], (N_LAYERS, 1, E), jnp.float32),
        'ln2_b': 0.1 * jax.random.normal(ks[13], (N_LAYERS, 1, E), jnp.float32),
        'ffn_w1': xavier(ks[14], (N_LAYERS, E, F)),
        'ffn_b1': 0.1 * jax.random.normal(ks[15], (N_LAYERS, 1, F), jnp.float32),
        'ffn_w2': xavier(ks[16], (N_LAYERS, F, E)),
        'ffn_b2': 0.1 * jax.random.normal(ks[17], (N_LAYERS, 1, E), jnp.float32),
    }

    ref = _reference(ids, params, n_heads=N_HEADS, padding_idx=PAD)

    # f32 weights: strict check against the float64 reference.
    out32 = transformer_encoder_pallas(ids, params, n_heads=N_HEADS,
                                       padding_idx=PAD, block_b=8,
                                       param_dtype=jnp.float32)
    out32 = jax.block_until_ready(out32)
    err32 = float(np.max(np.abs(np.asarray(out32, np.float64) - ref)))
    assert err32 < 5e-2, f"f32 path max abs err {err32} vs float64 reference"

    # bf16 weights + f32 accumulation: looser bound (bf16 weight rounding vs
    # an f32-weight reference).
    out16 = transformer_encoder_pallas(ids, params, n_heads=N_HEADS,
                                       padding_idx=PAD, block_b=8,
                                       param_dtype=jnp.bfloat16)
    out16 = jax.block_until_ready(out16)
    err16 = float(np.max(np.abs(np.asarray(out16, np.float64) - ref)))
    assert err16 < 1.5e-1, f"bf16 path max abs err {err16} vs float64 reference"

    print("KERNEL_OK")
</pallas_src>

<mosaic_0001>
module attributes {stable_mosaic.version = 11 : i64} {
  func.func @_encoder_kernel(%arg0: i32, %arg1: i32, %arg2: memref<8x16x32xf32, #tpu.memory_space<vmem>>, %arg3: memref<128x1xf32, #tpu.memory_space<vmem>>, %arg4: memref<8x1x16xf32, #tpu.memory_space<vmem>>, %arg5: memref<16x32xf32, #tpu.memory_space<vmem>>, %arg6: memref<1x32x96xf32, #tpu.memory_space<vmem>>, %arg7: memref<1x1x96xf32, #tpu.memory_space<vmem>>, %arg8: memref<1x32x32xf32, #tpu.memory_space<vmem>>, %arg9: memref<1x1x32xf32, #tpu.memory_space<vmem>>, %arg10: memref<1x1x32xf32, #tpu.memory_space<vmem>>, %arg11: memref<1x1x32xf32, #tpu.memory_space<vmem>>, %arg12: memref<1x1x32xf32, #tpu.memory_space<vmem>>, %arg13: memref<1x1x32xf32, #tpu.memory_space<vmem>>, %arg14: memref<1x32x64xf32, #tpu.memory_space<vmem>>, %arg15: memref<1x1x64xf32, #tpu.memory_space<vmem>>, %arg16: memref<1x64x32xf32, #tpu.memory_space<vmem>>, %arg17: memref<1x1x32xf32, #tpu.memory_space<vmem>>, %arg18: memref<8x32xf32, #tpu.memory_space<vmem>>, %arg19: memref<128x32xf32, #tpu.memory_space<vmem>>, %arg20: memref<128x32xf32, #tpu.memory_space<vmem>>) attributes {dimension_semantics = [#tpu.dimension_semantics<parallel>, #tpu.dimension_semantics<arbitrary>], iteration_bounds = array<i64: 2, 2>, scalar_prefetch = 0 : i64, scratch_operands = 2 : i64, tpu.core_type = #tpu.core_type<tc>, window_params = [{transform_indices = @transform_0, window_bounds = array<i64: 8, 16, 32>}, {transform_indices = @transform_1, window_bounds = array<i64: 128, 1>}, {transform_indices = @transform_2, window_bounds = array<i64: 8, 1, 16>}, {pipeline_mode = #tpu.pipeline_mode<synchronous>, transform_indices = @transform_3, window_bounds = array<i64: 16, 32>}, {transform_indices = @transform_4, window_bounds = array<i64: 1, 32, 96>}, {transform_indices = @transform_5, window_bounds = array<i64: 1, 1, 96>}, {transform_indices = @transform_6, window_bounds = array<i64: 1, 32, 32>}, {transform_indices = @transform_7, window_bounds = array<i64: 1, 1, 32>}, {transform_indices = @transform_8, window_bounds = array<i64: 1, 1, 32>}, {transform_indices = @transform_9, window_bounds = array<i64: 1, 1, 32>}, {transform_indices = @transform_10, window_bounds = array<i64: 1, 1, 32>}, {transform_indices = @transform_11, window_bounds = array<i64: 1, 1, 32>}, {transform_indices = @transform_12, window_bounds = array<i64: 1, 32, 64>}, {transform_indices = @transform_13, window_bounds = array<i64: 1, 1, 64>}, {transform_indices = @transform_14, window_bounds = array<i64: 1, 64, 32>}, {transform_indices = @transform_15, window_bounds = array<i64: 1, 1, 32>}, {transform_indices = @transform_16, window_bounds = array<i64: 8, 32>}]} {
    %c0 = arith.constant 0 : index
    %c0_0 = arith.constant 0 : index
    %0 = vector.load %arg3[%c0, %c0_0] : memref<128x1xf32, #tpu.memory_space<vmem>>, vector<128x1xf32>
    %c0_i32 = arith.constant 0 : i32
    %1 = arith.cmpi eq, %arg1, %c0_i32 : i32
    %2 = arith.extui %1 : i1 to i32
    %c0_i32_1 = arith.constant 0 : i32
    %3 = arith.cmpi ne, %2, %c0_i32_1 : i32
    scf.if %3 {
      %c0_165 = arith.constant 0 : index
      %c0_166 = arith.constant 0 : index
      %c0_167 = arith.constant 0 : index
      %396 = vector.load %arg2[%c0_165, %c0_166, %c0_167] : memref<8x16x32xf32, #tpu.memory_space<vmem>>, vector<8x16x32xf32>
      %c0_168 = arith.constant 0 : index
      %c0_169 = arith.constant 0 : index
      %397 = vector.load %arg5[%c0_168, %c0_169] : memref<16x32xf32, #tpu.memory_space<vmem>>, vector<16x32xf32>
      %398 = vector.shape_cast %397 : vector<16x32xf32> to vector<1x16x32xf32>
      %399 = vector.broadcast %398 : vector<1x16x32xf32> to vector<8x16x32xf32>
      %400 = arith.addf %396, %399 : vector<8x16x32xf32>
      %401 = vector.shape_cast %400 : vector<8x16x32xf32> to vector<128x32xf32>
      %402 = vector.broadcast %0 : vector<128x1xf32> to vector<128x32xf32>
      %403 = arith.mulf %401, %402 : vector<128x32xf32>
      %c0_170 = arith.constant 0 : index
      %c0_171 = arith.constant 0 : index
      %404 = vector.load %arg19[%c0_170, %c0_171] : memref<128x32xf32, #tpu.memory_space<vmem>>, vector<128x32xf32>
      tpu.vector_store %arg19[%c0_170, %c0_171], %403 {strides = array<i32>} : memref<128x32xf32, #tpu.memory_space<vmem>>, vector<128x32xf32>,
    } else {
    }
    %c0_2 = arith.constant 0 : index
    %c0_3 = arith.constant 0 : index
    %4 = vector.load %arg19[%c0_2, %c0_3] : memref<128x32xf32, #tpu.memory_space<vmem>>, vector<128x32xf32>
    %c0_4 = arith.constant 0 : index
    %c0_5 = arith.constant 0 : index
    %c0_6 = arith.constant 0 : index
    %5 = vector.load %arg6[%c0_4, %c0_5, %c0_6] : memref<1x32x96xf32, #tpu.memory_space<vmem>>, vector<1x32x96xf32>
    %6 = vector.shape_cast %5 : vector<1x32x96xf32> to vector<32x96xf32>
    %cst = arith.constant dense<0.000000e+00> : vector<128x96xf32>
    %7 = tpu.matmul %4, %6, %cst {dimension_numbers = #tpu.dot_dimension_numbers<[1], [0], [0], [1], [0, 0, 1, 1], [], []>} : vector<128x32xf32>, vector<32x96xf32>, vector<128x96xf32> -> vector<128x96xf32>
    %c0_7 = arith.constant 0 : index
    %c0_8 = arith.constant 0 : index
    %c0_9 = arith.constant 0 : index
    %8 = vector.load %arg7[%c0_7, %c0_8, %c0_9] : memref<1x1x96xf32, #tpu.memory_space<vmem>>, vector<1x1x96xf32>
    %9 = vector.shape_cast %8 : vector<1x1x96xf32> to vector<1x96xf32>
    %10 = vector.broadcast %9 : vector<1x96xf32> to vector<128x96xf32>
    %11 = arith.addf %7, %10 : vector<128x96xf32>
    %c0_10 = arith.constant 0 : index
    %c0_11 = arith.constant 0 : index
    %c0_12 = arith.constant 0 : index
    %12 = vector.load %arg4[%c0_10, %c0_11, %c0_12] : memref<8x1x16xf32, #tpu.memory_space<vmem>>, vector<1x1x16xf32>
    %13 = vector.shape_cast %12 : vector<1x1x16xf32> to vector<1x16xf32>
    %14 = vector.extract_strided_slice %11 {offsets = [0, 0], sizes = [16, 16], strides = [1, 1]} : vector<128x96xf32> to vector<16x16xf32>
    %15 = vector.extract_strided_slice %11 {offsets = [0, 32], sizes = [16, 16], strides = [1, 1]} : vector<128x96xf32> to vector<16x16xf32>
    %16 = vector.extract_strided_slice %11 {offsets = [0, 64], sizes = [16, 16], strides = [1, 1]} : vector<128x96xf32> to vector<16x16xf32>
    %cst_13 = arith.constant dense<0.000000e+00> : vector<16x16xf32>
    %17 = tpu.matmul %14, %15, %cst_13 {dimension_numbers = #tpu.dot_dimension_numbers<[1], [1], [0], [0], [0, 0, 1, 0], [], []>} : vector<16x16xf32>, vector<16x16xf32>, vector<16x16xf32> -> vector<16x16xf32>
    %18 = vector.broadcast %13 : vector<1x16xf32> to vector<16x16xf32>
    %19 = arith.addf %17, %18 : vector<16x16xf32>
    %cst_14 = arith.constant dense<0xFF800000> : vector<16xf32>
    %20 = vector.multi_reduction <maximumf>, %19, %cst_14 [1] : vector<16x16xf32> to vector<16xf32>
    %21 = vector.shape_cast %20 : vector<16xf32> to vector<16x1xf32>
    %22 = vector.broadcast %21 : vector<16x1xf32> to vector<16x16xf32>
    %23 = arith.subf %19, %22 : vector<16x16xf32>
    %24 = math.exp %23 : vector<16x16xf32>
    %cst_15 = arith.constant dense<0.000000e+00> : vector<16xf32>
    %25 = vector.multi_reduction <add>, %24, %cst_15 [1] : vector<16x16xf32> to vector<16xf32>
    %26 = vector.shape_cast %25 : vector<16xf32> to vector<16x1xf32>
    %27 = tpu.reciprocal %26 {approx = true} : vector<16x1xf32> -> vector<16x1xf32>
    %28 = vector.broadcast %27 : vector<16x1xf32> to vector<16x16xf32>
    %29 = arith.mulf %24, %28 : vector<16x16xf32>
    %cst_16 = arith.constant dense<0.000000e+00> : vector<16x16xf32>
    %30 = tpu.matmul %29, %16, %cst_16 {dimension_numbers = #tpu.dot_dimension_numbers<[1], [0], [0], [1], [0, 0, 1, 1], [], []>} : vector<16x16xf32>, vector<16x16xf32>, vector<16x16xf32> -> vector<16x16xf32>
    %c0_17 = arith.constant 0 : index
    %c0_18 = arith.constant 0 : index
    %31 = vector.load %arg20[%c0_17, %c0_18] : memref<128x32xf32, #tpu.memory_space<vmem>>, vector<16x16xf32>
    tpu.vector_store %arg20[%c0_17, %c0_18], %30 {strides = array<i32>} : memref<128x32xf32, #tpu.memory_space<vmem>>, vector<16x16xf32>,
    %32 = vector.extract_strided_slice %11 {offsets = [0, 16], sizes = [16, 16], strides = [1, 1]} : vector<128x96xf32> to vector<16x16xf32>
    %33 = vector.extract_strided_slice %11 {offsets = [0, 48], sizes = [16, 16], strides = [1, 1]} : vector<128x96xf32> to vector<16x16xf32>
    %34 = vector.extract_strided_slice %11 {offsets = [0, 80], sizes = [16, 16], strides = [1, 1]} : vector<128x96xf32> to vector<16x16xf32>
    %cst_19 = arith.constant dense<0.000000e+00> : vector<16x16xf32>
    %35 = tpu.matmul %32, %33, %cst_19 {dimension_numbers = #tpu.dot_dimension_numbers<[1], [1], [0], [0], [0, 0, 1, 0], [], []>} : vector<16x16xf32>, vector<16x16xf32>, vector<16x16xf32> -> vector<16x16xf32>
    %36 = vector.broadcast %13 : vector<1x16xf32> to vector<16x16xf32>
    %37 = arith.addf %35, %36 : vector<16x16xf32>
    %cst_20 = arith.constant dense<0xFF800000> : vector<16xf32>
    %38 = vector.multi_reduction <maximumf>, %37, %cst_20 [1] : vector<16x16xf32> to vector<16xf32>
    %39 = vector.shape_cast %38 : vector<16xf32> to vector<16x1xf32>
    %40 = vector.broadcast %39 : vector<16x1xf32> to vector<16x16xf32>
    %41 = arith.subf %37, %40 : vector<16x16xf32>
    %42 = math.exp %41 : vector<16x16xf32>
    %cst_21 = arith.constant dense<0.000000e+00> : vector<16xf32>
    %43 = vector.multi_reduction <add>, %42, %cst_21 [1] : vector<16x16xf32> to vector<16xf32>
    %44 = vector.shape_cast %43 : vector<16xf32> to vector<16x1xf32>
    %45 = tpu.reciprocal %44 {approx = true} : vector<16x1xf32> -> vector<16x1xf32>
    %46 = vector.broadcast %45 : vector<16x1xf32> to vector<16x16xf32>
    %47 = arith.mulf %42, %46 : vector<16x16xf32>
    %cst_22 = arith.constant dense<0.000000e+00> : vector<16x16xf32>
    %48 = tpu.matmul %47, %34, %cst_22 {dimension_numbers = #tpu.dot_dimension_numbers<[1], [0], [0], [1], [0, 0, 1, 1], [], []>} : vector<16x16xf32>, vector<16x16xf32>, vector<16x16xf32> -> vector<16x16xf32>
    %c0_23 = arith.constant 0 : index
    %c16 = arith.constant 16 : index
    %49 = vector.load %arg20[%c0_23, %c16] : memref<128x32xf32, #tpu.memory_space<vmem>>, vector<16x16xf32>
    tpu.vector_store %arg20[%c0_23, %c16], %48 {strides = array<i32>} : memref<128x32xf32, #tpu.memory_space<vmem>>, vector<16x16xf32>,
    %c1 = arith.constant 1 : index
    %c0_24 = arith.constant 0 : index
    %c0_25 = arith.constant 0 : index
    %50 = vector.load %arg4[%c1, %c0_24, %c0_25] : memref<8x1x16xf32, #tpu.memory_space<vmem>>, vector<1x1x16xf32>
    %51 = vector.shape_cast %50 : vector<1x1x16xf32> to vector<1x16xf32>
    %52 = vector.extract_strided_slice %11 {offsets = [16, 0], sizes = [16, 16], strides = [1, 1]} : vector<128x96xf32> to vector<16x16xf32>
    %53 = vector.extract_strided_slice %11 {offsets = [16, 32], sizes = [16, 16], strides = [1, 1]} : vector<128x96xf32> to vector<16x16xf32>
    %54 = vector.extract_strided_slice %11 {offsets = [16, 64], sizes = [16, 16], strides = [1, 1]} : vector<128x96xf32> to vector<16x16xf32>
    %cst_26 = arith.constant dense<0.000000e+00> : vector<16x16xf32>
    %55 = tpu.matmul %52, %53, %cst_26 {dimension_numbers = #tpu.dot_dimension_numbers<[1], [1], [0], [0], [0, 0, 1, 0], [], []>} : vector<16x16xf32>, vector<16x16xf32>, vector<16x16xf32> -> vector<16x16xf32>
    %56 = vector.broadcast %51 : vector<1x16xf32> to vector<16x16xf32>
    %57 = arith.addf %55, %56 : vector<16x16xf32>
    %cst_27 = arith.constant dense<0xFF800000> : vector<16xf32>
    %58 = vector.multi_reduction <maximumf>, %57, %cst_27 [1] : vector<16x16xf32> to vector<16xf32>
    %59 = vector.shape_cast %58 : vector<16xf32> to vector<16x1xf32>
    %60 = vector.broadcast %59 : vector<16x1xf32> to vector<16x16xf32>
    %61 = arith.subf %57, %60 : vector<16x16xf32>
    %62 = math.exp %61 : vector<16x16xf32>
    %cst_28 = arith.constant dense<0.000000e+00> : vector<16xf32>
    %63 = vector.multi_reduction <add>, %62, %cst_28 [1] : vector<16x16xf32> to vector<16xf32>
    %64 = vector.shape_cast %63 : vector<16xf32> to vector<16x1xf32>
    %65 = tpu.reciprocal %64 {approx = true} : vector<16x1xf32> -> vector<16x1xf32>
    %66 = vector.broadcast %65 : vector<16x1xf32> to vector<16x16xf32>
    %67 = arith.mulf %62, %66 : vector<16x16xf32>
    %cst_29 = arith.constant dense<0.000000e+00> : vector<16x16xf32>
    %68 = tpu.matmul %67, %54, %cst_29 {dimension_numbers = #tpu.dot_dimension_numbers<[1], [0], [0], [1], [0, 0, 1, 1], [], []>} : vector<16x16xf32>, vector<16x16xf32>, vector<16x16xf32> -> vector<16x16xf32>
    %c16_30 = arith.constant 16 : index
    %c0_31 = arith.constant 0 : index
    %69 = vector.load %arg20[%c16_30, %c0_31] : memref<128x32xf32, #tpu.memory_space<vmem>>, vector<16x16xf32>
    tpu.vector_store %arg20[%c16_30, %c0_31], %68 {strides = array<i32>} : memref<128x32xf32, #tpu.memory_space<vmem>>, vector<16x16xf32>,
    %70 = vector.extract_strided_slice %11 {offsets = [16, 16], sizes = [16, 16], strides = [1, 1]} : vector<128x96xf32> to vector<16x16xf32>
    %71 = vector.extract_strided_slice %11 {offsets = [16, 48], sizes = [16, 16], strides = [1, 1]} : vector<128x96xf32> to vector<16x16xf32>
    %72 = vector.extract_strided_slice %11 {offsets = [16, 80], sizes = [16, 16], strides = [1, 1]} : vector<128x96xf32> to vector<16x16xf32>
    %cst_32 = arith.constant dense<0.000000e+00> : vector<16x16xf32>
    %73 = tpu.matmul %70, %71, %cst_32 {dimension_numbers = #tpu.dot_dimension_numbers<[1], [1], [0], [0], [0, 0, 1, 0], [], []>} : vector<16x16xf32>, vector<16x16xf32>, vector<16x16xf32> -> vector<16x16xf32>
    %74 = vector.broadcast %51 : vector<1x16xf32> to vector<16x16xf32>
    %75 = arith.addf %73, %74 : vector<16x16xf32>
    %cst_33 = arith.constant dense<0xFF800000> : vector<16xf32>
    %76 = vector.multi_reduction <maximumf>, %75, %cst_33 [1] : vector<16x16xf32> to vector<16xf32>
    %77 = vector.shape_cast %76 : vector<16xf32> to vector<16x1xf32>
    %78 = vector.broadcast %77 : vector<16x1xf32> to vector<16x16xf32>
    %79 = arith.subf %75, %78 : vector<16x16xf32>
    %80 = math.exp %79 : vector<16x16xf32>
    %cst_34 = arith.constant dense<0.000000e+00> : vector<16xf32>
    %81 = vector.multi_reduction <add>, %80, %cst_34 [1] : vector<16x16xf32> to vector<16xf32>
    %82 = vector.shape_cast %81 : vector<16xf32> to vector<16x1xf32>
    %83 = tpu.reciprocal %82 {approx = true} : vector<16x1xf32> -> vector<16x1xf32>
    %84 = vector.broadcast %83 : vector<16x1xf32> to vector<16x16xf32>
    %85 = arith.mulf %80, %84 : vector<16x16xf32>
    %cst_35 = arith.constant dense<0.000000e+00> : vector<16x16xf32>
    %86 = tpu.matmul %85, %72, %cst_35 {dimension_numbers = #tpu.dot_dimension_numbers<[1], [0], [0], [1], [0, 0, 1, 1], [], []>} : vector<16x16xf32>, vector<16x16xf32>, vector<16x16xf32> -> vector<16x16xf32>
    %c16_36 = arith.constant 16 : index
    %c16_37 = arith.constant 16 : index
    %87 = vector.load %arg20[%c16_36, %c16_37] : memref<128x32xf32, #tpu.memory_space<vmem>>, vector<16x16xf32>
    tpu.vector_store %arg20[%c16_36, %c16_37], %86 {strides = array<i32>} : memref<128x32xf32, #tpu.memory_space<vmem>>, vector<16x16xf32>,
    %c2 = arith.constant 2 : index
    %c0_38 = arith.constant 0 : index
    %c0_39 = arith.constant 0 : index
    %88 = vector.load %arg4[%c2, %c0_38, %c0_39] : memref<8x1x16xf32, #tpu.memory_space<vmem>>, vector<1x1x16xf32>
    %89 = vector.shape_cast %88 : vector<1x1x16xf32> to vector<1x16xf32>
    %90 = vector.extract_strided_slice %11 {offsets = [32, 0], sizes = [16, 16], strides = [1, 1]} : vector<128x96xf32> to vector<16x16xf32>
    %91 = vector.extract_strided_slice %11 {offsets = [32, 32], sizes = [16, 16], strides = [1, 1]} : vector<128x96xf32> to vector<16x16xf32>
    %92 = vector.extract_strided_slice %11 {offsets = [32, 64], sizes = [16, 16], strides = [1, 1]} : vector<128x96xf32> to vector<16x16xf32>
    %cst_40 = arith.constant dense<0.000000e+00> : vector<16x16xf32>
    %93 = tpu.matmul %90, %91, %cst_40 {dimension_numbers = #tpu.dot_dimension_numbers<[1], [1], [0], [0], [0, 0, 1, 0], [], []>} : vector<16x16xf32>, vector<16x16xf32>, vector<16x16xf32> -> vector<16x16xf32>
    %94 = vector.broadcast %89 : vector<1x16xf32> to vector<16x16xf32>
    %95 = arith.addf %93, %94 : vector<16x16xf32>
    %cst_41 = arith.constant dense<0xFF800000> : vector<16xf32>
    %96 = vector.multi_reduction <maximumf>, %95, %cst_41 [1] : vector<16x16xf32> to vector<16xf32>
    %97 = vector.shape_cast %96 : vector<16xf32> to vector<16x1xf32>
    %98 = vector.broadcast %97 : vector<16x1xf32> to vector<16x16xf32>
    %99 = arith.subf %95, %98 : vector<16x16xf32>
    %100 = math.exp %99 : vector<16x16xf32>
    %cst_42 = arith.constant dense<0.000000e+00> : vector<16xf32>
    %101 = vector.multi_reduction <add>, %100, %cst_42 [1] : vector<16x16xf32> to vector<16xf32>
    %102 = vector.shape_cast %101 : vector<16xf32> to vector<16x1xf32>
    %103 = tpu.reciprocal %102 {approx = true} : vector<16x1xf32> -> vector<16x1xf32>
    %104 = vector.broadcast %103 : vector<16x1xf32> to vector<16x16xf32>
    %105 = arith.mulf %100, %104 : vector<16x16xf32>
    %cst_43 = arith.constant dense<0.000000e+00> : vector<16x16xf32>
    %106 = tpu.matmul %105, %92, %cst_43 {dimension_numbers = #tpu.dot_dimension_numbers<[1], [0], [0], [1], [0, 0, 1, 1], [], []>} : vector<16x16xf32>, vector<16x16xf32>, vector<16x16xf32> -> vector<16x16xf32>
    %c32 = arith.constant 32 : index
    %c0_44 = arith.constant 0 : index
    %107 = vector.load %arg20[%c32, %c0_44] : memref<128x32xf32, #tpu.memory_space<vmem>>, vector<16x16xf32>
    tpu.vector_store %arg20[%c32, %c0_44], %106 {strides = array<i32>} : memref<128x32xf32, #tpu.memory_space<vmem>>, vector<16x16xf32>,
    %108 = vector.extract_strided_slice %11 {offsets = [32, 16], sizes = [16, 16], strides = [1, 1]} : vector<128x96xf32> to vector<16x16xf32>
    %109 = vector.extract_strided_slice %11 {offsets = [32, 48], sizes = [16, 16], strides = [1, 1]} : vector<128x96xf32> to vector<16x16xf32>
    %110 = vector.extract_strided_slice %11 {offsets = [32, 80], sizes = [16, 16], strides = [1, 1]} : vector<128x96xf32> to vector<16x16xf32>
    %cst_45 = arith.constant dense<0.000000e+00> : vector<16x16xf32>
    %111 = tpu.matmul %108, %109, %cst_45 {dimension_numbers = #tpu.dot_dimension_numbers<[1], [1], [0], [0], [0, 0, 1, 0], [], []>} : vector<16x16xf32>, vector<16x16xf32>, vector<16x16xf32> -> vector<16x16xf32>
    %112 = vector.broadcast %89 : vector<1x16xf32> to vector<16x16xf32>
    %113 = arith.addf %111, %112 : vector<16x16xf32>
    %cst_46 = arith.constant dense<0xFF800000> : vector<16xf32>
    %114 = vector.multi_reduction <maximumf>, %113, %cst_46 [1] : vector<16x16xf32> to vector<16xf32>
    %115 = vector.shape_cast %114 : vector<16xf32> to vector<16x1xf32>
    %116 = vector.broadcast %115 : vector<16x1xf32> to vector<16x16xf32>
    %117 = arith.subf %113, %116 : vector<16x16xf32>
    %118 = math.exp %117 : vector<16x16xf32>
    %cst_47 = arith.constant dense<0.000000e+00> : vector<16xf32>
    %119 = vector.multi_reduction <add>, %118, %cst_47 [1] : vector<16x16xf32> to vector<16xf32>
    %120 = vector.shape_cast %119 : vector<16xf32> to vector<16x1xf32>
    %121 = tpu.reciprocal %120 {approx = true} : vector<16x1xf32> -> vector<16x1xf32>
    %122 = vector.broadcast %121 : vector<16x1xf32> to vector<16x16xf32>
    %123 = arith.mulf %118, %122 : vector<16x16xf32>
    %cst_48 = arith.constant dense<0.000000e+00> : vector<16x16xf32>
    %124 = tpu.matmul %123, %110, %cst_48 {dimension_numbers = #tpu.dot_dimension_numbers<[1], [0], [0], [1], [0, 0, 1, 1], [], []>} : vector<16x16xf32>, vector<16x16xf32>, vector<16x16xf32> -> vector<16x16xf32>
    %c32_49 = arith.constant 32 : index
    %c16_50 = arith.constant 16 : index
    %125 = vector.load %arg20[%c32_49, %c16_50] : memref<128x32xf32, #tpu.memory_space<vmem>>, vector<16x16xf32>
    tpu.vector_store %arg20[%c32_49, %c16_50], %124 {strides = array<i32>} : memref<128x32xf32, #tpu.memory_space<vmem>>, vector<16x16xf32>,
    %c3 = arith.constant 3 : index
    %c0_51 = arith.constant 0 : index
    %c0_52 = arith.constant 0 : index
    %126 = vector.load %arg4[%c3, %c0_51, %c0_52] : memref<8x1x16xf32, #tpu.memory_space<vmem>>, vector<1x1x16xf32>
    %127 = vector.shape_cast %126 : vector<1x1x16xf32> to vector<1x16xf32>
    %128 = vector.extract_strided_slice %11 {offsets = [48, 0], sizes = [16, 16], strides = [1, 1]} : vector<128x96xf32> to vector<16x16xf32>
    %129 = vector.extract_strided_slice %11 {offsets = [48, 32], sizes = [16, 16], strides = [1, 1]} : vector<128x96xf32> to vector<16x16xf32>
    %130 = vector.extract_strided_slice %11 {offsets = [48, 64], sizes = [16, 16], strides = [1, 1]} : vector<128x96xf32> to vector<16x16xf32>
    %cst_53 = arith.constant dense<0.000000e+00> : vector<16x16xf32>
    %131 = tpu.matmul %128, %129, %cst_53 {dimension_numbers = #tpu.dot_dimension_numbers<[1], [1], [0], [0], [0, 0, 1, 0], [], []>} : vector<16x16xf32>, vector<16x16xf32>, vector<16x16xf32> -> vector<16x16xf32>
    %132 = vector.broadcast %127 : vector<1x16xf32> to vector<16x16xf32>
    %133 = arith.addf %131, %132 : vector<16x16xf32>
    %cst_54 = arith.constant dense<0xFF800000> : vector<16xf32>
    %134 = vector.multi_reduction <maximumf>, %133, %cst_54 [1] : vector<16x16xf32> to vector<16xf32>
    %135 = vector.shape_cast %134 : vector<16xf32> to vector<16x1xf32>
    %136 = vector.broadcast %135 : vector<16x1xf32> to vector<16x16xf32>
    %137 = arith.subf %133, %136 : vector<16x16xf32>
    %138 = math.exp %137 : vector<16x16xf32>
    %cst_55 = arith.constant dense<0.000000e+00> : vector<16xf32>
    %139 = vector.multi_reduction <add>, %138, %cst_55 [1] : vector<16x16xf32> to vector<16xf32>
    %140 = vector.shape_cast %139 : vector<16xf32> to vector<16x1xf32>
    %141 = tpu.reciprocal %140 {approx = true} : vector<16x1xf32> -> vector<16x1xf32>
    %142 = vector.broadcast %141 : vector<16x1xf32> to vector<16x16xf32>
    %143 = arith.mulf %138, %142 : vector<16x16xf32>
    %cst_56 = arith.constant dense<0.000000e+00> : vector<16x16xf32>
    %144 = tpu.matmul %143, %130, %cst_56 {dimension_numbers = #tpu.dot_dimension_numbers<[1], [0], [0], [1], [0, 0, 1, 1], [], []>} : vector<16x16xf32>, vector<16x16xf32>, vector<16x16xf32> -> vector<16x16xf32>
    %c48 = arith.constant 48 : index
    %c0_57 = arith.constant 0 : index
    %145 = vector.load %arg20[%c48, %c0_57] : memref<128x32xf32, #tpu.memory_space<vmem>>, vector<16x16xf32>
    tpu.vector_store %arg20[%c48, %c0_57], %144 {strides = array<i32>} : memref<128x32xf32, #tpu.memory_space<vmem>>, vector<16x16xf32>,
    %146 = vector.extract_strided_slice %11 {offsets = [48, 16], sizes = [16, 16], strides = [1, 1]} : vector<128x96xf32> to vector<16x16xf32>
    %147 = vector.extract_strided_slice %11 {offsets = [48, 48], sizes = [16, 16], strides = [1, 1]} : vector<128x96xf32> to vector<16x16xf32>
    %148 = vector.extract_strided_slice %11 {offsets = [48, 80], sizes = [16, 16], strides = [1, 1]} : vector<128x96xf32> to vector<16x16xf32>
    %cst_58 = arith.constant dense<0.000000e+00> : vector<16x16xf32>
    %149 = tpu.matmul %146, %147, %cst_58 {dimension_numbers = #tpu.dot_dimension_numbers<[1], [1], [0], [0], [0, 0, 1, 0], [], []>} : vector<16x16xf32>, vector<16x16xf32>, vector<16x16xf32> -> vector<16x16xf32>
    %150 = vector.broadcast %127 : vector<1x16xf32> to vector<16x16xf32>
    %151 = arith.addf %149, %150 : vector<16x16xf32>
    %cst_59 = arith.constant dense<0xFF800000> : vector<16xf32>
    %152 = vector.multi_reduction <maximumf>, %151, %cst_59 [1] : vector<16x16xf32> to vector<16xf32>
    %153 = vector.shape_cast %152 : vector<16xf32> to vector<16x1xf32>
    %154 = vector.broadcast %153 : vector<16x1xf32> to vector<16x16xf32>
    %155 = arith.subf %151, %154 : vector<16x16xf32>
    %156 = math.exp %155 : vector<16x16xf32>
    %cst_60 = arith.constant dense<0.000000e+00> : vector<16xf32>
    %157 = vector.multi_reduction <add>, %156, %cst_60 [1] : vector<16x16xf32> to vector<16xf32>
    %158 = vector.shape_cast %157 : vector<16xf32> to vector<16x1xf32>
    %159 = tpu.reciprocal %158 {approx = true} : vector<16x1xf32> -> vector<16x1xf32>
    %160 = vector.broadcast %159 : vector<16x1xf32> to vector<16x16xf32>
    %161 = arith.mulf %156, %160 : vector<16x16xf32>
    %cst_61 = arith.constant dense<0.000000e+00> : vector<16x16xf32>
    %162 = tpu.matmul %161, %148, %cst_61 {dimension_numbers = #tpu.dot_dimension_numbers<[1], [0], [0], [1], [0, 0, 1, 1], [], []>} : vector<16x16xf32>, vector<16x16xf32>, vector<16x16xf32> -> vector<16x16xf32>
    %c48_62 = arith.constant 48 : index
    %c16_63 = arith.constant 16 : index
    %163 = vector.load %arg20[%c48_62, %c16_63] : memref<128x32xf32, #tpu.memory_space<vmem>>, vector<16x16xf32>
    tpu.vector_store %arg20[%c48_62, %c16_63], %162 {strides = array<i32>} : memref<128x32xf32, #tpu.memory_space<vmem>>, vector<16x16xf32>,
    %c4 = arith.constant 4 : index
    %c0_64 = arith.constant 0 : index
    %c0_65 = arith.constant 0 : index
    %164 = vector.load %arg4[%c4, %c0_64, %c0_65] : memref<8x1x16xf32, #tpu.memory_space<vmem>>, vector<1x1x16xf32>
    %165 = vector.shape_cast %164 : vector<1x1x16xf32> to vector<1x16xf32>
    %166 = vector.extract_strided_slice %11 {offsets = [64, 0], sizes = [16, 16], strides = [1, 1]} : vector<128x96xf32> to vector<16x16xf32>
    %167 = vector.extract_strided_slice %11 {offsets = [64, 32], sizes = [16, 16], strides = [1, 1]} : vector<128x96xf32> to vector<16x16xf32>
    %168 = vector.extract_strided_slice %11 {offsets = [64, 64], sizes = [16, 16], strides = [1, 1]} : vector<128x96xf32> to vector<16x16xf32>
    %cst_66 = arith.constant dense<0.000000e+00> : vector<16x16xf32>
    %169 = tpu.matmul %166, %167, %cst_66 {dimension_numbers = #tpu.dot_dimension_numbers<[1], [1], [0], [0], [0, 0, 1, 0], [], []>} : vector<16x16xf32>, vector<16x16xf32>, vector<16x16xf32> -> vector<16x16xf32>
    %170 = vector.broadcast %165 : vector<1x16xf32> to vector<16x16xf32>
    %171 = arith.addf %169, %170 : vector<16x16xf32>
    %cst_67 = arith.constant dense<0xFF800000> : vector<16xf32>
    %172 = vector.multi_reduction <maximumf>, %171, %cst_67 [1] : vector<16x16xf32> to vector<16xf32>
    %173 = vector.shape_cast %172 : vector<16xf32> to vector<16x1xf32>
    %174 = vector.broadcast %173 : vector<16x1xf32> to vector<16x16xf32>
    %175 = arith.subf %171, %174 : vector<16x16xf32>
    %176 = math.exp %175 : vector<16x16xf32>
    %cst_68 = arith.constant dense<0.000000e+00> : vector<16xf32>
    %177 = vector.multi_reduction <add>, %176, %cst_68 [1] : vector<16x16xf32> to vector<16xf32>
    %178 = vector.shape_cast %177 : vector<16xf32> to vector<16x1xf32>
    %179 = tpu.reciprocal %178 {approx = true} : vector<16x1xf32> -> vector<16x1xf32>
    %180 = vector.broadcast %179 : vector<16x1xf32> to vector<16x16xf32>
    %181 = arith.mulf %176, %180 : vector<16x16xf32>
    %cst_69 = arith.constant dense<0.000000e+00> : vector<16x16xf32>
    %182 = tpu.matmul %181, %168, %cst_69 {dimension_numbers = #tpu.dot_dimension_numbers<[1], [0], [0], [1], [0, 0, 1, 1], [], []>} : vector<16x16xf32>, vector<16x16xf32>, vector<16x16xf32> -> vector<16x16xf32>
    %c64 = arith.constant 64 : index
    %c0_70 = arith.constant 0 : index
    %183 = vector.load %arg20[%c64, %c0_70] : memref<128x32xf32, #tpu.memory_space<vmem>>, vector<16x16xf32>
    tpu.vector_store %arg20[%c64, %c0_70], %182 {strides = array<i32>} : memref<128x32xf32, #tpu.memory_space<vmem>>, vector<16x16xf32>,
    %184 = vector.extract_strided_slice %11 {offsets = [64, 16], sizes = [16, 16], strides = [1, 1]} : vector<128x96xf32> to vector<16x16xf32>
    %185 = vector.extract_strided_slice %11 {offsets = [64, 48], sizes = [16, 16], strides = [1, 1]} : vector<128x96xf32> to vector<16x16xf32>
    %186 = vector.extract_strided_slice %11 {offsets = [64, 80], sizes = [16, 16], strides = [1, 1]} : vector<128x96xf32> to vector<16x16xf32>
    %cst_71 = arith.constant dense<0.000000e+00> : vector<16x16xf32>
    %187 = tpu.matmul %184, %185, %cst_71 {dimension_numbers = #tpu.dot_dimension_numbers<[1], [1], [0], [0], [0, 0, 1, 0], [], []>} : vector<16x16xf32>, vector<16x16xf32>, vector<16x16xf32> -> vector<16x16xf32>
    %188 = vector.broadcast %165 : vector<1x16xf32> to vector<16x16xf32>
    %189 = arith.addf %187, %188 : vector<16x16xf32>
    %cst_72 = arith.constant dense<0xFF800000> : vector<16xf32>
    %190 = vector.multi_reduction <maximumf>, %189, %cst_72 [1] : vector<16x16xf32> to vector<16xf32>
    %191 = vector.shape_cast %190 : vector<16xf32> to vector<16x1xf32>
    %192 = vector.broadcast %191 : vector<16x1xf32> to vector<16x16xf32>
    %193 = arith.subf %189, %192 : vector<16x16xf32>
    %194 = math.exp %193 : vector<16x16xf32>
    %cst_73 = arith.constant dense<0.000000e+00> : vector<16xf32>
    %195 = vector.multi_reduction <add>, %194, %cst_73 [1] : vector<16x16xf32> to vector<16xf32>
    %196 = vector.shape_cast %195 : vector<16xf32> to vector<16x1xf32>
    %197 = tpu.reciprocal %196 {approx = true} : vector<16x1xf32> -> vector<16x1xf32>
    %198 = vector.broadcast %197 : vector<16x1xf32> to vector<16x16xf32>
    %199 = arith.mulf %194, %198 : vector<16x16xf32>
    %cst_74 = arith.constant dense<0.000000e+00> : vector<16x16xf32>
    %200 = tpu.matmul %199, %186, %cst_74 {dimension_numbers = #tpu.dot_dimension_numbers<[1], [0], [0], [1], [0, 0, 1, 1], [], []>} : vector<16x16xf32>, vector<16x16xf32>, vector<16x16xf32> -> vector<16x16xf32>
    %c64_75 = arith.constant 64 : index
    %c16_76 = arith.constant 16 : index
    %201 = vector.load %arg20[%c64_75, %c16_76] : memref<128x32xf32, #tpu.memory_space<vmem>>, vector<16x16xf32>
    tpu.vector_store %arg20[%c64_75, %c16_76], %200 {strides = array<i32>} : memref<128x32xf32, #tpu.memory_space<vmem>>, vector<16x16xf32>,
    %c5 = arith.constant 5 : index
    %c0_77 = arith.constant 0 : index
    %c0_78 = arith.constant 0 : index
    %202 = vector.load %arg4[%c5, %c0_77, %c0_78] : memref<8x1x16xf32, #tpu.memory_space<vmem>>, vector<1x1x16xf32>
    %203 = vector.shape_cast %202 : vector<1x1x16xf32> to vector<1x16xf32>
    %204 = vector.extract_strided_slice %11 {offsets = [80, 0], sizes = [16, 16], strides = [1, 1]} : vector<128x96xf32> to vector<16x16xf32>
    %205 = vector.extract_strided_slice %11 {offsets = [80, 32], sizes = [16, 16], strides = [1, 1]} : vector<128x96xf32> to vector<16x16xf32>
    %206 = vector.extract_strided_slice %11 {offsets = [80, 64], sizes = [16, 16], strides = [1, 1]} : vector<128x96xf32> to vector<16x16xf32>
    %cst_79 = arith.constant dense<0.000000e+00> : vector<16x16xf32>
    %207 = tpu.matmul %204, %205, %cst_79 {dimension_numbers = #tpu.dot_dimension_numbers<[1], [1], [0], [0], [0, 0, 1, 0], [], []>} : vector<16x16xf32>, vector<16x16xf32>, vector<16x16xf32> -> vector<16x16xf32>
    %208 = vector.broadcast %203 : vector<1x16xf32> to vector<16x16xf32>
    %209 = arith.addf %207, %208 : vector<16x16xf32>
    %cst_80 = arith.constant dense<0xFF800000> : vector<16xf32>
    %210 = vector.multi_reduction <maximumf>, %209, %cst_80 [1] : vector<16x16xf32> to vector<16xf32>
    %211 = vector.shape_cast %210 : vector<16xf32> to vector<16x1xf32>
    %212 = vector.broadcast %211 : vector<16x1xf32> to vector<16x16xf32>
    %213 = arith.subf %209, %212 : vector<16x16xf32>
    %214 = math.exp %213 : vector<16x16xf32>
    %cst_81 = arith.constant dense<0.000000e+00> : vector<16xf32>
    %215 = vector.multi_reduction <add>, %214, %cst_81 [1] : vector<16x16xf32> to vector<16xf32>
    %216 = vector.shape_cast %215 : vector<16xf32> to vector<16x1xf32>
    %217 = tpu.reciprocal %216 {approx = true} : vector<16x1xf32> -> vector<16x1xf32>
    %218 = vector.broadcast %217 : vector<16x1xf32> to vector<16x16xf32>
    %219 = arith.mulf %214, %218 : vector<16x16xf32>
    %cst_82 = arith.constant dense<0.000000e+00> : vector<16x16xf32>
    %220 = tpu.matmul %219, %206, %cst_82 {dimension_numbers = #tpu.dot_dimension_numbers<[1], [0], [0], [1], [0, 0, 1, 1], [], []>} : vector<16x16xf32>, vector<16x16xf32>, vector<16x16xf32> -> vector<16x16xf32>
    %c80 = arith.constant 80 : index
    %c0_83 = arith.constant 0 : index
    %221 = vector.load %arg20[%c80, %c0_83] : memref<128x32xf32, #tpu.memory_space<vmem>>, vector<16x16xf32>
    tpu.vector_store %arg20[%c80, %c0_83], %220 {strides = array<i32>} : memref<128x32xf32, #tpu.memory_space<vmem>>, vector<16x16xf32>,
    %222 = vector.extract_strided_slice %11 {offsets = [80, 16], sizes = [16, 16], strides = [1, 1]} : vector<128x96xf32> to vector<16x16xf32>
    %223 = vector.extract_strided_slice %11 {offsets = [80, 48], sizes = [16, 16], strides = [1, 1]} : vector<128x96xf32> to vector<16x16xf32>
    %224 = vector.extract_strided_slice %11 {offsets = [80, 80], sizes = [16, 16], strides = [1, 1]} : vector<128x96xf32> to vector<16x16xf32>
    %cst_84 = arith.constant dense<0.000000e+00> : vector<16x16xf32>
    %225 = tpu.matmul %222, %223, %cst_84 {dimension_numbers = #tpu.dot_dimension_numbers<[1], [1], [0], [0], [0, 0, 1, 0], [], []>} : vector<16x16xf32>, vector<16x16xf32>, vector<16x16xf32> -> vector<16x16xf32>
    %226 = vector.broadcast %203 : vector<1x16xf32> to vector<16x16xf32>
    %227 = arith.addf %225, %226 : vector<16x16xf32>
    %cst_85 = arith.constant dense<0xFF800000> : vector<16xf32>
    %228 = vector.multi_reduction <maximumf>, %227, %cst_85 [1] : vector<16x16xf32> to vector<16xf32>
    %229 = vector.shape_cast %228 : vector<16xf32> to vector<16x1xf32>
    %230 = vector.broadcast %229 : vector<16x1xf32> to vector<16x16xf32>
    %231 = arith.subf %227, %230 : vector<16x16xf32>
    %232 = math.exp %231 : vector<16x16xf32>
    %cst_86 = arith.constant dense<0.000000e+00> : vector<16xf32>
    %233 = vector.multi_reduction <add>, %232, %cst_86 [1] : vector<16x16xf32> to vector<16xf32>
    %234 = vector.shape_cast %233 : vector<16xf32> to vector<16x1xf32>
    %235 = tpu.reciprocal %234 {approx = true} : vector<16x1xf32> -> vector<16x1xf32>
    %236 = vector.broadcast %235 : vector<16x1xf32> to vector<16x16xf32>
    %237 = arith.mulf %232, %236 : vector<16x16xf32>
    %cst_87 = arith.constant dense<0.000000e+00> : vector<16x16xf32>
    %238 = tpu.matmul %237, %224, %cst_87 {dimension_numbers = #tpu.dot_dimension_numbers<[1], [0], [0], [1], [0, 0, 1, 1], [], []>} : vector<16x16xf32>, vector<16x16xf32>, vector<16x16xf32> -> vector<16x16xf32>
    %c80_88 = arith.constant 80 : index
    %c16_89 = arith.constant 16 : index
    %239 = vector.load %arg20[%c80_88, %c16_89] : memref<128x32xf32, #tpu.memory_space<vmem>>, vector<16x16xf32>
    tpu.vector_store %arg20[%c80_88, %c16_89], %238 {strides = array<i32>} : memref<128x32xf32, #tpu.memory_space<vmem>>, vector<16x16xf32>,
    %c6 = arith.constant 6 : index
    %c0_90 = arith.constant 0 : index
    %c0_91 = arith.constant 0 : index
    %240 = vector.load %arg4[%c6, %c0_90, %c0_91] : memref<8x1x16xf32, #tpu.memory_space<vmem>>, vector<1x1x16xf32>
    %241 = vector.shape_cast %240 : vector<1x1x16xf32> to vector<1x16xf32>
    %242 = vector.extract_strided_slice %11 {offsets = [96, 0], sizes = [16, 16], strides = [1, 1]} : vector<128x96xf32> to vector<16x16xf32>
    %243 = vector.extract_strided_slice %11 {offsets = [96, 32], sizes = [16, 16], strides = [1, 1]} : vector<128x96xf32> to vector<16x16xf32>
    %244 = vector.extract_strided_slice %11 {offsets = [96, 64], sizes = [16, 16], strides = [1, 1]} : vector<128x96xf32> to vector<16x16xf32>
    %cst_92 = arith.constant dense<0.000000e+00> : vector<16x16xf32>
    %245 = tpu.matmul %242, %243, %cst_92 {dimension_numbers = #tpu.dot_dimension_numbers<[1], [1], [0], [0], [0, 0, 1, 0], [], []>} : vector<16x16xf32>, vector<16x16xf32>, vector<16x16xf32> -> vector<16x16xf32>
    %246 = vector.broadcast %241 : vector<1x16xf32> to vector<16x16xf32>
    %247 = arith.addf %245, %246 : vector<16x16xf32>
    %cst_93 = arith.constant dense<0xFF800000> : vector<16xf32>
    %248 = vector.multi_reduction <maximumf>, %247, %cst_93 [1] : vector<16x16xf32> to vector<16xf32>
    %249 = vector.shape_cast %248 : vector<16xf32> to vector<16x1xf32>
    %250 = vector.broadcast %249 : vector<16x1xf32> to vector<16x16xf32>
    %251 = arith.subf %247, %250 : vector<16x16xf32>
    %252 = math.exp %251 : vector<16x16xf32>
    %cst_94 = arith.constant dense<0.000000e+00> : vector<16xf32>
    %253 = vector.multi_reduction <add>, %252, %cst_94 [1] : vector<16x16xf32> to vector<16xf32>
    %254 = vector.shape_cast %253 : vector<16xf32> to vector<16x1xf32>
    %255 = tpu.reciprocal %254 {approx = true} : vector<16x1xf32> -> vector<16x1xf32>
    %256 = vector.broadcast %255 : vector<16x1xf32> to vector<16x16xf32>
    %257 = arith.mulf %252, %256 : vector<16x16xf32>
    %cst_95 = arith.constant dense<0.000000e+00> : vector<16x16xf32>
    %258 = tpu.matmul %257, %244, %cst_95 {dimension_numbers = #tpu.dot_dimension_numbers<[1], [0], [0], [1], [0, 0, 1, 1], [], []>} : vector<16x16xf32>, vector<16x16xf32>, vector<16x16xf32> -> vector<16x16xf32>
    %c96 = arith.constant 96 : index
    %c0_96 = arith.constant 0 : index
    %259 = vector.load %arg20[%c96, %c0_96] : memref<128x32xf32, #tpu.memory_space<vmem>>, vector<16x16xf32>
    tpu.vector_store %arg20[%c96, %c0_96], %258 {strides = array<i32>} : memref<128x32xf32, #tpu.memory_space<vmem>>, vector<16x16xf32>,
    %260 = vector.extract_strided_slice %11 {offsets = [96, 16], sizes = [16, 16], strides = [1, 1]} : vector<128x96xf32> to vector<16x16xf32>
    %261 = vector.extract_strided_slice %11 {offsets = [96, 48], sizes = [16, 16], strides = [1, 1]} : vector<128x96xf32> to vector<16x16xf32>
    %262 = vector.extract_strided_slice %11 {offsets = [96, 80], sizes = [16, 16], strides = [1, 1]} : vector<128x96xf32> to vector<16x16xf32>
    %cst_97 = arith.constant dense<0.000000e+00> : vector<16x16xf32>
    %263 = tpu.matmul %260, %261, %cst_97 {dimension_numbers = #tpu.dot_dimension_numbers<[1], [1], [0], [0], [0, 0, 1, 0], [], []>} : vector<16x16xf32>, vector<16x16xf32>, vector<16x16xf32> -> vector<16x16xf32>
    %264 = vector.broadcast %241 : vector<1x16xf32> to vector<16x16xf32>
    %265 = arith.addf %263, %264 : vector<16x16xf32>
    %cst_98 = arith.constant dense<0xFF800000> : vector<16xf32>
    %266 = vector.multi_reduction <maximumf>, %265, %cst_98 [1] : vector<16x16xf32> to vector<16xf32>
    %267 = vector.shape_cast %266 : vector<16xf32> to vector<16x1xf32>
    %268 = vector.broadcast %267 : vector<16x1xf32> to vector<16x16xf32>
    %269 = arith.subf %265, %268 : vector<16x16xf32>
    %270 = math.exp %269 : vector<16x16xf32>
    %cst_99 = arith.constant dense<0.000000e+00> : vector<16xf32>
    %271 = vector.multi_reduction <add>, %270, %cst_99 [1] : vector<16x16xf32> to vector<16xf32>
    %272 = vector.shape_cast %271 : vector<16xf32> to vector<16x1xf32>
    %273 = tpu.reciprocal %272 {approx = true} : vector<16x1xf32> -> vector<16x1xf32>
    %274 = vector.broadcast %273 : vector<16x1xf32> to vector<16x16xf32>
    %275 = arith.mulf %270, %274 : vector<16x16xf32>
    %cst_100 = arith.constant dense<0.000000e+00> : vector<16x16xf32>
    %276 = tpu.matmul %275, %262, %cst_100 {dimension_numbers = #tpu.dot_dimension_numbers<[1], [0], [0], [1], [0, 0, 1, 1], [], []>} : vector<16x16xf32>, vector<16x16xf32>, vector<16x16xf32> -> vector<16x16xf32>
    %c96_101 = arith.constant 96 : index
    %c16_102 = arith.constant 16 : index
    %277 = vector.load %arg20[%c96_101, %c16_102] : memref<128x32xf32, #tpu.memory_space<vmem>>, vector<16x16xf32>
    tpu.vector_store %arg20[%c96_101, %c16_102], %276 {strides = array<i32>} : memref<128x32xf32, #tpu.memory_space<vmem>>, vector<16x16xf32>,
    %c7 = arith.constant 7 : index
    %c0_103 = arith.constant 0 : index
    %c0_104 = arith.constant 0 : index
    %278 = vector.load %arg4[%c7, %c0_103, %c0_104] : memref<8x1x16xf32, #tpu.memory_space<vmem>>, vector<1x1x16xf32>
    %279 = vector.shape_cast %278 : vector<1x1x16xf32> to vector<1x16xf32>
    %280 = vector.extract_strided_slice %11 {offsets = [112, 0], sizes = [16, 16], strides = [1, 1]} : vector<128x96xf32> to vector<16x16xf32>
    %281 = vector.extract_strided_slice %11 {offsets = [112, 32], sizes = [16, 16], strides = [1, 1]} : vector<128x96xf32> to vector<16x16xf32>
    %282 = vector.extract_strided_slice %11 {offsets = [112, 64], sizes = [16, 16], strides = [1, 1]} : vector<128x96xf32> to vector<16x16xf32>
    %cst_105 = arith.constant dense<0.000000e+00> : vector<16x16xf32>
    %283 = tpu.matmul %280, %281, %cst_105 {dimension_numbers = #tpu.dot_dimension_numbers<[1], [1], [0], [0], [0, 0, 1, 0], [], []>} : vector<16x16xf32>, vector<16x16xf32>, vector<16x16xf32> -> vector<16x16xf32>
    %284 = vector.broadcast %279 : vector<1x16xf32> to vector<16x16xf32>
    %285 = arith.addf %283, %284 : vector<16x16xf32>
    %cst_106 = arith.constant dense<0xFF800000> : vector<16xf32>
    %286 = vector.multi_reduction <maximumf>, %285, %cst_106 [1] : vector<16x16xf32> to vector<16xf32>
    %287 = vector.shape_cast %286 : vector<16xf32> to vector<16x1xf32>
    %288 = vector.broadcast %287 : vector<16x1xf32> to vector<16x16xf32>
    %289 = arith.subf %285, %288 : vector<16x16xf32>
    %290 = math.exp %289 : vector<16x16xf32>
    %cst_107 = arith.constant dense<0.000000e+00> : vector<16xf32>
    %291 = vector.multi_reduction <add>, %290, %cst_107 [1] : vector<16x16xf32> to vector<16xf32>
    %292 = vector.shape_cast %291 : vector<16xf32> to vector<16x1xf32>
    %293 = tpu.reciprocal %292 {approx = true} : vector<16x1xf32> -> vector<16x1xf32>
    %294 = vector.broadcast %293 : vector<16x1xf32> to vector<16x16xf32>
    %295 = arith.mulf %290, %294 : vector<16x16xf32>
    %cst_108 = arith.constant dense<0.000000e+00> : vector<16x16xf32>
    %296 = tpu.matmul %295, %282, %cst_108 {dimension_numbers = #tpu.dot_dimension_numbers<[1], [0], [0], [1], [0, 0, 1, 1], [], []>} : vector<16x16xf32>, vector<16x16xf32>, vector<16x16xf32> -> vector<16x16xf32>
    %c112 = arith.constant 112 : index
    %c0_109 = arith.constant 0 : index
    %297 = vector.load %arg20[%c112, %c0_109] : memref<128x32xf32, #tpu.memory_space<vmem>>, vector<16x16xf32>
    tpu.vector_store %arg20[%c112, %c0_109], %296 {strides = array<i32>} : memref<128x32xf32, #tpu.memory_space<vmem>>, vector<16x16xf32>,
    %298 = vector.extract_strided_slice %11 {offsets = [112, 16], sizes = [16, 16], strides = [1, 1]} : vector<128x96xf32> to vector<16x16xf32>
    %299 = vector.extract_strided_slice %11 {offsets = [112, 48], sizes = [16, 16], strides = [1, 1]} : vector<128x96xf32> to vector<16x16xf32>
    %300 = vector.extract_strided_slice %11 {offsets = [112, 80], sizes = [16, 16], strides = [1, 1]} : vector<128x96xf32> to vector<16x16xf32>
    %cst_110 = arith.constant dense<0.000000e+00> : vector<16x16xf32>
    %301 = tpu.matmul %298, %299, %cst_110 {dimension_numbers = #tpu.dot_dimension_numbers<[1], [1], [0], [0], [0, 0, 1, 0], [], []>} : vector<16x16xf32>, vector<16x16xf32>, vector<16x16xf32> -> vector<16x16xf32>
    %302 = vector.broadcast %279 : vector<1x16xf32> to vector<16x16xf32>
    %303 = arith.addf %301, %302 : vector<16x16xf32>
    %cst_111 = arith.constant dense<0xFF800000> : vector<16xf32>
    %304 = vector.multi_reduction <maximumf>, %303, %cst_111 [1] : vector<16x16xf32> to vector<16xf32>
    %305 = vector.shape_cast %304 : vector<16xf32> to vector<16x1xf32>
    %306 = vector.broadcast %305 : vector<16x1xf32> to vector<16x16xf32>
    %307 = arith.subf %303, %306 : vector<16x16xf32>
    %308 = math.exp %307 : vector<16x16xf32>
    %cst_112 = arith.constant dense<0.000000e+00> : vector<16xf32>
    %309 = vector.multi_reduction <add>, %308, %cst_112 [1] : vector<16x16xf32> to vector<16xf32>
    %310 = vector.shape_cast %309 : vector<16xf32> to vector<16x1xf32>
    %311 = tpu.reciprocal %310 {approx = true} : vector<16x1xf32> -> vector<16x1xf32>
    %312 = vector.broadcast %311 : vector<16x1xf32> to vector<16x16xf32>
    %313 = arith.mulf %308, %312 : vector<16x16xf32>
    %cst_113 = arith.constant dense<0.000000e+00> : vector<16x16xf32>
    %314 = tpu.matmul %313, %300, %cst_113 {dimension_numbers = #tpu.dot_dimension_numbers<[1], [0], [0], [1], [0, 0, 1, 1], [], []>} : vector<16x16xf32>, vector<16x16xf32>, vector<16x16xf32> -> vector<16x16xf32>
    %c112_114 = arith.constant 112 : index
    %c16_115 = arith.constant 16 : index
    %315 = vector.load %arg20[%c112_114, %c16_115] : memref<128x32xf32, #tpu.memory_space<vmem>>, vector<16x16xf32>
    tpu.vector_store %arg20[%c112_114, %c16_115], %314 {strides = array<i32>} : memref<128x32xf32, #tpu.memory_space<vmem>>, vector<16x16xf32>,
    %c0_116 = arith.constant 0 : index
    %c0_117 = arith.constant 0 : index
    %316 = vector.load %arg20[%c0_116, %c0_117] : memref<128x32xf32, #tpu.memory_space<vmem>>, vector<128x32xf32>
    %c0_118 = arith.constant 0 : index
    %c0_119 = arith.constant 0 : index
    %c0_120 = arith.constant 0 : index
    %317 = vector.load %arg8[%c0_118, %c0_119, %c0_120] : memref<1x32x32xf32, #tpu.memory_space<vmem>>, vector<1x32x32xf32>
    %318 = vector.shape_cast %317 : vector<1x32x32xf32> to vector<32x32xf32>
    %cst_121 = arith.constant dense<0.000000e+00> : vector<128x32xf32>
    %319 = tpu.matmul %316, %318, %cst_121 {dimension_numbers = #tpu.dot_dimension_numbers<[1], [0], [0], [1], [0, 0, 1, 1], [], []>} : vector<128x32xf32>, vector<32x32xf32>, vector<128x32xf32> -> vector<128x32xf32>
    %320 = arith.addf %4, %319 : vector<128x32xf32>
    %c0_122 = arith.constant 0 : index
    %c0_123 = arith.constant 0 : index
    %c0_124 = arith.constant 0 : index
    %321 = vector.load %arg9[%c0_122, %c0_123, %c0_124] : memref<1x1x32xf32, #tpu.memory_space<vmem>>, vector<1x1x32xf32>
    %322 = vector.shape_cast %321 : vector<1x1x32xf32> to vector<1x32xf32>
    %323 = vector.broadcast %322 : vector<1x32xf32> to vector<128x32xf32>
    %324 = arith.addf %320, %323 : vector<128x32xf32>
    %c0_125 = arith.constant 0 : index
    %c0_126 = arith.constant 0 : index
    %c0_127 = arith.constant 0 : index
    %325 = vector.load %arg10[%c0_125, %c0_126, %c0_127] : memref<1x1x32xf32, #tpu.memory_space<vmem>>, vector<1x1x32xf32>
    %326 = vector.shape_cast %325 : vector<1x1x32xf32> to vector<1x32xf32>
    %c0_128 = arith.constant 0 : index
    %c0_129 = arith.constant 0 : index
    %c0_130 = arith.constant 0 : index
    %327 = vector.load %arg11[%c0_128, %c0_129, %c0_130] : memref<1x1x32xf32, #tpu.memory_space<vmem>>, vector<1x1x32xf32>
    %328 = vector.shape_cast %327 : vector<1x1x32xf32> to vector<1x32xf32>
    %cst_131 = arith.constant dense<0.000000e+00> : vector<128xf32>
    %329 = vector.multi_reduction <add>, %324, %cst_131 [1] : vector<128x32xf32> to vector<128xf32>
    %330 = vector.shape_cast %329 : vector<128xf32> to vector<128x1xf32>
    %cst_132 = arith.constant 3.200000e+01 : f32
    %331 = vector.broadcast %cst_132 : f32 to vector<128x1xf32>
    %332 = arith.divf %330, %331 : vector<128x1xf32>
    %333 = vector.broadcast %332 : vector<128x1xf32> to vector<128x32xf32>
    %334 = arith.subf %324, %333 : vector<128x32xf32>
    %335 = arith.mulf %334, %334 : vector<128x32xf32>
    %cst_133 = arith.constant dense<0.000000e+00> : vector<128xf32>
    %336 = vector.multi_reduction <add>, %335, %cst_133 [1] : vector<128x32xf32> to vector<128xf32>
    %337 = vector.shape_cast %336 : vector<128xf32> to vector<128x1xf32>
    %cst_134 = arith.constant 3.200000e+01 : f32
    %338 = vector.broadcast %cst_134 : f32 to vector<128x1xf32>
    %339 = arith.divf %337, %338 : vector<128x1xf32>
    %cst_135 = arith.constant 9.99999974E-6 : f32
    %340 = vector.broadcast %cst_135 : f32 to vector<128x1xf32>
    %341 = arith.addf %339, %340 : vector<128x1xf32>
    %342 = math.rsqrt %341 : vector<128x1xf32>
    %343 = vector.broadcast %342 : vector<128x1xf32> to vector<128x32xf32>
    %344 = arith.mulf %334, %343 : vector<128x32xf32>
    %345 = vector.broadcast %326 : vector<1x32xf32> to vector<128x32xf32>
    %346 = arith.mulf %344, %345 : vector<128x32xf32>
    %347 = vector.broadcast %328 : vector<1x32xf32> to vector<128x32xf32>
    %348 = arith.addf %346, %347 : vector<128x32xf32>
    %c0_136 = arith.constant 0 : index
    %c0_137 = arith.constant 0 : index
    %c0_138 = arith.constant 0 : index
    %349 = vector.load %arg14[%c0_136, %c0_137, %c0_138] : memref<1x32x64xf32, #tpu.memory_space<vmem>>, vector<1x32x64xf32>
    %350 = vector.shape_cast %349 : vector<1x32x64xf32> to vector<32x64xf32>
    %cst_139 = arith.constant dense<0.000000e+00> : vector<128x64xf32>
    %351 = tpu.matmul %348, %350, %cst_139 {dimension_numbers = #tpu.dot_dimension_numbers<[1], [0], [0], [1], [0, 0, 1, 1], [], []>} : vector<128x32xf32>, vector<32x64xf32>, vector<128x64xf32> -> vector<128x64xf32>
    %c0_140 = arith.constant 0 : index
    %c0_141 = arith.constant 0 : index
    %c0_142 = arith.constant 0 : index
    %352 = vector.load %arg15[%c0_140, %c0_141, %c0_142] : memref<1x1x64xf32, #tpu.memory_space<vmem>>, vector<1x1x64xf32>
    %353 = vector.shape_cast %352 : vector<1x1x64xf32> to vector<1x64xf32>
    %354 = vector.broadcast %353 : vector<1x64xf32> to vector<128x64xf32>
    %355 = arith.addf %351, %354 : vector<128x64xf32>
    %cst_143 = arith.constant 0.000000e+00 : f32
    %356 = vector.broadcast %cst_143 : f32 to vector<128x64xf32>
    %357 = arith.maximumf %355, %356 : vector<128x64xf32>
    %c0_144 = arith.constant 0 : index
    %c0_145 = arith.constant 0 : index
    %c0_146 = arith.constant 0 : index
    %358 = vector.load %arg16[%c0_144, %c0_145, %c0_146] : memref<1x64x32xf32, #tpu.memory_space<vmem>>, vector<1x64x32xf32>
    %359 = vector.shape_cast %358 : vector<1x64x32xf32> to vector<64x32xf32>
    %cst_147 = arith.constant dense<0.000000e+00> : vector<128x32xf32>
    %360 = tpu.matmul %357, %359, %cst_147 {dimension_numbers = #tpu.dot_dimension_numbers<[1], [0], [0], [1], [0, 0, 1, 1], [], []>} : vector<128x64xf32>, vector<64x32xf32>, vector<128x32xf32> -> vector<128x32xf32>
    %361 = arith.addf %348, %360 : vector<128x32xf32>
    %c0_148 = arith.constant 0 : index
    %c0_149 = arith.constant 0 : index
    %c0_150 = arith.constant 0 : index
    %362 = vector.load %arg17[%c0_148, %c0_149, %c0_150] : memref<1x1x32xf32, #tpu.memory_space<vmem>>, vector<1x1x32xf32>
    %363 = vector.shape_cast %362 : vector<1x1x32xf32> to vector<1x32xf32>
    %364 = vector.broadcast %363 : vector<1x32xf32> to vector<128x32xf32>
    %365 = arith.addf %361, %364 : vector<128x32xf32>
    %c0_151 = arith.constant 0 : index
    %c0_152 = arith.constant 0 : index
    %c0_153 = arith.constant 0 : index
    %366 = vector.load %arg12[%c0_151, %c0_152, %c0_153] : memref<1x1x32xf32, #tpu.memory_space<vmem>>, vector<1x1x32xf32>
    %367 = vector.shape_cast %366 : vector<1x1x32xf32> to vector<1x32xf32>
    %c0_154 = arith.constant 0 : index
    %c0_155 = arith.constant 0 : index
    %c0_156 = arith.constant 0 : index
    %368 = vector.load %arg13[%c0_154, %c0_155, %c0_156] : memref<1x1x32xf32, #tpu.memory_space<vmem>>, vector<1x1x32xf32>
    %369 = vector.shape_cast %368 : vector<1x1x32xf32> to vector<1x32xf32>
    %cst_157 = arith.constant dense<0.000000e+00> : vector<128xf32>
    %370 = vector.multi_reduction <add>, %365, %cst_157 [1] : vector<128x32xf32> to vector<128xf32>
    %371 = vector.shape_cast %370 : vector<128xf32> to vector<128x1xf32>
    %cst_158 = arith.constant 3.200000e+01 : f32
    %372 = vector.broadcast %cst_158 : f32 to vector<128x1xf32>
    %373 = arith.divf %371, %372 : vector<128x1xf32>
    %374 = vector.broadcast %373 : vector<128x1xf32> to vector<128x32xf32>
    %375 = arith.subf %365, %374 : vector<128x32xf32>
    %376 = arith.mulf %375, %375 : vector<128x32xf32>
    %cst_159 = arith.constant dense<0.000000e+00> : vector<128xf32>
    %377 = vector.multi_reduction <add>, %376, %cst_159 [1] : vector<128x32xf32> to vector<128xf32>
    %378 = vector.shape_cast %377 : vector<128xf32> to vector<128x1xf32>
    %cst_160 = arith.constant 3.200000e+01 : f32
    %379 = vector.broadcast %cst_160 : f32 to vector<128x1xf32>
    %380 = arith.divf %378, %379 : vector<128x1xf32>
    %cst_161 = arith.constant 9.99999974E-6 : f32
    %381 = vector.broadcast %cst_161 : f32 to vector<128x1xf32>
    %382 = arith.addf %380, %381 : vector<128x1xf32>
    %383 = math.rsqrt %382 : vector<128x1xf32>
    %384 = vector.broadcast %383 : vector<128x1xf32> to vector<128x32xf32>
    %385 = arith.mulf %375, %384 : vector<128x32xf32>
    %386 = vector.broadcast %367 : vector<1x32xf32> to vector<128x32xf32>
    %387 = arith.mulf %385, %386 : vector<128x32xf32>
    %388 = vector.broadcast %369 : vector<1x32xf32> to vector<128x32xf32>
    %389 = arith.addf %387, %388 : vector<128x32xf32>
    %390 = vector.broadcast %0 : vector<128x1xf32> to vector<128x32xf32>
    %391 = arith.mulf %389, %390 : vector<128x32xf32>
    %c0_162 = arith.constant 0 : index
    %c0_163 = arith.constant 0 : index
    %392 = vector.load %arg19[%c0_162, %c0_163] : memref<128x32xf32, #tpu.memory_space<vmem>>, vector<128x32xf32>
    tpu.vector_store %arg19[%c0_162, %c0_163], %391 {strides = array<i32>} : memref<128x32xf32, #tpu.memory_space<vmem>>, vector<128x32xf32>,
    %c1_i32 = arith.constant 1 : i32
    %393 = arith.cmpi eq, %arg1, %c1_i32 : i32
    %394 = arith.extui %393 : i1 to i32
    %c0_i32_164 = arith.constant 0 : i32
    %395 = arith.cmpi ne, %394, %c0_i32_164 : i32
    scf.if %395 {
      %396 = vector.shape_cast %391 : vector<128x32xf32> to vector<8x16x32xf32>
      %397 = vector.shape_cast %0 : vector<128x1xf32> to vector<8x16x1xf32>
      %cst_165 = arith.constant dense<0.000000e+00> : vector<8x1xf32>
      %398 = vector.multi_reduction <add>, %397, %cst_165 [1] : vector<8x16x1xf32> to vector<8x1xf32>
      %cst_166 = arith.constant 9.99999968E-21 : f32
      %399 = vector.broadcast %cst_166 : f32 to vector<8x1xf32>
      %400 = arith.maximumf %398, %399 : vector<8x1xf32>
      %cst_167 = arith.constant dense<0.000000e+00> : vector<8x32xf32>
      %401 = vector.multi_reduction <add>, %396, %cst_167 [1] : vector<8x16x32xf32> to vector<8x32xf32>
      %402 = vector.broadcast %400 : vector<8x1xf32> to vector<8x32xf32>
      %403 = arith.divf %401, %402 : vector<8x32xf32>
      %c0_168 = arith.constant 0 : index
      %c0_169 = arith.constant 0 : index
      %404 = vector.load %arg18[%c0_168, %c0_169] : memref<8x32xf32, #tpu.memory_space<vmem>>, vector<8x32xf32>
      tpu.vector_store %arg18[%c0_168, %c0_169], %403 {strides = array<i32>} : memref<8x32xf32, #tpu.memory_space<vmem>>, vector<8x32xf32>,
    } else {
    }
    return
  }
  func.func @transform_0(%arg0: i32, %arg1: i32) -> (i32, i32, i32) {
    %c0_i32 = arith.constant 0 : i32
    %c0_i32_0 = arith.constant 0 : i32
    %c0_i32_1 = arith.constant 0 : i32
    return %arg0, %c0_i32, %c0_i32_0 : i32, i32, i32
  }
  func.func @transform_1(%arg0: i32, %arg1: i32) -> (i32, i32) {
    %c0_i32 = arith.constant 0 : i32
    %c0_i32_0 = arith.constant 0 : i32
    return %arg0, %c0_i32 : i32, i32
  }
  func.func @transform_2(%arg0: i32, %arg1: i32) -> (i32, i32, i32) {
    %c0_i32 = arith.constant 0 : i32
    %c0_i32_0 = arith.constant 0 : i32
    %c0_i32_1 = arith.constant 0 : i32
    return %arg0, %c0_i32, %c0_i32_0 : i32, i32, i32
  }
  func.func @transform_3(%arg0: i32, %arg1: i32) -> (i32, i32) {
    %c0_i32 = arith.constant 0 : i32
    %c0_i32_0 = arith.constant 0 : i32
    %c0_i32_1 = arith.constant 0 : i32
    return %c0_i32, %c0_i32_0 : i32, i32
  }
  func.func @transform_4(%arg0: i32, %arg1: i32) -> (i32, i32, i32) {
    %c0_i32 = arith.constant 0 : i32
    %c0_i32_0 = arith.constant 0 : i32
    %c0_i32_1 = arith.constant 0 : i32
    return %arg1, %c0_i32, %c0_i32_0 : i32, i32, i32
  }
  func.func @transform_5(%arg0: i32, %arg1: i32) -> (i32, i32, i32) {
    %c0_i32 = arith.constant 0 : i32
    %c0_i32_0 = arith.constant 0 : i32
    %c0_i32_1 = arith.constant 0 : i32
    return %arg1, %c0_i32, %c0_i32_0 : i32, i32, i32
  }
  func.func @transform_6(%arg0: i32, %arg1: i32) -> (i32, i32, i32) {
    %c0_i32 = arith.constant 0 : i32
    %c0_i32_0 = arith.constant 0 : i32
    %c0_i32_1 = arith.constant 0 : i32
    return %arg1, %c0_i32, %c0_i32_0 : i32, i32, i32
  }
  func.func @transform_7(%arg0: i32, %arg1: i32) -> (i32, i32, i32) {
    %c0_i32 = arith.constant 0 : i32
    %c0_i32_0 = arith.constant 0 : i32
    %c0_i32_1 = arith.constant 0 : i32
    return %arg1, %c0_i32, %c0_i32_0 : i32, i32, i32
  }
  func.func @transform_8(%arg0: i32, %arg1: i32) -> (i32, i32, i32) {
    %c0_i32 = arith.constant 0 : i32
    %c0_i32_0 = arith.constant 0 : i32
    %c0_i32_1 = arith.constant 0 : i32
    return %arg1, %c0_i32, %c0_i32_0 : i32, i32, i32
  }
  func.func @transform_9(%arg0: i32, %arg1: i32) -> (i32, i32, i32) {
    %c0_i32 = arith.constant 0 : i32
    %c0_i32_0 = arith.constant 0 : i32
    %c0_i32_1 = arith.constant 0 : i32
    return %arg1, %c0_i32, %c0_i32_0 : i32, i32, i32
  }
  func.func @transform_10(%arg0: i32, %arg1: i32) -> (i32, i32, i32) {
    %c0_i32 = arith.constant 0 : i32
    %c0_i32_0 = arith.constant 0 : i32
    %c0_i32_1 = arith.constant 0 : i32
    return %arg1, %c0_i32, %c0_i32_0 : i32, i32, i32
  }
  func.func @transform_11(%arg0: i32, %arg1: i32) -> (i32, i32, i32) {
    %c0_i32 = arith.constant 0 : i32
    %c0_i32_0 = arith.constant 0 : i32
    %c0_i32_1 = arith.constant 0 : i32
    return %arg1, %c0_i32, %c0_i32_0 : i32, i32, i32
  }
  func.func @transform_12(%arg0: i32, %arg1: i32) -> (i32, i32, i32) {
    %c0_i32 = arith.constant 0 : i32
    %c0_i32_0 = arith.constant 0 : i32
    %c0_i32_1 = arith.constant 0 : i32
    return %arg1, %c0_i32, %c0_i32_0 : i32, i32, i32
  }
  func.func @transform_13(%arg0: i32, %arg1: i32) -> (i32, i32, i32) {
    %c0_i32 = arith.constant 0 : i32
    %c0_i32_0 = arith.constant 0 : i32
    %c0_i32_1 = arith.constant 0 : i32
    return %arg1, %c0_i32, %c0_i32_0 : i32, i32, i32
  }
  func.func @transform_14(%arg0: i32, %arg1: i32) -> (i32, i32, i32) {
    %c0_i32 = arith.constant 0 : i32
    %c0_i32_0 = arith.constant 0 : i32
    %c0_i32_1 = arith.constant 0 : i32
    return %arg1, %c0_i32, %c0_i32_0 : i32, i32, i32
  }
  func.func @transform_15(%arg0: i32, %arg1: i32) -> (i32, i32, i32) {
    %c0_i32 = arith.constant 0 : i32
    %c0_i32_0 = arith.constant 0 : i32
    %c0_i32_1 = arith.constant 0 : i32
    return %arg1, %c0_i32, %c0_i32_0 : i32, i32, i32
  }
  func.func @transform_16(%arg0: i32, %arg1: i32) -> (i32, i32) {
    %c0_i32 = arith.constant 0 : i32
    %c0_i32_0 = arith.constant 0 : i32
    return %arg0, %c0_i32 : i32, i32
  }
}

</mosaic_0001>

<bundles_post_ra>
// kernel: tpu_custom_call.1
= control target key start
LH: loop header
LB: loop body
LE: loop exit
PB: predicated region body
PF: predicated region fallthrough
CT: control target
= control target key end

     0   :  { %s9808_s0 = inlined_call_operand.vmem [shape: f32[16,16,32], index: 0, kind: input, shape index: {}]   ;;  %s9809_s1 = inlined_call_operand.vmem [shape: f32[256,1], index: 1, kind: input, shape index: {}]   ;;  %s9810_s2 = inlined_call_operand.hbm [shape: f32[16,1,16], index: 2, kind: input, shape index: {}]   ;;  %s9811_s3 = inlined_call_operand.hbm [shape: f32[16,32], index: 3, kind: input, shape index: {}]   ;;  %s9812_s4 = inlined_call_operand.vmem [shape: f32[2,32,96], index: 4, kind: input, shape index: {}]   ;;  %s9813_s5 = inlined_call_operand.vmem [shape: f32[2,1,96], index: 5, kind: input, shape index: {}]   ;;  %s9814_s6 = inlined_call_operand.vmem [shape: f32[2,32,32], index: 6, kind: input, shape index: {}]   ;;  %s9815_s7 = inlined_call_operand.vmem [shape: f32[2,1,32], index: 7, kind: input, shape index: {}]   ;;  %s9816_s8 = inlined_call_operand.vmem [shape: f32[2,1,32], index: 8, kind: input, shape index: {}]   ;;  %s9817_s9 = inlined_call_operand.vmem [shape: f32[2,1,32], index: 9, kind: input, shape index: {}]   ;;  %s9818_s10 = inlined_call_operand.vmem [shape: f32[2,1,32], index: 10, kind: input, shape index: {}]   ;;  %s9819_s11 = inlined_call_operand.vmem [shape: f32[2,1,32], index: 11, kind: input, shape index: {}]   ;;  %s9820_s12 = inlined_call_operand.vmem [shape: f32[2,32,64], index: 12, kind: input, shape index: {}]   ;;  %s9821_s13 = inlined_call_operand.vmem [shape: f32[2,1,64], index: 13, kind: input, shape index: {}]   ;;  %s9822_s14 = inlined_call_operand.vmem [shape: f32[2,64,32], index: 14, kind: input, shape index: {}]   ;;  %s9823_s15 = inlined_call_operand.vmem [shape: f32[2,1,32], index: 15, kind: input, shape index: {}]   ;;  %s9824_s16 = inlined_call_operand.hbm [shape: f32[16,32], index: 16, kind: output, shape index: {}]  }
   0x1   :  { %9843 = sst [smem:[#allocation25_spill]] %s9808_s0 }
   0x2   :  { %9844 = sst [smem:[#allocation26_spill]] %s9809_s1 }
   0x3   :  { %9845 = sst [smem:[#allocation27_spill]] %s9810_s2 }
   0x4   :  { %9846 = sst [smem:[#allocation28_spill]] %s9811_s3 }
   0x5   :  { %9847 = sst [smem:[#allocation29_spill]] %s9812_s4 }
   0x6   :  { %9848 = sst [smem:[#allocation30_spill]] %s9813_s5 }
   0x7   :  { %9849 = sst [smem:[#allocation31_spill]] %s9814_s6 }
   0x8   :  { %9850 = sst [smem:[#allocation32_spill]] %s9816_s8 }
   0x9   :  { %9851 = sst [smem:[#allocation33_spill]] %s9817_s9 }
   0xa   :  { %9852 = sst [smem:[#allocation34_spill]] %s9819_s11 }
   0xb   :  { %9853 = sst [smem:[#allocation35_spill]] %s9820_s12 }
   0xc   :  { %9854 = sst [smem:[#allocation36_spill]] %s9821_s13 }
   0xd   :  { %9855 = sst [smem:[#allocation37_spill]] %s9822_s14 }
   0xe   :  { %9856 = sst [smem:[#allocation38_spill]] %s9823_s15 }
   0xf   :  { %9857 = sst [smem:[#allocation39_spill]] %s9824_s16 }
  0x10   :  { %21 = vsyncpa [#allocation5], 0 }
  0x11   :  { %23 = vsyncpa [#allocation5 + $0x1], 0 }
  0x12   :  { %24 = vsyncpa [#allocation8], 0 }
  0x13   :  { %25 = vsyncpa [#allocation6], 0 }
  0x14   :  { %27 = vsyncpa [#allocation6 + $0x1], 0  ;;  %s8112_s21 = smov 0   ;;  %s8114_s22 = smov 0  }
  0x15   :  { %s8116_s23 = smov 0   ;;  %s8118_s24 = smov 0  }
  0x16   :  { %s8120_s25 = smov 0   ;;  %s8122_s26 = smov 0  }
  0x17   :  { %s8124_s27 = smov 0   ;;  %s8126_s28 = smov 0  }
  0x18 LB: > { %9858 = sst [smem:[#allocation13_spill]] %s7981_s21  ;;  %s6360_s29 = sadd.s32 4294967295, %s8009_s28   ;;  %s8009_s28 = sphi %s8126_s28, %s33_s28   ;;  %s8005_s27 = sphi %s8124_s27, %s9921_s27   ;;  %s8001_s26 = sphi %s8122_s26, %s9920_s26   ;;  %s7997_s25 = sphi %s8120_s25, %s9919_s25   ;;  %s7993_s24 = sphi %s8118_s24, %s9918_s24   ;;  %s7989_s23 = sphi %s8116_s23, %s9917_s23   ;;  %s7985_s22 = sphi %s8114_s22, %s9916_s22   ;;  %s7981_s21 = sphi %s8112_s21, %s9915_s21  }
  0x19   : > { %9859 = sst [smem:[#allocation14_spill]] %s7985_s22  ;;  %s6361_s30 = sadd.s32 4294967294, %s8009_s28  }
  0x1a   : > { %9860 = sst [smem:[#allocation15_spill]] %s7989_s23  ;;  %p117_p0 = scmp.ne.s32.totalorder %s7985_s22, %s7981_s21 }
  0x1b   : > { %9861 = sst [smem:[#allocation16_spill]] %s7997_s25  ;;  %p8156_p1 = scmp.eq.s32.totalorder %s6360_s29, 0 }
  0x1c   : > { %9862 = sst [smem:[#allocation17_spill]] %s8001_s26  ;;  %p8160_p2 = scmp.eq.s32.totalorder %s6360_s29, 3 }
  0x1d   : > { %9863 = sst [smem:[#allocation18_spill]] %s8005_s27  ;;  %p480_p3 = scmp.eq.s32.totalorder %s6361_s30, 3 }
  0x1e   : > { %9864 = sst [smem:[#allocation19_spill]] %s8009_s28  ;;  %p8166_p4 = por %p8156_p1, %p117_p0 }
  0x1f   : > { %s9865_s0 = scalar_select %p8156_p1, 1, 0 }
  0x20   : > { %s9866_s17 = scalar_select %p8160_p2, 1, 0 }
  0x21   : > { %s9867_s18 = scalar_select %p8166_p4, 1, 0 }
  0x22   : > { %p6362_p5 = scmp.ge.s32.totalorder %s8009_s28, 1  ;;  %p8171_p6 = por %p480_p3, %p117_p0 }
  0x23   : > { %p487_p7 = scmp.lt.s32.totalorder %s8009_s28, 5  ;;  %s8011_s29 = smov [#allocation7]  }
  0x24   : > { %s9868_s19 = scalar_select %p8171_p6, 1, 0 }
  0x25   : > { %p8176_p8 = pnand %p6362_p5, %p487_p7  ;;  %s499_s21 = sshll.u32 %s8011_s29, 4  ;;  %s500_s21 = int_to_ptr.vmem [resolvable:$true] %s499_s21 }
  0x26   : > { %9869 = sst [smem:[#allocation20_spill]] %s9868_s19  ;;  %s9872_s3 = sld [smem:[#allocation28_spill]] }
  0x27   : > { %s9870_s20 = scalar_select %p8176_p8, 1, 0 }
  0x28   : > { %p7364_p9 = pneg %p8176_p8 }
  0x2a   : > { %p8184_p10 = pnand %p7364_p9, %p8156_p1 }
  0x2c   : > { %s7849_s19 = scalar_lea.hbm %s9872_s3, 256  ;;  %p7851_p12 = pneg %p8184_p10 }
  0x2d   : > { %p7850_p11 = scmp.ne.s32.totalorder %s9872_s3, %s7849_s19  ;;  %p7856_p3 = scmp.lt.u32.totalorder %s7849_s19, %s9872_s3 }
  0x2f   : > { %p7852_p13 = pnand %p7851_p12, %p7850_p11 }
  0x31   : > { %p7853_p0 = pneg %p7852_p13 }
  0x33   : > { %p7858_p5 = pnand %p7856_p3, %p7853_p0 }
  0x35   : > { %7861 = shalt.err (!%p7858_p5)
}
  0x36   : > { %s7862_s11 = scalar_lea.vmem %s500_s21, 256  ;;  %p7870_p1 = scmp.lt.s32.totalorder %s500_s21, %s500_s21 }
  0x37   : > { %p7863_p7 = scmp.ne.s32.totalorder %s500_s21, %s7862_s11  ;;  %p7871_p4 = scmp.lt.s32.totalorder %s7862_s11, %s7862_s11 }
  0x39   : > { %p7865_p9 = pnand %p7863_p7, %p7851_p12  ;;  %p7872_p8 = por %p7871_p4, %p7870_p1 }
  0x3b   : > { %p7866_p6 = pneg %p7865_p9 }
  0x3d   : > { %p7873_p2 = pnand %p7872_p8, %p7866_p6 }
  0x3f   : > { %7876 = shalt.err (!%p7873_p2)
}
  0x40   : > { %s8012_s13 = smov 128   ;;  %s8013_s12 = smov 8  }
  0x41   : > { %7367 = dma.hbm_to_vmem [thread:$0]  (!%p8184_p10), %s9872_s3, 256, %s500_s21, [#allocation8], %s8012_s13, %s8012_s13, %s8013_s12  }
  0x42   : > { %s42_s11 = sadd.s32 1, %s8001_s26  ;;  %s45_s16 = sadd.s32 1, %s8005_s27 }
  0x43   : > { %p43_p1 = scmp.ge.s32.totalorder %s42_s11, 2  ;;  %s104_s19 = sadd.s32 1, %s7989_s23 }
  0x44   : > { %p111_p2 = scmp.ne.s32.totalorder %s7989_s23, %s7985_s22  ;;  %p112_p4 = scmp.eq.s32.totalorder %s8009_s28, 0 }
  0x45   : > { %s9923_s11 = smov (%p43_p1, %s42_s11), 0  ;;  %s9925_s16 = smov (!%p43_p1, %s45_s16), %s8005_s27 }
  0x46   : > { %9873 = sst [smem:[#allocation21_spill]] %s9923_s11  ;;  %p9874_p6 = scmp.ne.s32.totalorder %s9866_s17, 0 }
  0x47   : > { %p47_p11 = scmp.ge.s32.totalorder %s9925_s16, 2  ;;  %p7377_p10 = scmp.lt.s32.totalorder %s8009_s28, 4 }
  0x48   : > { %p8215_p8 = por %p9874_p6, %p111_p2  ;;  %p113_p12 = por %p112_p4, %p111_p2 }
  0x49   : > { %s532_s21 = sand.u32 1, %s7989_s23   ;;  %s9927_s16 = smov (%p47_p11, %s9925_s16), 0 }
  0x4a   : > { %s9875_s30 = scalar_select %p8215_p8, 1, 0 }
  0x4b   : > { %9877 = sst [smem:[#allocation23_spill]] %s9927_s16  ;;  %s6365_s29 = sshll.u32 %s532_s21, 3 }
  0x4c   : > { %9876 = sst [smem:[#allocation22_spill]] %s9875_s30  ;;  %s101_s13 = ssub.s32 %s8005_s27, %s9927_s16 }
  0x4d   : > { %p102_p13 = scmp.eq.s32.totalorder %s101_s13, 0  ;;  %s6574_s12 = sshll.u32 %s8005_s27, 7 }
  0x4e   : > { %s9878_s2 = sld [smem:[#allocation27_spill]]  ;;  %s536_s3 = scalar_lea.vmem [#allocation4], %s6365_s29 }
  0x4f   : > { %s543_s11 = sshll.u32 %s536_s3, 4  ;;  %p8238_p0 = pnand %p7377_p10, %p113_p12  ;;  %s8234_s11 = int_to_ptr.vmem [resolvable:$true] %s543_s11 }
  0x50   : > { %s8232_s26 = scalar_select %p102_p13, %s7989_s23, %s104_s19  }
  0x51   : > { %s8242_s13 = scalar_lea.sflag [#allocation5], %s532_s21  ;;  %p7879_p5 = pneg %p8238_p0 }
  0x52   : > { %9879 = sst [smem:[#allocation24_spill]] %s8232_s26 }
  0x54   : > { %s8229_s17 = scalar_lea.hbm %s9878_s2, %s6574_s12  ;;  %s7882_s29 = scalar_lea.hbm %s9878_s2, 256 }
  0x55   : > { %s7877_s12 = scalar_lea.hbm %s8229_s17, 128  ;;  %p7883_p1 = scmp.lt.u32.totalorder %s8229_s17, %s9878_s2 }
  0x56   : > { %p7878_p3 = scmp.ne.s32.totalorder %s8229_s17, %s7877_s12  ;;  %p7884_p2 = scmp.lt.u32.totalorder %s7882_s29, %s7877_s12 }
  0x57   : > { %p7886_p6 = scmp.lt.u32.totalorder %s7877_s12, %s8229_s17 }
  0x58   : > { %p7880_p7 = pnand %p7879_p5, %p7878_p3  ;;  %p7885_p4 = por %p7884_p2, %p7883_p1 }
  0x5a   : > { %p7881_p9 = pneg %p7880_p7  ;;  %p7887_p11 = por %p7886_p6, %p7885_p4 }
  0x5c   : > { %p7888_p10 = pnand %p7887_p11, %p7881_p9 }
  0x5e   : > { %7891 = shalt.err (!%p7888_p10)
}
  0x5f   : > { %s7892_s21 = scalar_lea.vmem %s8234_s11, 128  ;;  %s8014_s3 = smov [#allocation4]  }
  0x60   : > { %p7893_p12 = scmp.ne.s32.totalorder %s8234_s11, %s7892_s21  ;;  %s7897_s19 = sshll.u32 %s8014_s3, 4  ;;  %s7898_s19 = int_to_ptr.vmem [resolvable:$false] %s7897_s19 }
  0x61   : > { %s7899_s14 = scalar_lea.vmem %s7898_s19, 256  ;;  %p7900_p7 = scmp.lt.s32.totalorder %s8234_s11, %s7898_s19 }
  0x62   : > { %p7895_p13 = pnand %p7893_p12, %p7879_p5  ;;  %p7901_p1 = scmp.lt.s32.totalorder %s7899_s14, %s7892_s21 }
  0x64   : > { %p7896_p3 = pneg %p7895_p13  ;;  %p7902_p2 = por %p7901_p1, %p7900_p7 }
  0x66   : > { %p7903_p4 = pnand %p7902_p2, %p7896_p3 }
  0x68   : > { %7906 = shalt.err (!%p7903_p4)
}
  0x69   : > { %s8015_s12 = smov 16   ;;  %s8016_s29 = smov 1  }
  0x6a   : > { %7371 = dma.hbm_to_vmem [thread:$0]  (!%p8238_p0), %s8229_s17, 128, %s8234_s11, %s8242_s13, %s8015_s12, %s8015_s12, %s8016_s29  }
  0x6b   : > { %p9881_p5 = scmp.ne.s32.totalorder %s9870_s20, 0 }
  0x6c   : > { %s8273_s15 = sand.u32 (!%p9881_p5), 1, %s7985_s22   ;;  %p9882_p9 = scmp.ne.s32.totalorder (!%p9881_p5), %s9867_s18, 0 }
  0x6d   : > { %635 = sbr.rel (%p9881_p5) target bundleno = 10144 (0x27a0), region = 84  ;;  %s9834_s21 = sshll.u32 (!%p9881_p5), %s8273_s15, 3 }
  0x6e   : > { %s638_s3 = scalar_lea.sflag (!%p9881_p5), [#allocation5], %s8273_s15  ;;  %s8279_s19 = scalar_lea.vmem (!%p9881_p5), [#allocation4], %s9834_s21 }
  0x74   : > { %7968 = dma.done.wait (%p9882_p9), %s638_s3, 128  }
  0x75   : > { %7970 = vsyncadd (%p9882_p9), %s638_s3, 4294967168  ;;  %p9883_p0 = scmp.ne.s32.totalorder %s9865_s0, 0 }
  0x77   : > { %7972 = dma.done.wait (%p9883_p0), [#allocation8], 256  }
  0x78   : > { %7974 = vsyncadd (%p9883_p0), [#allocation8], 4294967040  ;;  %s6375_s20 = sshll.u32 %s7997_s25, 4  ;;  %s6372_s11 = sshll.u32 %s7997_s25, 3 }
  0x79   : > { %p757_p6 = scmp.lt.s32.totalorder %s6375_s20, 31  ;;  %p750_p11 = scmp.lt.s32.totalorder %s6372_s11, 15 }
  0x7a   : > { %p763_p10 = scmp.lt.s32.totalorder %s7993_s24, 1  ;;  %s9884_s1 = sld [smem:[#allocation26_spill]] }
  0x7b   : > { %s9929_s20 = smov (!%p757_p6, %s6375_s20), 31  ;;  %s9931_s11 = smov (!%p750_p11, %s6372_s11), 15 }
  0x7c   : > { %s6376_s16 = sshll.u32 %s9929_s20, 3  ;;  %s6575_s14 = sshll.u32 %s9931_s11, 4 }
  0x7d   : > { %s9885_s29 = sld [smem:[#allocation25_spill]]  ;;  %s9886_s5 = sld [smem:[#allocation30_spill]] }
  0x7e   : > { %s8313_s20 = scalar_select %p763_p10, %s7993_s24, 1 }
  0x7f   : > { %s9887_s4 = sld [smem:[#allocation29_spill]]  ;;  %s9888_s6 = sld [smem:[#allocation31_spill]] }
  0x80   : > { %s760_s13 = scalar_lea.vmem %s9884_s1, %s6376_s16  ;;  %s6576_s11 = sshll.u32 %s8313_s20, 5 }
  0x81   : > { %v8295_v0 = vld [vmem:[%s760_s13] sm:$0xff]  ;;  %v8297_v1 = vld [vmem:[%s760_s13 + $0x8] sm:$0xff]  ;;  %v8299_v2 = vld [vmem:[%s760_s13 + $0x10] sm:$0xff]  ;;  %s9892_s16 = sld [smem:[#allocation35_spill]]  ;;  %s9893_s27 = sld [smem:[#allocation36_spill]] }
  0x82   : > { %v8306_v3 = vld [vmem:[%s760_s13 + $0x18] sm:$0xff]  ;;  %v8308_v4 = vld [vmem:[%s760_s13 + $0x20] sm:$0xff]  ;;  %v8310_v5 = vld [vmem:[%s760_s13 + $0x28] sm:$0xff]  ;;  %s6579_s8 = sshll.u32 %s8313_s20, 6  ;;  %s9895_s21 = sld [smem:[#allocation38_spill]] }
  0x83   : > { %s8304_s3 = scalar_lea.vmem %s9885_s29, %s6575_s14  ;;  %v8315_v6 = vld [vmem:[%s760_s13 + $0x30] sm:$0xff]  ;;  %v8317_v7 = vld [vmem:[%s760_s13 + $0x38] sm:$0xff]  ;;  %v8319_v8 = vld [vmem:[%s760_s13 + $0x40] sm:$0xff]  ;;  %s8332_s17 = scalar_lea.vmem %s9886_s5, %s8313_s20 }
  0x84   : > { %v8321_v9 = vld [vmem:[%s760_s13 + $0x48] sm:$0xff]  ;;  %v8323_v10 = vld [vmem:[%s760_s13 + $0x50] sm:$0xff]  ;;  %v8325_v11 = vld [vmem:[%s760_s13 + $0x58] sm:$0xff]  ;;  %s9894_s14 = sld [smem:[#allocation37_spill]]  ;;  %s9896_s29 = sshll.u32 %s8273_s15, 3 }
  0x85   : > { %v8334_v12 = vld [vmem:[%s760_s13 + $0x60] sm:$0xff]  ;;  %v8336_v13 = vld [vmem:[%s760_s13 + $0x68] sm:$0xff]  ;;  %v8338_v14 = vld [vmem:[%s760_s13 + $0x70] sm:$0xff]  ;;  %s8343_s12 = scalar_lea.vmem %s9887_s4, %s6576_s11  ;;  %s8348_s1 = scalar_lea.vmem %s9888_s6, %s6576_s11 }
  0x86   : > { %v8350_v15 = vld [vmem:[%s760_s13 + $0x78] sm:$0xff]  ;;  %s9891_s13 = sld [smem:[#allocation34_spill]]  ;;  %p6385_p12 = scmp.ne.s32.totalorder %s7993_s24, 0 }
  0x87   : > { %s8375_s18 = scalar_lea.vmem %s9892_s16, %s6576_s11  ;;  %s798_s26 = scalar_lea.vmem %s9893_s27, %s8313_s20  ;;  %v8017_v16 = vmov (!%p6385_p12), 0   ;;  %v829_v17 = vld [vmem:[%s8304_s3 + $0x10] sm:$0xff] (!%p6385_p12)  ;;  %v827_v19 = vld [vmem:[%s8304_s3] sm:$0xff] (!%p6385_p12)  ;;  %v830_v22 = vld [vmem:[%s8304_s3 + $0x18] sm:$0xff] (!%p6385_p12)  ;;  %vm957_vm0 = vcmask (!%p6385_p12), 261120  }
  0x88   : > { %s806_s6 = scalar_lea.vmem %s9895_s21, %s8313_s20  ;;  %826 = sbr.rel (%p6385_p12) target bundleno = 296 (0x128), region = 96  ;;  %7459 = vset.pattern.permute.xlu1 (!%p6385_p12), %v8017_v16  ;;  %7458 = vset.pattern.permute.xlu0 (!%p6385_p12), %v8017_v16  ;;  %v8413_v18 = vld [vmem:[#allocation7] sm:$0xff] (!%p6385_p12)  ;;  %v8419_v23 = vld [vmem:[#allocation7 + $0x8] sm:$0xff] (!%p6385_p12)  ;;  %v828_v24 = vld [vmem:[%s8304_s3 + $0x8] sm:$0xff] (!%p6385_p12) }
  0x89   : > { %873 = vperm.xlu1 (!%p6385_p12), %7459, %v8299_v2   ;;  %863 = vperm.xlu0 (!%p6385_p12), %7458, %v8295_v0   ;;  %v847_v20 = vadd.f32 (!%p6385_p12), %v8413_v18, %v829_v17  ;;  %v845_v21 = vadd.f32 (!%p6385_p12), %v8413_v18, %v827_v19  ;;  %v848_v29 = vadd.f32 (!%p6385_p12), %v8419_v23, %v830_v22  ;;  %v832_v31 = vld [vmem:[%s8304_s3 + $0x28] sm:$0xff] (!%p6385_p12)  ;;  %v831_v32 = vld [vmem:[%s8304_s3 + $0x20] sm:$0xff] (!%p6385_p12)  ;;  %v834_v39 = vld [vmem:[%s8304_s3 + $0x38] sm:$0xff] (!%p6385_p12) }
  0x8a   : > { %s8385_s9 = scalar_lea.vmem %s9894_s14, %s6579_s8  ;;  %v846_v30 = vadd.f32 (!%p6385_p12), %v8419_v23, %v828_v24  ;;  %v850_v37 = vadd.f32 (!%p6385_p12), %v8419_v23, %v832_v31  ;;  %v849_v38 = vadd.f32 (!%p6385_p12), %v8413_v18, %v831_v32  ;;  %v833_v40 = vld [vmem:[%s8304_s3 + $0x30] sm:$0xff] (!%p6385_p12)  ;;  %v852_v45 = vadd.f32 (!%p6385_p12), %v8419_v23, %v834_v39  ;;  %v836_v47 = vld [vmem:[%s8304_s3 + $0x48] sm:$0xff] (!%p6385_p12)  ;;  %v835_v48 = vld [vmem:[%s8304_s3 + $0x40] sm:$0xff] (!%p6385_p12) }
  0x8b   : > { %v851_v46 = vadd.f32 (!%p6385_p12), %v8413_v18, %v833_v40  ;;  %v854_v53 = vadd.f32 (!%p6385_p12), %v8419_v23, %v836_v47  ;;  %v853_v54 = vadd.f32 (!%p6385_p12), %v8413_v18, %v835_v48  ;;  %v838_v55 = vld [vmem:[%s8304_s3 + $0x58] sm:$0xff] (!%p6385_p12)  ;;  %v837_v56 = vld [vmem:[%s8304_s3 + $0x50] sm:$0xff] (!%p6385_p12)  ;;  %v840_v63 = vld [vmem:[%s8304_s3 + $0x68] sm:$0xff] (!%p6385_p12) }
  0x8c   : > { %s790_s28 = scalar_lea.vmem %s9891_s13, %s8313_s20  ;;  %s8393_s13 = scalar_lea.vmem [#allocation9], %s9896_s29  ;;  %v856_v61 = vadd.f32 (!%p6385_p12), %v8419_v23, %v838_v55  ;;  %v855_v62 = vadd.f32 (!%p6385_p12), %v8413_v18, %v837_v56  ;;  %v839_v16 = vld [vmem:[%s8304_s3 + $0x60] sm:$0xff] (!%p6385_p12)  ;;  %v858_v22 = vadd.f32 (!%p6385_p12), %v8419_v23, %v840_v63 }
  0x8d   : > { %878 = vperm.xlu1 (!%p6385_p12), %7459, %v8306_v3   ;;  %868 = vperm.xlu0 (!%p6385_p12), %7458, %v8297_v1   ;;  %v857_v24 = vadd.f32 (!%p6385_p12), %v8413_v18, %v839_v16 }
  0x91   : > { %888 = vperm.xlu1 %7459, %v8310_v5   ;;  %883 = vperm.xlu0 %7458, %v8308_v4  }
  0x95   : > { %898 = vperm.xlu1 %7459, %v8317_v7   ;;  %893 = vperm.xlu0 %7458, %v8315_v6  }
  0x99   : > { %908 = vperm.xlu1 %7459, %v8321_v9   ;;  %903 = vperm.xlu0 %7458, %v8319_v8  }
  0x9d   : > { %918 = vperm.xlu1 %7459, %v8325_v11   ;;  %913 = vperm.xlu0 %7458, %v8323_v10  }
  0xa1   : > { %928 = vperm.xlu1 %7459, %v8336_v13   ;;  %923 = vperm.xlu0 %7458, %v8334_v12  }
  0xa5   : > { %938 = vperm.xlu1 %7459, %v8350_v15   ;;  %933 = vperm.xlu0 %7458, %v8338_v14  }
 0x108   : > { %v874_v25 = vpop.permute.xlu1 %873  ;;  %v864_v26 = vpop.permute.xlu0 %863 }
 0x109   : > { %v943_v27 = vmul.f32 %v874_v25, %v847_v20  ;;  %v941_v28 = vmul.f32 %v864_v26, %v845_v21  ;;  %v842_v25 = vld [vmem:[%s8304_s3 + $0x78] sm:$0xff]  ;;  %v841_v26 = vld [vmem:[%s8304_s3 + $0x70] sm:$0xff] }
 0x10a   : > { %v860_v31 = vadd.f32 %v8419_v23, %v842_v25  ;;  %v859_v32 = vadd.f32 %v8413_v18, %v841_v26 }
 0x10b   : > { %960 = vst.msk [vmem:[#allocation2 + $0x10] sm:$0xff] %vm957_vm0, %v943_v27  ;;  %958 = vst.msk [vmem:[#allocation2] sm:$0xff] %vm957_vm0, %v941_v28 }
 0x10c   : > { %v879_v33 = vpop.permute.xlu1 %878  ;;  %v869_v34 = vpop.permute.xlu0 %868 }
 0x10d   : > { %v944_v35 = vmul.f32 %v879_v33, %v848_v29  ;;  %v942_v36 = vmul.f32 %v869_v34, %v846_v30 }
 0x10f   : > { %961 = vst.msk [vmem:[#allocation2 + $0x18] sm:$0xff] %vm957_vm0, %v944_v35  ;;  %959 = vst.msk [vmem:[#allocation2 + $0x8] sm:$0xff] %vm957_vm0, %v942_v36 }
 0x110   : > { %v889_v41 = vpop.permute.xlu1 %888  ;;  %v884_v42 = vpop.permute.xlu0 %883 }
 0x111   : > { %v946_v43 = vmul.f32 %v889_v41, %v850_v37  ;;  %v945_v44 = vmul.f32 %v884_v42, %v849_v38 }
 0x113   : > { %963 = vst.msk [vmem:[#allocation2 + $0x28] sm:$0xff] %vm957_vm0, %v946_v43  ;;  %962 = vst.msk [vmem:[#allocation2 + $0x20] sm:$0xff] %vm957_vm0, %v945_v44 }
 0x114   : > { %v899_v49 = vpop.permute.xlu1 %898  ;;  %v894_v50 = vpop.permute.xlu0 %893 }
 0x115   : > { %v948_v51 = vmul.f32 %v899_v49, %v852_v45  ;;  %v947_v52 = vmul.f32 %v894_v50, %v851_v46 }
 0x117   : > { %965 = vst.msk [vmem:[#allocation2 + $0x38] sm:$0xff] %vm957_vm0, %v948_v51  ;;  %964 = vst.msk [vmem:[#allocation2 + $0x30] sm:$0xff] %vm957_vm0, %v947_v52 }
 0x118   : > { %v909_v57 = vpop.permute.xlu1 %908  ;;  %v904_v58 = vpop.permute.xlu0 %903 }
 0x119   : > { %v950_v59 = vmul.f32 %v909_v57, %v854_v53  ;;  %v949_v60 = vmul.f32 %v904_v58, %v853_v54 }
 0x11b   : > { %967 = vst.msk [vmem:[#allocation2 + $0x48] sm:$0xff] %vm957_vm0, %v950_v59  ;;  %966 = vst.msk [vmem:[#allocation2 + $0x40] sm:$0xff] %vm957_vm0, %v949_v60 }
 0x11c   : > { %v919_v17 = vpop.permute.xlu1 %918  ;;  %v914_v19 = vpop.permute.xlu0 %913 }
 0x11d   : > { %v952_v20 = vmul.f32 %v919_v17, %v856_v61  ;;  %v951_v21 = vmul.f32 %v914_v19, %v855_v62 }
 0x11f   : > { %969 = vst.msk [vmem:[#allocation2 + $0x58] sm:$0xff] %vm957_vm0, %v952_v20  ;;  %968 = vst.msk [vmem:[#allocation2 + $0x50] sm:$0xff] %vm957_vm0, %v951_v21 }
 0x120   : > { %v929_v27 = vpop.permute.xlu1 %928  ;;  %v924_v28 = vpop.permute.xlu0 %923 }
 0x121   : > { %v954_v29 = vmul.f32 %v929_v27, %v858_v22  ;;  %v953_v30 = vmul.f32 %v924_v28, %v857_v24 }
 0x123   : > { %971 = vst.msk [vmem:[#allocation2 + $0x68] sm:$0xff] %vm957_vm0, %v954_v29  ;;  %970 = vst.msk [vmem:[#allocation2 + $0x60] sm:$0xff] %vm957_vm0, %v953_v30 }
 0x124   : > { %v939_v33 = vpop.permute.xlu1 %938  ;;  %v934_v34 = vpop.permute.xlu0 %933 }
 0x125   : > { %v956_v35 = vmul.f32 %v939_v33, %v860_v31  ;;  %v955_v36 = vmul.f32 %v934_v34, %v859_v32 }
 0x127   : > { %973 = vst.msk [vmem:[#allocation2 + $0x78] sm:$0xff] %vm957_vm0, %v956_v35  ;;  %972 = vst.msk [vmem:[#allocation2 + $0x70] sm:$0xff] %vm957_vm0, %v955_v36 }
 0x128 PF: > { %v990_v23 = vld [vmem:[%s8343_s12] sm:$0xff]  ;;  %v991_v37 = vld [vmem:[%s8343_s12 + $0x8] sm:$0xff]  ;;  %v992_v18 = vld [vmem:[%s8343_s12 + $0x10] sm:$0xff]  ;;  %vm1001_vm1 = vcmask 261120   ;;  %vm1208_vm2 = vcmask 130048   ;;  %s8018_s2 = smov 96  }
 0x129   : > { %v7152_v38 = vpack.c.bf16 %v991_v37, %v990_v23  ;;  %v993_v39 = vld [vmem:[%s8343_s12 + $0x18] sm:$0xff]  ;;  %v974_v40 = vld [vmem:[#allocation2] sm:$0xff]  ;;  %v975_v43 = vld [vmem:[#allocation2 + $0x8] sm:$0xff]  ;;  %s8019_s8 = smov 64   ;;  %s8020_s25 = smov 80   ;;  %vm1611_vm4 = vcmask 261248  }
 0x12a   : > { %v7156_v41 = vpack.c.bf16 %v993_v39, %v992_v18  ;;  %6800 = vmatprep.mubr.msk.f32.mxu0 %vm1001_vm1, %v974_v40  ;;  %v982_v42 = vld [vmem:[#allocation2 + $0x40] sm:$0xff]  ;;  %v983_v44 = vld [vmem:[#allocation2 + $0x48] sm:$0xff]  ;;  %v984_v45 = vld [vmem:[#allocation2 + $0x50] sm:$0xff]  ;;  %s8021_s30 = smov 112   ;;  %s8022_s3 = smov 48   ;;  %vm5275_vm5 = vcmask 523264  }
 0x12b   : > { %7153 = vmatprep.subr.bf16.mxu0 %v7152_v38  ;;  %7352 = vmatprep.subr.bf16.mxu1 %v7152_v38  ;;  %v985_v46 = vld [vmem:[#allocation2 + $0x58] sm:$0xff]  ;;  %v986_v47 = vld [vmem:[#allocation2 + $0x60] sm:$0xff]  ;;  %v987_v48 = vld [vmem:[#allocation2 + $0x68] sm:$0xff]  ;;  %s9900_s21 = sld [smem:[#allocation32_spill]]  ;;  %s9902_s27 = sld [smem:[#allocation33_spill]] }
 0x12c   : > { %7155 = vmatpush3.bf16.msra.mxu0 %v7152_v38  ;;  %7354 = vmatpush3.bf16.msra.mxu1 %v7152_v38  ;;  %v8479_v51 = vld [vmem:[%s8332_s17] ss:$0 sm:$0xff]  ;;  %vm8506_vm3 = vmpackc.low %vm1208_vm2, %vm1208_vm2  ;;  %p6569_p13 = scmp.ne.s32.totalorder %s7993_s24, 1 }
 0x12d   : > { %7157 = vmatprep.subr.bf16.mxu0 %v7156_v41  ;;  %7353 = vmatprep.subr.bf16.mxu1 %v7156_v41  ;;  %v8516_v24 = vld [vmem:[%s8279_s19] ss:$0 sm:$0xff]  ;;  %vm5878_vm6 = vcmask (!%p6569_p13), 7168   ;;  %vm6095_vm7 = vcmask (!%p6569_p13), 1041409   ;;  %vm6097_vm8 = vcmask (!%p6569_p13), 1042434   ;;  %vm6099_vm9 = vcmask (!%p6569_p13), 1043459  }
 0x12e   : > { %6812 = vmatprep.mubr.msk.f32.mxu1 %vm1001_vm1, %v982_v42  ;;  %v988_v49 = vld [vmem:[#allocation2 + $0x70] sm:$0xff]  ;;  %v989_v50 = vld [vmem:[#allocation2 + $0x78] sm:$0xff]  ;;  %vm6101_vm10 = vcmask (!%p6569_p13), 1044484   ;;  %vm6103_vm11 = vcmask (!%p6569_p13), 1045509   ;;  %vm6105_vm12 = vcmask (!%p6569_p13), 1046534   ;;  %vm6107_vm13 = vcmask (!%p6569_p13), 1047559  }
 0x130   : > { %7159 = vmatpush3.bf16.msra.mxu0 %v7156_v41  ;;  %7355 = vmatpush3.bf16.msra.mxu1 %v7156_v41 }
 0x131   : > { %s9901_s16 = scalar_lea.vmem %s9900_s21, %s8313_s20  ;;  %s9903_s22 = scalar_lea.vmem %s9902_s27, %s8313_s20 }
 0x133   : > { %6801 = vmatmul.mubr.msk.f32.vlgmr.msra.gmra.mrb[0].mxu0 %vm1001_vm1, %v975_v43  ;;  %6813 = vmatmul.mubr.msk.f32.vlgmr.msra.gmra.mrb[0].mxu1 %vm1001_vm1, %v983_v44 }
 0x134   : > { %6815 = vmatprep.mubr.msk.f32.mxu1 %vm1001_vm1, %v984_v45 }
 0x137   : > { %6816 = vmatmul.mubr.msk.f32.gmra.mrb[2].mxu1 %vm1001_vm1, %v985_v46 }
 0x138   : > { %6818 = vmatprep.mubr.msk.f32.mxu1 %vm1001_vm1, %v986_v47  ;;  %v976_v47 = vld [vmem:[#allocation2 + $0x10] sm:$0xff] }
 0x139   : > { %6803 = vmatprep.mubr.msk.f32.mxu0 %vm1001_vm1, %v976_v47 }
 0x13b   : > { %6819 = vmatmul.mubr.msk.f32.gmra.mrb[4].mxu1 %vm1001_vm1, %v987_v48  ;;  %v977_v48 = vld [vmem:[#allocation2 + $0x18] sm:$0xff] }
 0x13c   : > { %6821 = vmatprep.mubr.msk.f32.mxu1 %vm1001_vm1, %v988_v49  ;;  %v978_v49 = vld [vmem:[#allocation2 + $0x20] sm:$0xff]  ;;  %6804 = vmatmul.mubr.msk.f32.gmra.mrb[2].mxu0 %vm1001_vm1, %v977_v48 }
 0x13d   : > { %6806 = vmatprep.mubr.msk.f32.mxu0 %vm1001_vm1, %v978_v49 }
 0x13f   : > { %6822 = vmatmul.mubr.msk.f32.gmra.mrb[6].mxu1 %vm1001_vm1, %v989_v50  ;;  %v979_v50 = vld [vmem:[#allocation2 + $0x28] sm:$0xff] }
 0x140   : > { %6807 = vmatmul.mubr.msk.f32.gmra.mrb[4].mxu0 %vm1001_vm1, %v979_v50 }
 0x206   : > { %v6802_v52 = vpop.f32.mrb[0].mxu0  ;;  %v8486_v57 = vpop.f32.mrb[0].mxu1 }
 0x207   : > { %v1122_v53 = vadd.f32 %v6802_v52, %v8479_v51  ;;  %v1116_v54 = vpop.f32.mrb[1].mxu0  ;;  %v8490_v58 = vpop.f32.mrb[1].mxu1 }
 0x208   : > { %v1117_v55 = vadd.f32 %v8479_v51, %v1116_v54 }
 0x20a   : > { %6828 = vmatprep.mubr.msk.f32.mxu1 %vm1208_vm2, %v1117_v55  ;;  %v8484_v56 = vpack.i.bf16 %v1122_v53, %v1117_v55  ;;  %v8492_v59 = vpop.f32.mrb[2].mxu1 }
 0x20b   : > { %v8494_v60 = vpop.f32.mrb[3].mxu1 }
 0x20c   : > { %7461 = vrot.lane.b32.xlu0 %v8484_v56, %s8018_s2 }
 0x20e   : > { %v8496_v61 = vpop.f32.mrb[4].mxu1 }
 0x20f   : > { %v8498_v62 = vpop.f32.mrb[5].mxu1 }
 0x212   : > { %v8500_v63 = vpop.f32.mrb[6].mxu1 }
 0x213   : > { %v8502_v16 = vpop.f32.mrb[7].mxu1 }
 0x27e   : > { %v7462_v17 = vpop.permute.xlu0 %7461 }
 0x27f   : > { %v7464_v19 = vunpack.i.h.bf16 %v7462_v17  ;;  %v7463_v20 = vunpack.i.l.bf16 %v7462_v17 }
 0x281   : > { %v7160_v22 = vpack.c.bf16 %v7464_v19, %v7463_v20 }
 0x283   : > { %7162 = vmatprep.subr.msk.bf16.mxu1 %vm8506_vm3, %v7160_v22 }
 0x284   : > { %7165 = vmatpush3.bf16.xpose.msk.msra.mxu1 %vm8506_vm3, %v7160_v22 }
 0x28b   : > { %6829 = vmatmul.mubr.msk.f32.vlgmr.msra.gmra.mrb[8].mxu1 %vm1208_vm2, %v1122_v53 }
 0x35e   : > { %v6830_v25 = vpop.f32.mrb[8].mxu1 }
 0x35f   : > { %v1289_v26 = vadd.f32 %v6830_v25, %v8516_v24  ;;  %v1283_v27 = vpop.f32.mrb[9].mxu1  ;;  %v6805_v25 = vpop.f32.mrb[2].mxu0 }
 0x360   : > { %v1284_v28 = vadd.f32 %v8516_v24, %v1283_v27 }
 0x361   : > { %v1295_v29 = vsel %vm1208_vm2, %v1289_v26, -inf }
 0x362   : > { %1296 = vmax.xlane.f32.xlu1 %v1295_v29  ;;  %v1292_v30 = vsel %vm1208_vm2, %v1284_v28, -inf }
 0x363   : > { %1293 = vmax.xlane.f32.xlu0 %v1292_v30 }
 0x373   : > { %7466 = vrot.lane.b32.xlu1 %v8484_v56, %s8019_s8 }
 0x377   : > { %7471 = vrot.lane.b32.xlu1 %v8484_v56, %s8020_s25 }
 0x379   : > { %1405 = vrot.lane.b32.xlu0 %v1122_v53, %s8021_s30 }
 0x3ef   : > { %v1297_v31 = vpop.xlane.xlu1 %1296 }
 0x3f0   : > { %v1299_v32 = vsub.f32 %v1289_v26, %v1297_v31  ;;  %v1294_v33 = vpop.xlane.xlu0 %1293  ;;  %v1126_v26 = vpop.f32.mrb[3].mxu0 }
 0x3f1   : > { %v1298_v34 = vsub.f32 %v1284_v28, %v1294_v33 }
 0x3f2   : > { %v1302_v35 = vmul.f32 1.442695, %v1299_v32 }
 0x3f3   : > { %v1300_v36 = vmul.f32 1.442695, %v1298_v34  ;;  %v7467_v23 = vpop.permute.xlu1 %7466 }
 0x3f4   : > { %7622 = vpow2.f32 %v1302_v35  ;;  %v7469_v37 = vunpack.i.h.bf16 %v7467_v23  ;;  %v7468_v18 = vunpack.i.l.bf16 %v7467_v23  ;;  %v1406_v22 = vpop.permute.xlu0 %1405  ;;  %v8549_v35 = vadd.f32 %v6805_v25, %v8479_v51 }
 0x3f5   : > { %7624 = vpow2.f32 %v1300_v36  ;;  %v8552_v36 = vadd.f32 %v8479_v51, %v1126_v26  ;;  %v980_v26 = vld [vmem:[#allocation2 + $0x30] sm:$0xff] }
 0x3f6   : > { %v7166_v38 = vpack.c.bf16 %v7469_v37, %v7468_v18  ;;  %6809 = vmatprep.mubr.msk.f32.mxu0 %vm1001_vm1, %v980_v26 }
 0x3f7   : > { %v7472_v39 = vpop.permute.xlu1 %7471  ;;  %v8558_v23 = vpack.i.bf16 %v8549_v35, %v8552_v36 }
 0x3f8   : > { %v7474_v40 = vunpack.i.h.bf16 %v7472_v39  ;;  %v7473_v41 = vunpack.i.l.bf16 %v7472_v39  ;;  %7167 = vmatprep.subr.bf16.mxu1 %v7166_v38 }
 0x3f9   : > { %7169 = vmatpush3.bf16.msra.mxu1 %v7166_v38 }
 0x3fa   : > { %v7170_v42 = vpack.c.bf16 %v7474_v40, %v7473_v41 }
 0x3fc   : > { %7172 = vmatprep.subr.msk.bf16.mxu1 %vm8506_vm3, %v7170_v42 }
 0x3fe   : > { %v7623_v43 = vpop.eup %7622 }
 0x3ff   : > { %v1307_v44 = vsel %vm1208_vm2, %v7623_v43, 0.0  ;;  %v7625_v45 = vpop.eup %7624 }
 0x400   : > { %1308 = vadd.xlane.f32.xlu1 %v1307_v44  ;;  %v1304_v46 = vsel %vm1208_vm2, %v7625_v45, 0.0 }
 0x404   : > { %1305 = vadd.xlane.f32.xlu1 %v1304_v46 }
 0x415   : > { %1403 = vrot.lane.b32.xlu1 %v1117_v55, %s8021_s30 }
 0x48d   : > { %v1309_v52 = vpop.xlane.xlu1 %1308 }
 0x48e   : > { %7626 = vrcp.f32 %v1309_v52 }
 0x491   : > { %v1306_v53 = vpop.xlane.xlu1 %1305 }
 0x492   : > { %7628 = vrcp.f32 %v1306_v53 }
 0x495   : > { %v1404_v20 = vpop.permute.xlu1 %1403 }
 0x498   : > { %v7627_v54 = vpop.eup %7626 }
 0x499   : > { %v1313_v55 = vmul.f32 %v7627_v54, %v7623_v43 }
 0x49c   : > { %v7629_v17 = vpop.eup %7628 }
 0x49d   : > { %v1312_v19 = vmul.f32 %v7629_v17, %v7625_v45 }
 0x49f   : > { %6835 = vmatprep.mubr.msk.f32.mxu1 %vm1208_vm2, %v1312_v19 }
 0x4a0   : > { %6836 = vmatmul.mubr.msk.f32.vlgmr.msra.gmra.mrb[10].mxu1 %vm1208_vm2, %v1313_v55 }
 0x4a1   : > { %7175 = vmatpush3.bf16.xpose.msk.msra.mxu1 %vm8506_vm3, %v7170_v42  ;;  %6842 = vmatprep.mubr.msk.f32.mxu1 %vm1208_vm2, %v1404_v20 }
 0x4a8   : > { %6843 = vmatmul.mubr.msk.f32.vlgmr.msra.gmra.mrb[12].mxu1 %vm1208_vm2, %v1406_v22 }
 0x573   : > { %v6837_v27 = vpop.f32.mrb[10].mxu1 }
 0x574   : > { %1402 = vst.msk [vmem:[#allocation3 + $0x8] sm:$0xff] %vm1208_vm2, %v6837_v27  ;;  %v1392_v28 = vpop.f32.mrb[11].mxu1  ;;  %v981_v27 = vld [vmem:[#allocation2 + $0x38] sm:$0xff] }
 0x575   : > { %1401 = vst.msk [vmem:[#allocation3] sm:$0xff] %vm1208_vm2, %v1392_v28  ;;  %6810 = vmatmul.mubr.msk.f32.gmra.mrb[6].mxu0 %vm1001_vm1, %v981_v27 }
 0x57b   : > { %v6844_v29 = vpop.f32.mrb[12].mxu1 }
 0x57c   : > { %v1491_v30 = vadd.f32 %v6844_v29, %v8516_v24  ;;  %v1485_v31 = vpop.f32.mrb[13].mxu1 }
 0x57d   : > { %v1486_v32 = vadd.f32 %v8516_v24, %v1485_v31  ;;  %v6808_v24 = vpop.f32.mrb[4].mxu0 }
 0x57e   : > { %v1497_v33 = vsel %vm1208_vm2, %v1491_v30, -inf  ;;  %v1136_v37 = vpop.f32.mrb[5].mxu0  ;;  %v8575_v22 = vadd.f32 %v6808_v24, %v8479_v51 }
 0x57f   : > { %1498 = vmax.xlane.f32.xlu0 %v1497_v33  ;;  %v1494_v34 = vsel %vm1208_vm2, %v1486_v32, -inf  ;;  %v8578_v25 = vadd.f32 %v8479_v51, %v1136_v37 }
 0x580   : > { %1495 = vmax.xlane.f32.xlu1 %v1494_v34 }
 0x581   : > { %v8586_v28 = vpack.i.bf16 %v8575_v22, %v8578_v25 }
 0x591   : > { %7476 = vrot.lane.b32.xlu1 %v8484_v56, %s8022_s3 }
 0x595   : > { %7486 = vrot.lane.b32.xlu1 %v8558_v23, %s8020_s25  ;;  %7481 = vrot.lane.b32.xlu0 %v8558_v23, %s8018_s2 }
 0x599   : > { %1824 = vrot.lane.b32.xlu0 %v8549_v35, %s8021_s30 }
 0x60c   : > { %v1499_v18 = vpop.xlane.xlu0 %1498 }
 0x60d   : > { %v1501_v38 = vsub.f32 %v1491_v30, %v1499_v18  ;;  %v1496_v39 = vpop.xlane.xlu1 %1495 }
 0x60e   : > { %v1500_v40 = vsub.f32 %v1486_v32, %v1496_v39 }
 0x60f   : > { %v1504_v56 = vmul.f32 1.442695, %v1501_v38 }
 0x610   : > { %v1502_v41 = vmul.f32 1.442695, %v1500_v40  ;;  %v7482_v42 = vpop.permute.xlu0 %7481 }
 0x611   : > { %7630 = vpow2.f32 %v1504_v56  ;;  %v7477_v43 = vpop.permute.xlu1 %7476  ;;  %v7484_v44 = vunpack.i.h.bf16 %v7482_v42  ;;  %v7483_v45 = vunpack.i.l.bf16 %v7482_v42 }
 0x612   : > { %v7479_v46 = vunpack.i.h.bf16 %v7477_v43  ;;  %v7478_v47 = vunpack.i.l.bf16 %v7477_v43  ;;  %7632 = vpow2.f32 %v1502_v41 }
 0x613   : > { %v7180_v49 = vpack.c.bf16 %v7484_v44, %v7483_v45 }
 0x614   : > { %v7176_v48 = vpack.c.bf16 %v7479_v46, %v7478_v47  ;;  %v1825_v32 = vpop.permute.xlu0 %1824 }
 0x615   : > { %v7487_v50 = vpop.permute.xlu1 %7486 }
 0x616   : > { %7177 = vmatprep.subr.bf16.mxu1 %v7176_v48  ;;  %v7489_v52 = vunpack.i.h.bf16 %v7487_v50  ;;  %v7488_v53 = vunpack.i.l.bf16 %v7487_v50 }
 0x617   : > { %7179 = vmatpush3.bf16.msra.mxu1 %v7176_v48 }
 0x618   : > { %v7190_v54 = vpack.c.bf16 %v7489_v52, %v7488_v53  ;;  %7182 = vmatprep.subr.msk.bf16.mxu1 %vm8506_vm3, %v7180_v49 }
 0x61a   : > { %7192 = vmatprep.subr.msk.bf16.mxu0 %vm8506_vm3, %v7190_v54 }
 0x61b   : > { %v7631_v17 = vpop.eup %7630  ;;  %7195 = vmatpush3.bf16.xpose.msk.msra.mxu0 %vm8506_vm3, %v7190_v54 }
 0x61c   : > { %v1509_v19 = vsel %vm1208_vm2, %v7631_v17, 0.0  ;;  %v7633_v55 = vpop.eup %7632 }
 0x61d   : > { %1510 = vadd.xlane.f32.xlu1 %v1509_v19  ;;  %v1506_v20 = vsel %vm1208_vm2, %v7633_v55, 0.0 }
 0x621   : > { %1507 = vadd.xlane.f32.xlu1 %v1506_v20 }
 0x632   : > { %1822 = vrot.lane.b32.xlu1 %v8552_v36, %s8021_s30 }
 0x636   : > { %7491 = vrot.lane.b32.xlu1 %v8586_v28, %s8018_s2 }
 0x648   : > { %v8608_v56 = vpop.f32.mrb[6].mxu0 }
 0x649   : > { %v8610_v41 = vpop.f32.mrb[7].mxu0 }
 0x6aa   : > { %v1511_v29 = vpop.xlane.xlu1 %1510 }
 0x6ab   : > { %7634 = vrcp.f32 %v1511_v29 }
 0x6ae   : > { %v1508_v30 = vpop.xlane.xlu1 %1507 }
 0x6af   : > { %7636 = vrcp.f32 %v1508_v30 }
 0x6b2   : > { %v1823_v31 = vpop.permute.xlu1 %1822 }
 0x6b3   : > { %6870 = vmatprep.mubr.msk.f32.mxu0 %vm1208_vm2, %v1823_v31 }
 0x6b4   : > { %6871 = vmatmul.mubr.msk.f32.vlgmr.msra.gmra.mrb[8].mxu0 %vm1208_vm2, %v1825_v32 }
 0x6b5   : > { %6884 = vmatprep.mubr.msk.f32.mxu0 %vm1208_vm2, %v8578_v25  ;;  %v7635_v37 = vpop.eup %7634 }
 0x6b6   : > { %v7492_v33 = vpop.permute.xlu1 %7491  ;;  %v1515_v40 = vmul.f32 %v7635_v37, %v7631_v17  ;;  %v8619_v17 = vld [vmem:[%s8279_s19 + $0x2] ss:$0 sm:$0xff] }
 0x6b7   : > { %v7494_v34 = vunpack.i.h.bf16 %v7492_v33  ;;  %v7493_v24 = vunpack.i.l.bf16 %v7492_v33 }
 0x6b9   : > { %v7637_v18 = vpop.eup %7636  ;;  %v7200_v38 = vpack.c.bf16 %v7494_v34, %v7493_v24 }
 0x6ba   : > { %v1514_v39 = vmul.f32 %v7637_v18, %v7633_v55 }
 0x6bb   : > { %7202 = vmatprep.subr.msk.bf16.mxu0 %vm8506_vm3, %v7200_v38 }
 0x6bc   : > { %6849 = vmatprep.mubr.msk.f32.mxu1 %vm1208_vm2, %v1514_v39  ;;  %7205 = vmatpush3.bf16.xpose.msk.msra.mxu0 %vm8506_vm3, %v7200_v38 }
 0x6bd   : > { %6850 = vmatmul.mubr.msk.f32.vlgmr.msra.gmra.mrb[14].mxu1 %vm1208_vm2, %v1515_v40 }
 0x6be   : > { %7185 = vmatpush3.bf16.xpose.msk.msra.mxu1 %vm8506_vm3, %v7180_v49  ;;  %6856 = vmatprep.mubr.msk.f32.mxu1 %vm1208_vm2, %v8552_v36  ;;  %v6417_v36 = vld [vmem:[%s8279_s19 + $0x1] ss:$0 sm:$0xff] }
 0x6c3   : > { %6885 = vmatmul.mubr.msk.f32.vlgmr.msra.gmra.mrb[10].mxu0 %vm1208_vm2, %v8575_v22 }
 0x6c5   : > { %6857 = vmatmul.mubr.msk.f32.vlgmr.msra.gmra.mrb[16].mxu1 %vm1208_vm2, %v8549_v35 }
 0x787   : > { %v6872_v42 = vpop.f32.mrb[8].mxu0 }
 0x788   : > { %v1904_v43 = vpop.f32.mrb[9].mxu0  ;;  %v1910_v54 = vadd.f32 %v6872_v42, %v6417_v36 }
 0x789   : > { %v1905_v53 = vadd.f32 %v6417_v36, %v1904_v43 }
 0x78a   : > { %v1916_v27 = vsel %vm1208_vm2, %v1910_v54, -inf }
 0x78b   : > { %v1913_v20 = vsel %vm1208_vm2, %v1905_v53, -inf }
 0x790   : > { %v8612_v44 = vpop.f32.mrb[14].mxu1 }
 0x791   : > { %v8614_v45 = vpop.f32.mrb[15].mxu1 }
 0x796   : > { %v6886_v46 = vpop.f32.mrb[10].mxu0 }
 0x797   : > { %v2120_v47 = vpop.f32.mrb[11].mxu0  ;;  %v2126_v26 = vadd.f32 %v6886_v46, %v8619_v17 }
 0x798   : > { %v6858_v48 = vpop.f32.mrb[16].mxu1  ;;  %v2121_v55 = vadd.f32 %v8619_v17, %v2120_v47 }
 0x799   : > { %v1708_v49 = vadd.f32 %v6858_v48, %v6417_v36  ;;  %v1702_v50 = vpop.f32.mrb[17].mxu1  ;;  %v2132_v30 = vsel %vm1208_vm2, %v2126_v26, -inf }
 0x79a   : > { %v1703_v52 = vadd.f32 %v6417_v36, %v1702_v50  ;;  %v2129_v29 = vsel %vm1208_vm2, %v2121_v55, -inf }
 0x79b   : > { %v1714_v35 = vsel %vm1208_vm2, %v1708_v49, -inf }
 0x79c   : > { %1715 = vmax.xlane.f32.xlu0 %v1714_v35  ;;  %v1711_v19 = vsel %vm1208_vm2, %v1703_v52, -inf }
 0x79d   : > { %1712 = vmax.xlane.f32.xlu1 %v1711_v19 }
 0x7a0   : > { %1914 = vmax.xlane.f32.xlu0 %v1913_v20 }
 0x7a1   : > { %1917 = vmax.xlane.f32.xlu1 %v1916_v27 }
 0x7a4   : > { %2130 = vmax.xlane.f32.xlu0 %v2129_v29 }
 0x7a5   : > { %2133 = vmax.xlane.f32.xlu1 %v2132_v30 }
 0x829   : > { %v1716_v31 = vpop.xlane.xlu0 %1715 }
 0x82a   : > { %v1713_v32 = vpop.xlane.xlu1 %1712  ;;  %v1718_v39 = vsub.f32 %v1708_v49, %v1716_v31 }
 0x82b   : > { %v1717_v18 = vsub.f32 %v1703_v52, %v1713_v32 }
 0x82c   : > { %v1721_v50 = vmul.f32 1.442695, %v1718_v39 }
 0x82d   : > { %v1915_v33 = vpop.xlane.xlu0 %1914  ;;  %v1719_v36 = vmul.f32 1.442695, %v1717_v18 }
 0x82e   : > { %v1919_v34 = vsub.f32 %v1905_v53, %v1915_v33  ;;  %v1918_v24 = vpop.xlane.xlu1 %1917 }
 0x82f   : > { %v1920_v37 = vsub.f32 %v1910_v54, %v1918_v24 }
 0x830   : > { %v1921_v38 = vmul.f32 1.442695, %v1919_v34 }
 0x831   : > { %v1923_v40 = vmul.f32 1.442695, %v1920_v37  ;;  %v2131_v42 = vpop.xlane.xlu0 %2130 }
 0x832   : > { %7638 = vpow2.f32 %v1921_v38  ;;  %v2135_v43 = vsub.f32 %v2121_v55, %v2131_v42  ;;  %v2134_v46 = vpop.xlane.xlu1 %2133 }
 0x833   : > { %7640 = vpow2.f32 %v1923_v40  ;;  %v2136_v47 = vsub.f32 %v2126_v26, %v2134_v46 }
 0x834   : > { %v2137_v48 = vmul.f32 1.442695, %v2135_v43 }
 0x835   : > { %v2139_v35 = vmul.f32 1.442695, %v2136_v47 }
 0x836   : > { %7642 = vpow2.f32 %v2137_v48 }
 0x837   : > { %7644 = vpow2.f32 %v2139_v35 }
 0x838   : > { %7646 = vpow2.f32 %v1719_v36 }
 0x839   : > { %7648 = vpow2.f32 %v1721_v50 }
 0x83c   : > { %v7639_v53 = vpop.eup %7638 }
 0x83d   : > { %v8628_v54 = vpop.eup %7640  ;;  %v1925_v49 = vsel %vm1208_vm2, %v7639_v53, 0.0 }
 0x83e   : > { %1926 = vadd.xlane.f32.xlu0 %v1925_v49  ;;  %v1928_v52 = vsel %vm1208_vm2, %v8628_v54, 0.0 }
 0x83f   : > { %1929 = vadd.xlane.f32.xlu1 %v1928_v52 }
 0x840   : > { %v8633_v19 = vpop.eup %7642 }
 0x841   : > { %v8635_v55 = vpop.eup %7644  ;;  %v2141_v20 = vsel %vm1208_vm2, %v8633_v19, 0.0 }
 0x842   : > { %v7647_v26 = vpop.eup %7646  ;;  %2142 = vadd.xlane.f32.xlu0 %v2141_v20  ;;  %v2144_v27 = vsel %vm1208_vm2, %v8635_v55, 0.0 }
 0x843   : > { %v7649_v29 = vpop.eup %7648  ;;  %2145 = vadd.xlane.f32.xlu1 %v2144_v27  ;;  %v1723_v30 = vsel %vm1208_vm2, %v7647_v26, 0.0 }
 0x844   : > { %v1726_v31 = vsel %vm1208_vm2, %v7649_v29, 0.0 }
 0x846   : > { %1724 = vadd.xlane.f32.xlu0 %v1723_v30 }
 0x847   : > { %1727 = vadd.xlane.f32.xlu1 %v1726_v31 }
 0x858   : > { %7501 = vrot.lane.b32.xlu1 %v8558_v23, %s8022_s3 }
 0x85c   : > { %7496 = vrot.lane.b32.xlu0 %v8558_v23, %s8019_s8  ;;  %7506 = vrot.lane.b32.xlu1 %v8586_v28, %s8019_s8 }
 0x860   : > { %7511 = vrot.lane.b32.xlu0 %v8586_v28, %s8020_s25  ;;  %2240 = vrot.lane.b32.xlu1 %v8578_v25, %s8021_s30 }
 0x864   : > { %2242 = vrot.lane.b32.xlu0 %v8575_v22, %s8021_s30 }
 0x8cb   : > { %v1927_v32 = vpop.xlane.xlu0 %1926 }
 0x8cc   : > { %v1930_v33 = vpop.xlane.xlu1 %1929  ;;  %7650 = vrcp.f32 %v1927_v32 }
 0x8cf   : > { %v2143_v34 = vpop.xlane.xlu0 %2142 }
 0x8d0   : > { %v2146_v24 = vpop.xlane.xlu1 %2145 }
 0x8d3   : > { %v1725_v37 = vpop.xlane.xlu0 %1724 }
 0x8d4   : > { %7652 = vrcp.f32 %v1725_v37  ;;  %v1728_v23 = vpop.xlane.xlu1 %1727 }
 0x8d5   : > { %7654 = vrcp.f32 %v1728_v23 }
 0x8d6   : > { %7656 = vrcp.f32 %v1930_v33  ;;  %v7651_v47 = vpop.eup %7650 }
 0x8d7   : > { %v7497_v18 = vpop.permute.xlu0 %7496  ;;  %7658 = vrcp.f32 %v2143_v34  ;;  %v1933_v30 = vmul.f32 %v7651_v47, %v7639_v53 }
 0x8d8   : > { %v7499_v38 = vunpack.i.h.bf16 %v7497_v18  ;;  %v7498_v39 = vunpack.i.l.bf16 %v7497_v18  ;;  %v7502_v40 = vpop.permute.xlu1 %7501  ;;  %7660 = vrcp.f32 %v2146_v24 }
 0x8d9   : > { %v7504_v42 = vunpack.i.h.bf16 %v7502_v40  ;;  %v7503_v25 = vunpack.i.l.bf16 %v7502_v40 }
 0x8da   : > { %v7186_v43 = vpack.c.bf16 %v7499_v38, %v7498_v39 }
 0x8db   : > { %v7196_v22 = vpack.c.bf16 %v7504_v42, %v7503_v25  ;;  %v7512_v49 = vpop.permute.xlu0 %7511 }
 0x8dc   : > { %7187 = vmatprep.subr.bf16.mxu1 %v7186_v43  ;;  %v7507_v46 = vpop.permute.xlu1 %7506  ;;  %v7514_v32 = vunpack.i.h.bf16 %v7512_v49  ;;  %v7513_v33 = vunpack.i.l.bf16 %v7512_v49 }
 0x8dd   : > { %7189 = vmatpush3.bf16.msra.mxu1 %v7186_v43  ;;  %v7509_v48 = vunpack.i.h.bf16 %v7507_v46  ;;  %v7508_v50 = vunpack.i.l.bf16 %v7507_v46 }
 0x8de   : > { %v7653_v36 = vpop.eup %7652  ;;  %7197 = vmatprep.subr.bf16.mxu1 %v7196_v22 }
 0x8df   : > { %v7655_v35 = vpop.eup %7654  ;;  %v1731_v52 = vmul.f32 %v7653_v36, %v7647_v26  ;;  %v7206_v34 = vpack.c.bf16 %v7509_v48, %v7508_v50 }
 0x8e0   : > { %v1732_v20 = vmul.f32 %v7655_v35, %v7649_v29  ;;  %v7657_v27 = vpop.eup %7656  ;;  %v7210_v29 = vpack.c.bf16 %v7514_v32, %v7513_v33  ;;  %v2241_v23 = vpop.permute.xlu1 %2240  ;;  %v1147_v32 = vadd.f32 %v8479_v51, %v8610_v41 }
 0x8e1   : > { %6863 = vmatprep.mubr.msk.f32.mxu1 %vm1208_vm2, %v1731_v52  ;;  %v7659_v31 = vpop.eup %7658  ;;  %v1934_v24 = vmul.f32 %v7657_v27, %v8628_v54  ;;  %v2243_v54 = vpop.permute.xlu0 %2242 }
 0x8e2   : > { %6864 = vmatmul.mubr.msk.f32.vlgmr.msra.gmra.mrb[18].mxu1 %vm1208_vm2, %v1732_v20  ;;  %v7661_v37 = vpop.eup %7660  ;;  %v2149_v26 = vmul.f32 %v7659_v31, %v8633_v19  ;;  %v1152_v31 = vadd.f32 %v8608_v56, %v8479_v51 }
 0x8e3   : > { %7199 = vmatpush3.bf16.msra.mxu1 %v7196_v22  ;;  %6877 = vmatprep.mubr.msk.f32.mxu1 %vm1208_vm2, %v1933_v30  ;;  %v2150_v53 = vmul.f32 %v7661_v37, %v8635_v55 }
 0x8e4   : > { %7207 = vmatprep.subr.bf16.mxu1 %v7206_v34  ;;  %v8688_v33 = vpack.i.bf16 %v1152_v31, %v1147_v32 }
 0x8e6   : > { %6878 = vmatmul.mubr.msk.f32.vlgmr.msra.gmra.mrb[20].mxu1 %vm1208_vm2, %v1934_v24 }
 0x8e7   : > { %7209 = vmatpush3.bf16.msra.mxu1 %v7206_v34  ;;  %6891 = vmatprep.mubr.msk.f32.mxu1 %vm1208_vm2, %v2149_v26 }
 0x8e8   : > { %7212 = vmatprep.subr.msk.bf16.mxu1 %vm8506_vm3, %v7210_v29 }
 0x8ea   : > { %6892 = vmatmul.mubr.msk.f32.vlgmr.msra.gmra.mrb[22].mxu1 %vm1208_vm2, %v2150_v53 }
 0x8eb   : > { %6898 = vmatprep.mubr.msk.f32.mxu1 %vm1208_vm2, %v2241_v23 }
 0x8f0   : > { %7215 = vmatpush3.bf16.xpose.msk.msra.mxu1 %vm8506_vm3, %v7210_v29 }
 0x8f7   : > { %6899 = vmatmul.mubr.msk.f32.vlgmr.msra.gmra.mrb[24].mxu1 %vm1208_vm2, %v2243_v54 }
 0x9b5   : > { %v6865_v19 = vpop.f32.mrb[18].mxu1 }
 0x9b6   : > { %1821 = vst.msk [vmem:[#allocation3 + $0x18] sm:$0xff] %vm1208_vm2, %v6865_v19  ;;  %v1811_v18 = vpop.f32.mrb[19].mxu1 }
 0x9b7   : > { %1820 = vst.msk [vmem:[#allocation3 + $0x10] sm:$0xff] %vm1208_vm2, %v1811_v18 }
 0x9b9   : > { %v8672_v38 = vpop.f32.mrb[20].mxu1 }
 0x9ba   : > { %v8674_v55 = vpop.f32.mrb[21].mxu1 }
 0x9bd   : > { %v6893_v39 = vpop.f32.mrb[22].mxu1 }
 0x9be   : > { %2239 = vst.msk [vmem:[#allocation3 + $0x28] sm:$0xff] %vm1208_vm2, %v6893_v39  ;;  %v2229_v40 = vpop.f32.mrb[23].mxu1 }
 0x9bf   : > { %2238 = vst.msk [vmem:[#allocation3 + $0x20] sm:$0xff] %vm1208_vm2, %v2229_v40 }
 0x9ca   : > { %v6900_v42 = vpop.f32.mrb[24].mxu1 }
 0x9cb   : > { %v2328_v25 = vadd.f32 %v6900_v42, %v8619_v17  ;;  %v2322_v43 = vpop.f32.mrb[25].mxu1 }
 0x9cc   : > { %v2323_v22 = vadd.f32 %v8619_v17, %v2322_v43 }
 0x9cd   : > { %v2334_v46 = vsel %vm1208_vm2, %v2328_v25, -inf }
 0x9ce   : > { %2335 = vmax.xlane.f32.xlu0 %v2334_v46  ;;  %v2331_v47 = vsel %vm1208_vm2, %v2323_v22, -inf }
 0x9cf   : > { %2332 = vmax.xlane.f32.xlu1 %v2331_v47 }
 0xa5b   : > { %v2336_v36 = vpop.xlane.xlu0 %2335 }
 0xa5c   : > { %v2338_v48 = vsub.f32 %v2328_v25, %v2336_v36  ;;  %v2333_v50 = vpop.xlane.xlu1 %2332  ;;  %v6445_v25 = vld [vmem:[%s8279_s19 + $0x3] ss:$0 sm:$0xff] }
 0xa5d   : > { %v2337_v35 = vsub.f32 %v2323_v22, %v2333_v50 }
 0xa5e   : > { %v2341_v49 = vmul.f32 1.442695, %v2338_v48 }
 0xa5f   : > { %v2339_v52 = vmul.f32 1.442695, %v2337_v35 }
 0xa60   : > { %7662 = vpow2.f32 %v2341_v49 }
 0xa61   : > { %7664 = vpow2.f32 %v2339_v52 }
 0xa6a   : > { %v7663_v20 = vpop.eup %7662 }
 0xa6b   : > { %v7665_v27 = vpop.eup %7664  ;;  %v2346_v30 = vsel %vm1208_vm2, %v7663_v20, 0.0 }
 0xa6c   : > { %2347 = vadd.xlane.f32.xlu1 %v2346_v30  ;;  %v2343_v17 = vsel %vm1208_vm2, %v7665_v27, 0.0 }
 0xa6d   : > { %2344 = vadd.xlane.f32.xlu0 %v2343_v17 }
 0xa7d   : > { %7521 = vrot.lane.b32.xlu1 %v8688_v33, %s8018_s2 }
 0xa83   : > { %7516 = vrot.lane.b32.xlu0 %v8586_v28, %s8022_s3 }
 0xaf9   : > { %v2348_v34 = vpop.xlane.xlu1 %2347 }
 0xafa   : > { %7666 = vrcp.f32 %v2348_v34  ;;  %v2345_v24 = vpop.xlane.xlu0 %2344 }
 0xafb   : > { %7668 = vrcp.f32 %v2345_v24 }
 0xafd   : > { %v7522_v37 = vpop.permute.xlu1 %7521 }
 0xafe   : > { %v7517_v26 = vpop.permute.xlu0 %7516  ;;  %v7524_v29 = vunpack.i.h.bf16 %v7522_v37  ;;  %v7523_v53 = vunpack.i.l.bf16 %v7522_v37 }
 0xaff   : > { %v7519_v56 = vunpack.i.h.bf16 %v7517_v26  ;;  %v7518_v23 = vunpack.i.l.bf16 %v7517_v26 }
 0xb00   : > { %v7220_v41 = vpack.c.bf16 %v7524_v29, %v7523_v53 }
 0xb01   : > { %v7216_v54 = vpack.c.bf16 %v7519_v56, %v7518_v23 }
 0xb03   : > { %7217 = vmatprep.subr.bf16.mxu0 %v7216_v54 }
 0xb04   : > { %v7667_v19 = vpop.eup %7666  ;;  %7219 = vmatpush3.bf16.msra.mxu0 %v7216_v54 }
 0xb05   : > { %v7669_v18 = vpop.eup %7668  ;;  %7222 = vmatprep.subr.msk.bf16.mxu0 %vm8506_vm3, %v7220_v41  ;;  %v2352_v39 = vmul.f32 %v7667_v19, %v7663_v20 }
 0xb06   : > { %v2351_v28 = vmul.f32 %v7669_v18, %v7665_v27 }
 0xb08   : > { %6905 = vmatprep.mubr.msk.f32.mxu0 %vm1208_vm2, %v2351_v28 }
 0xb09   : > { %6906 = vmatmul.mubr.msk.f32.vlgmr.msra.gmra.mrb[12].mxu0 %vm1208_vm2, %v2352_v39 }
 0xb0a   : > { %6912 = vmatprep.mubr.msk.f32.mxu0 %vm1208_vm2, %v1147_v32 }
 0xb0d   : > { %7225 = vmatpush3.bf16.xpose.msk.msra.mxu0 %vm8506_vm3, %v7220_v41 }
 0xb14   : > { %6913 = vmatmul.mubr.msk.f32.vlgmr.msra.gmra.mrb[14].mxu0 %vm1208_vm2, %v1152_v31 }
 0xbdc   : > { %v8702_v40 = vpop.f32.mrb[12].mxu0 }
 0xbdd   : > { %v8704_v42 = vpop.f32.mrb[13].mxu0 }
 0xbe7   : > { %v6914_v43 = vpop.f32.mrb[14].mxu0 }
 0xbe8   : > { %v2544_v22 = vadd.f32 %v6914_v43, %v6445_v25  ;;  %v2538_v46 = vpop.f32.mrb[15].mxu0 }
 0xbe9   : > { %v2539_v47 = vadd.f32 %v6445_v25, %v2538_v46 }
 0xbea   : > { %v2550_v36 = vsel %vm1208_vm2, %v2544_v22, -inf }
 0xbeb   : > { %2551 = vmax.xlane.f32.xlu0 %v2550_v36  ;;  %v2547_v48 = vsel %vm1208_vm2, %v2539_v47, -inf }
 0xbec   : > { %2548 = vmax.xlane.f32.xlu1 %v2547_v48 }
 0xc78   : > { %v2552_v50 = vpop.xlane.xlu0 %2551 }
 0xc79   : > { %v2554_v35 = vsub.f32 %v2544_v22, %v2552_v50  ;;  %v2549_v49 = vpop.xlane.xlu1 %2548 }
 0xc7a   : > { %v2553_v52 = vsub.f32 %v2539_v47, %v2549_v49 }
 0xc7b   : > { %v2557_v20 = vmul.f32 1.442695, %v2554_v35 }
 0xc7c   : > { %v2555_v27 = vmul.f32 1.442695, %v2553_v52 }
 0xc7d   : > { %7670 = vpow2.f32 %v2557_v20 }
 0xc7e   : > { %7672 = vpow2.f32 %v2555_v27 }
 0xc87   : > { %v7671_v30 = vpop.eup %7670 }
 0xc88   : > { %v7673_v17 = vpop.eup %7672  ;;  %v2562_v34 = vsel %vm1208_vm2, %v7671_v30, 0.0 }
 0xc89   : > { %2563 = vadd.xlane.f32.xlu1 %v2562_v34  ;;  %v2559_v24 = vsel %vm1208_vm2, %v7673_v17, 0.0 }
 0xc8a   : > { %2560 = vadd.xlane.f32.xlu0 %v2559_v24 }
 0xc9a   : > { %7531 = vrot.lane.b32.xlu1 %v8688_v33, %s8020_s25 }
 0xc9e   : > { %2658 = vrot.lane.b32.xlu1 %v1147_v32, %s8021_s30 }
 0xca0   : > { %7526 = vrot.lane.b32.xlu0 %v8688_v33, %s8019_s8 }
 0xca4   : > { %2660 = vrot.lane.b32.xlu0 %v1152_v31, %s8021_s30 }
 0xd16   : > { %v2564_v37 = vpop.xlane.xlu1 %2563 }
 0xd17   : > { %7674 = vrcp.f32 %v2564_v37  ;;  %v2561_v26 = vpop.xlane.xlu0 %2560 }
 0xd18   : > { %7676 = vrcp.f32 %v2561_v26 }
 0xd1a   : > { %v7532_v29 = vpop.permute.xlu1 %7531 }
 0xd1b   : > { %v7527_v53 = vpop.permute.xlu0 %7526  ;;  %v7534_v56 = vunpack.i.h.bf16 %v7532_v29  ;;  %v7533_v23 = vunpack.i.l.bf16 %v7532_v29 }
 0xd1c   : > { %v7529_v54 = vunpack.i.h.bf16 %v7527_v53  ;;  %v7528_v41 = vunpack.i.l.bf16 %v7527_v53  ;;  %v1162_v53 = vadd.f32 %v8486_v57, %v8479_v51 }
 0xd1d   : > { %v7230_v18 = vpack.c.bf16 %v7534_v56, %v7533_v23  ;;  %v1157_v56 = vadd.f32 %v8479_v51, %v8490_v58 }
 0xd1e   : > { %v7226_v19 = vpack.c.bf16 %v7529_v54, %v7528_v41  ;;  %v2659_v43 = vpop.permute.xlu1 %2658 }
 0xd1f   : > { %v2661_v22 = vpop.permute.xlu0 %2660  ;;  %v8735_v23 = vpack.i.bf16 %v1162_v53, %v1157_v56 }
 0xd20   : > { %7227 = vmatprep.subr.bf16.mxu1 %v7226_v19 }
 0xd21   : > { %v7675_v28 = vpop.eup %7674  ;;  %7229 = vmatpush3.bf16.msra.mxu1 %v7226_v19 }
 0xd22   : > { %v7677_v32 = vpop.eup %7676  ;;  %7232 = vmatprep.subr.msk.bf16.mxu1 %vm8506_vm3, %v7230_v18  ;;  %v2568_v39 = vmul.f32 %v7675_v28, %v7671_v30 }
 0xd23   : > { %v2567_v31 = vmul.f32 %v7677_v32, %v7673_v17 }
 0xd25   : > { %6919 = vmatprep.mubr.msk.f32.mxu1 %vm1208_vm2, %v2567_v31 }
 0xd26   : > { %6920 = vmatmul.mubr.msk.f32.vlgmr.msra.gmra.mrb[26].mxu1 %vm1208_vm2, %v2568_v39 }
 0xd27   : > { %6926 = vmatprep.mubr.msk.f32.mxu1 %vm1208_vm2, %v2659_v43 }
 0xd2a   : > { %7235 = vmatpush3.bf16.xpose.msk.msra.mxu1 %vm8506_vm3, %v7230_v18 }
 0xd31   : > { %6927 = vmatmul.mubr.msk.f32.vlgmr.msra.gmra.mrb[28].mxu1 %vm1208_vm2, %v2661_v22 }
 0xdf9   : > { %v6921_v46 = vpop.f32.mrb[26].mxu1 }
 0xdfa   : > { %2657 = vst.msk [vmem:[#allocation3 + $0x38] sm:$0xff] %vm1208_vm2, %v6921_v46  ;;  %v2647_v47 = vpop.f32.mrb[27].mxu1 }
 0xdfb   : > { %2656 = vst.msk [vmem:[#allocation3 + $0x30] sm:$0xff] %vm1208_vm2, %v2647_v47 }
 0xe04   : > { %v6928_v36 = vpop.f32.mrb[28].mxu1 }
 0xe05   : > { %v2746_v48 = vadd.f32 %v6928_v36, %v6445_v25  ;;  %v2740_v50 = vpop.f32.mrb[29].mxu1  ;;  %v6459_v36 = vld [vmem:[%s8279_s19 + $0x4] ss:$0 sm:$0xff] }
 0xe06   : > { %v2741_v35 = vadd.f32 %v6445_v25, %v2740_v50 }
 0xe07   : > { %v2752_v49 = vsel %vm1208_vm2, %v2746_v48, -inf }
 0xe08   : > { %2753 = vmax.xlane.f32.xlu0 %v2752_v49  ;;  %v2749_v52 = vsel %vm1208_vm2, %v2741_v35, -inf }
 0xe09   : > { %2750 = vmax.xlane.f32.xlu1 %v2749_v52 }
 0xe95   : > { %v2754_v20 = vpop.xlane.xlu0 %2753 }
 0xe96   : > { %v2756_v27 = vsub.f32 %v2746_v48, %v2754_v20  ;;  %v2751_v30 = vpop.xlane.xlu1 %2750 }
 0xe97   : > { %v2755_v17 = vsub.f32 %v2741_v35, %v2751_v30 }
 0xe98   : > { %v2759_v34 = vmul.f32 1.442695, %v2756_v27 }
 0xe99   : > { %v2757_v24 = vmul.f32 1.442695, %v2755_v17 }
 0xe9a   : > { %7678 = vpow2.f32 %v2759_v34 }
 0xe9b   : > { %7680 = vpow2.f32 %v2757_v24 }
 0xea4   : > { %v7679_v37 = vpop.eup %7678 }
 0xea5   : > { %v7681_v26 = vpop.eup %7680  ;;  %v2764_v29 = vsel %vm1208_vm2, %v7679_v37, 0.0 }
 0xea6   : > { %2765 = vadd.xlane.f32.xlu1 %v2764_v29  ;;  %v2761_v25 = vsel %vm1208_vm2, %v7681_v26, 0.0 }
 0xea7   : > { %2762 = vadd.xlane.f32.xlu0 %v2761_v25 }
 0xeb7   : > { %7541 = vrot.lane.b32.xlu1 %v8735_v23, %s8018_s2 }
 0xebd   : > { %7536 = vrot.lane.b32.xlu0 %v8688_v33, %s8022_s3 }
 0xf33   : > { %v2766_v54 = vpop.xlane.xlu1 %2765 }
 0xf34   : > { %7682 = vrcp.f32 %v2766_v54  ;;  %v2763_v41 = vpop.xlane.xlu0 %2762 }
 0xf35   : > { %7684 = vrcp.f32 %v2763_v41 }
 0xf37   : > { %v7542_v19 = vpop.permute.xlu1 %7541 }
 0xf38   : > { %v7537_v18 = vpop.permute.xlu0 %7536  ;;  %v7544_v28 = vunpack.i.h.bf16 %v7542_v19  ;;  %v7543_v32 = vunpack.i.l.bf16 %v7542_v19 }
 0xf39   : > { %v7539_v57 = vunpack.i.h.bf16 %v7537_v18  ;;  %v7538_v31 = vunpack.i.l.bf16 %v7537_v18 }
 0xf3a   : > { %v7240_v51 = vpack.c.bf16 %v7544_v28, %v7543_v32 }
 0xf3b   : > { %v7236_v39 = vpack.c.bf16 %v7539_v57, %v7538_v31 }
 0xf3d   : > { %7237 = vmatprep.subr.bf16.mxu0 %v7236_v39 }
 0xf3e   : > { %v7683_v58 = vpop.eup %7682  ;;  %7239 = vmatpush3.bf16.msra.mxu0 %v7236_v39 }
 0xf3f   : > { %v7685_v43 = vpop.eup %7684  ;;  %7242 = vmatprep.subr.msk.bf16.mxu0 %vm8506_vm3, %v7240_v51  ;;  %v2770_v22 = vmul.f32 %v7683_v58, %v7679_v37 }
 0xf40   : > { %v2769_v33 = vmul.f32 %v7685_v43, %v7681_v26 }
 0xf42   : > { %6933 = vmatprep.mubr.msk.f32.mxu0 %vm1208_vm2, %v2769_v33 }
 0xf43   : > { %6934 = vmatmul.mubr.msk.f32.vlgmr.msra.gmra.mrb[16].mxu0 %vm1208_vm2, %v2770_v22 }
 0xf44   : > { %6940 = vmatprep.mubr.msk.f32.mxu0 %vm1208_vm2, %v1157_v56 }
 0xf47   : > { %7245 = vmatpush3.bf16.xpose.msk.msra.mxu0 %vm8506_vm3, %v7240_v51 }
 0xf4e   : > { %6941 = vmatmul.mubr.msk.f32.vlgmr.msra.gmra.mrb[18].mxu0 %vm1208_vm2, %v1162_v53 }
0x1016   : > { %v8749_v46 = vpop.f32.mrb[16].mxu0 }
0x1017   : > { %v8751_v47 = vpop.f32.mrb[17].mxu0 }
0x1021   : > { %v6942_v48 = vpop.f32.mrb[18].mxu0 }
0x1022   : > { %v2962_v50 = vadd.f32 %v6942_v48, %v6459_v36  ;;  %v2956_v35 = vpop.f32.mrb[19].mxu0 }
0x1023   : > { %v2957_v49 = vadd.f32 %v6459_v36, %v2956_v35 }
0x1024   : > { %v2968_v52 = vsel %vm1208_vm2, %v2962_v50, -inf }
0x1025   : > { %2969 = vmax.xlane.f32.xlu0 %v2968_v52  ;;  %v2965_v20 = vsel %vm1208_vm2, %v2957_v49, -inf }
0x1026   : > { %2966 = vmax.xlane.f32.xlu1 %v2965_v20 }
0x10b2   : > { %v2970_v27 = vpop.xlane.xlu0 %2969 }
0x10b3   : > { %v2972_v30 = vsub.f32 %v2962_v50, %v2970_v27  ;;  %v2967_v17 = vpop.xlane.xlu1 %2966 }
0x10b4   : > { %v2971_v34 = vsub.f32 %v2957_v49, %v2967_v17 }
0x10b5   : > { %v2975_v24 = vmul.f32 1.442695, %v2972_v30 }
0x10b6   : > { %v2973_v37 = vmul.f32 1.442695, %v2971_v34 }
0x10b7   : > { %7686 = vpow2.f32 %v2975_v24 }
0x10b8   : > { %7688 = vpow2.f32 %v2973_v37 }
0x10c1   : > { %v7687_v26 = vpop.eup %7686 }
0x10c2   : > { %v7689_v29 = vpop.eup %7688  ;;  %v2980_v25 = vsel %vm1208_vm2, %v7687_v26, 0.0 }
0x10c3   : > { %2981 = vadd.xlane.f32.xlu1 %v2980_v25  ;;  %v2977_v54 = vsel %vm1208_vm2, %v7689_v29, 0.0 }
0x10c4   : > { %2978 = vadd.xlane.f32.xlu0 %v2977_v54 }
0x10d4   : > { %7551 = vrot.lane.b32.xlu1 %v8735_v23, %s8020_s25 }
0x10d8   : > { %3076 = vrot.lane.b32.xlu1 %v1157_v56, %s8021_s30 }
0x10da   : > { %7546 = vrot.lane.b32.xlu0 %v8735_v23, %s8019_s8 }
0x10de   : > { %3078 = vrot.lane.b32.xlu0 %v1162_v53, %s8021_s30 }
0x1150   : > { %v2982_v41 = vpop.xlane.xlu1 %2981 }
0x1151   : > { %7690 = vrcp.f32 %v2982_v41  ;;  %v2979_v19 = vpop.xlane.xlu0 %2978 }
0x1152   : > { %7692 = vrcp.f32 %v2979_v19 }
0x1154   : > { %v7552_v18 = vpop.permute.xlu1 %7551 }
0x1155   : > { %v7547_v28 = vpop.permute.xlu0 %7546  ;;  %v7554_v32 = vunpack.i.h.bf16 %v7552_v18  ;;  %v7553_v57 = vunpack.i.l.bf16 %v7552_v18  ;;  %v8779_v18 = vld [vmem:[%s8332_s17] ss:$0 sm:$0xff]  ;;  %s9899_s17 = scalar_lea.vmem %s9815_s7, %s8313_s20 }
0x1156   : > { %v7549_v31 = vunpack.i.h.bf16 %v7547_v28  ;;  %v7548_v39 = vunpack.i.l.bf16 %v7547_v28  ;;  %v1172_v28 = vadd.f32 %v8779_v18, %v8492_v59 }
0x1157   : > { %v7250_v58 = vpack.c.bf16 %v7554_v32, %v7553_v57  ;;  %v1167_v32 = vadd.f32 %v8779_v18, %v8494_v60 }
0x1158   : > { %v7246_v51 = vpack.c.bf16 %v7549_v31, %v7548_v39  ;;  %v3077_v22 = vpop.permute.xlu1 %3076 }
0x1159   : > { %v3079_v48 = vpop.permute.xlu0 %3078  ;;  %v8785_v57 = vpack.i.bf16 %v1172_v28, %v1167_v32 }
0x115a   : > { %7247 = vmatprep.subr.bf16.mxu1 %v7246_v51 }
0x115b   : > { %v7691_v43 = vpop.eup %7690  ;;  %7249 = vmatpush3.bf16.msra.mxu1 %v7246_v51 }
0x115c   : > { %v7693_v56 = vpop.eup %7692  ;;  %7252 = vmatprep.subr.msk.bf16.mxu1 %vm8506_vm3, %v7250_v58  ;;  %v2986_v33 = vmul.f32 %v7691_v43, %v7687_v26 }
0x115d   : > { %v2985_v53 = vmul.f32 %v7693_v56, %v7689_v29 }
0x115f   : > { %6947 = vmatprep.mubr.msk.f32.mxu1 %vm1208_vm2, %v2985_v53 }
0x1160   : > { %6948 = vmatmul.mubr.msk.f32.vlgmr.msra.gmra.mrb[30].mxu1 %vm1208_vm2, %v2986_v33 }
0x1161   : > { %6954 = vmatprep.mubr.msk.f32.mxu1 %vm1208_vm2, %v3077_v22 }
0x1164   : > { %7255 = vmatpush3.bf16.xpose.msk.msra.mxu1 %vm8506_vm3, %v7250_v58 }
0x116b   : > { %6955 = vmatmul.mubr.msk.f32.vlgmr.msra.gmra.mrb[32].mxu1 %vm1208_vm2, %v3079_v48 }
0x1233   : > { %v6949_v50 = vpop.f32.mrb[30].mxu1 }
0x1234   : > { %3075 = vst.msk [vmem:[#allocation3 + $0x48] sm:$0xff] %vm1208_vm2, %v6949_v50  ;;  %v3065_v35 = vpop.f32.mrb[31].mxu1 }
0x1235   : > { %3074 = vst.msk [vmem:[#allocation3 + $0x40] sm:$0xff] %vm1208_vm2, %v3065_v35 }
0x123e   : > { %v6956_v49 = vpop.f32.mrb[32].mxu1 }
0x123f   : > { %v3164_v52 = vadd.f32 %v6956_v49, %v6459_v36  ;;  %v3158_v20 = vpop.f32.mrb[33].mxu1 }
0x1240   : > { %v3159_v27 = vadd.f32 %v6459_v36, %v3158_v20 }
0x1241   : > { %v3170_v30 = vsel %vm1208_vm2, %v3164_v52, -inf }
0x1242   : > { %3171 = vmax.xlane.f32.xlu0 %v3170_v30  ;;  %v3167_v17 = vsel %vm1208_vm2, %v3159_v27, -inf }
0x1243   : > { %3168 = vmax.xlane.f32.xlu1 %v3167_v17 }
0x12cf   : > { %v3172_v34 = vpop.xlane.xlu0 %3171 }
0x12d0   : > { %v3174_v24 = vsub.f32 %v3164_v52, %v3172_v34  ;;  %v3169_v37 = vpop.xlane.xlu1 %3168  ;;  %v6473_v52 = vld [vmem:[%s8279_s19 + $0x5] ss:$0 sm:$0xff] }
0x12d1   : > { %v3173_v26 = vsub.f32 %v3159_v27, %v3169_v37 }
0x12d2   : > { %v3177_v29 = vmul.f32 1.442695, %v3174_v24 }
0x12d3   : > { %v3175_v25 = vmul.f32 1.442695, %v3173_v26 }
0x12d4   : > { %7694 = vpow2.f32 %v3177_v29 }
0x12d5   : > { %7696 = vpow2.f32 %v3175_v25 }
0x12de   : > { %v7695_v54 = vpop.eup %7694 }
0x12df   : > { %v7697_v41 = vpop.eup %7696  ;;  %v3182_v19 = vsel %vm1208_vm2, %v7695_v54, 0.0 }
0x12e0   : > { %3183 = vadd.xlane.f32.xlu1 %v3182_v19  ;;  %v3179_v36 = vsel %vm1208_vm2, %v7697_v41, 0.0 }
0x12e1   : > { %3180 = vadd.xlane.f32.xlu0 %v3179_v36 }
0x12f1   : > { %7561 = vrot.lane.b32.xlu1 %v8785_v57, %s8018_s2 }
0x12f7   : > { %7556 = vrot.lane.b32.xlu0 %v8735_v23, %s8022_s3 }
0x136d   : > { %v3184_v31 = vpop.xlane.xlu1 %3183 }
0x136e   : > { %7698 = vrcp.f32 %v3184_v31  ;;  %v3181_v39 = vpop.xlane.xlu0 %3180 }
0x136f   : > { %7700 = vrcp.f32 %v3181_v39 }
0x1371   : > { %v7562_v51 = vpop.permute.xlu1 %7561 }
0x1372   : > { %v7557_v58 = vpop.permute.xlu0 %7556  ;;  %v7564_v43 = vunpack.i.h.bf16 %v7562_v51  ;;  %v7563_v56 = vunpack.i.l.bf16 %v7562_v51 }
0x1373   : > { %v7559_v59 = vunpack.i.h.bf16 %v7557_v58  ;;  %v7558_v53 = vunpack.i.l.bf16 %v7557_v58 }
0x1374   : > { %v7260_v60 = vpack.c.bf16 %v7564_v43, %v7563_v56 }
0x1375   : > { %v7256_v33 = vpack.c.bf16 %v7559_v59, %v7558_v53 }
0x1377   : > { %7257 = vmatprep.subr.bf16.mxu0 %v7256_v33 }
0x1378   : > { %v7699_v22 = vpop.eup %7698  ;;  %7259 = vmatpush3.bf16.msra.mxu0 %v7256_v33 }
0x1379   : > { %v7701_v48 = vpop.eup %7700  ;;  %7262 = vmatprep.subr.msk.bf16.mxu0 %vm8506_vm3, %v7260_v60  ;;  %v3188_v50 = vmul.f32 %v7699_v22, %v7695_v54 }
0x137a   : > { %v3187_v23 = vmul.f32 %v7701_v48, %v7697_v41 }
0x137c   : > { %6961 = vmatprep.mubr.msk.f32.mxu0 %vm1208_vm2, %v3187_v23 }
0x137d   : > { %6962 = vmatmul.mubr.msk.f32.vlgmr.msra.gmra.mrb[20].mxu0 %vm1208_vm2, %v3188_v50 }
0x137e   : > { %6968 = vmatprep.mubr.msk.f32.mxu0 %vm1208_vm2, %v1167_v32 }
0x1381   : > { %7265 = vmatpush3.bf16.xpose.msk.msra.mxu0 %vm8506_vm3, %v7260_v60 }
0x1388   : > { %6969 = vmatmul.mubr.msk.f32.vlgmr.msra.gmra.mrb[22].mxu0 %vm1208_vm2, %v1172_v28 }
0x1450   : > { %v8799_v35 = vpop.f32.mrb[20].mxu0 }
0x1451   : > { %v8801_v49 = vpop.f32.mrb[21].mxu0 }
0x145b   : > { %v6970_v20 = vpop.f32.mrb[22].mxu0 }
0x145c   : > { %v3380_v27 = vadd.f32 %v6970_v20, %v6473_v52  ;;  %v3374_v30 = vpop.f32.mrb[23].mxu0 }
0x145d   : > { %v3375_v17 = vadd.f32 %v6473_v52, %v3374_v30 }
0x145e   : > { %v3386_v34 = vsel %vm1208_vm2, %v3380_v27, -inf }
0x145f   : > { %3387 = vmax.xlane.f32.xlu0 %v3386_v34  ;;  %v3383_v24 = vsel %vm1208_vm2, %v3375_v17, -inf }
0x1460   : > { %3384 = vmax.xlane.f32.xlu1 %v3383_v24 }
0x14ec   : > { %v3388_v37 = vpop.xlane.xlu0 %3387 }
0x14ed   : > { %v3390_v26 = vsub.f32 %v3380_v27, %v3388_v37  ;;  %v3385_v29 = vpop.xlane.xlu1 %3384 }
0x14ee   : > { %v3389_v25 = vsub.f32 %v3375_v17, %v3385_v29 }
0x14ef   : > { %v3393_v54 = vmul.f32 1.442695, %v3390_v26 }
0x14f0   : > { %v3391_v41 = vmul.f32 1.442695, %v3389_v25 }
0x14f1   : > { %7702 = vpow2.f32 %v3393_v54 }
0x14f2   : > { %7704 = vpow2.f32 %v3391_v41 }
0x14fb   : > { %v7703_v19 = vpop.eup %7702 }
0x14fc   : > { %v7705_v36 = vpop.eup %7704  ;;  %v3398_v31 = vsel %vm1208_vm2, %v7703_v19, 0.0 }
0x14fd   : > { %3399 = vadd.xlane.f32.xlu1 %v3398_v31  ;;  %v3395_v39 = vsel %vm1208_vm2, %v7705_v36, 0.0 }
0x14fe   : > { %3396 = vadd.xlane.f32.xlu0 %v3395_v39 }
0x150e   : > { %7571 = vrot.lane.b32.xlu1 %v8785_v57, %s8020_s25 }
0x1512   : > { %3494 = vrot.lane.b32.xlu1 %v1167_v32, %s8021_s30 }
0x1514   : > { %7566 = vrot.lane.b32.xlu0 %v8785_v57, %s8019_s8 }
0x1518   : > { %3496 = vrot.lane.b32.xlu0 %v1172_v28, %s8021_s30 }
0x158a   : > { %v3400_v51 = vpop.xlane.xlu1 %3399 }
0x158b   : > { %7706 = vrcp.f32 %v3400_v51  ;;  %v3397_v58 = vpop.xlane.xlu0 %3396 }
0x158c   : > { %7708 = vrcp.f32 %v3397_v58 }
0x158e   : > { %v7572_v43 = vpop.permute.xlu1 %7571 }
0x158f   : > { %v7567_v56 = vpop.permute.xlu0 %7566  ;;  %v7574_v59 = vunpack.i.h.bf16 %v7572_v43  ;;  %v7573_v53 = vunpack.i.l.bf16 %v7572_v43 }
0x1590   : > { %v7569_v33 = vunpack.i.h.bf16 %v7567_v56  ;;  %v7568_v60 = vunpack.i.l.bf16 %v7567_v56  ;;  %v1182_v56 = vadd.f32 %v8779_v18, %v8496_v61 }
0x1591   : > { %v7270_v48 = vpack.c.bf16 %v7574_v59, %v7573_v53  ;;  %v1177_v59 = vadd.f32 %v8779_v18, %v8498_v62 }
0x1592   : > { %v7266_v22 = vpack.c.bf16 %v7569_v33, %v7568_v60  ;;  %v3495_v20 = vpop.permute.xlu1 %3494 }
0x1593   : > { %v3497_v27 = vpop.permute.xlu0 %3496  ;;  %v8832_v53 = vpack.i.bf16 %v1182_v56, %v1177_v59 }
0x1594   : > { %7267 = vmatprep.subr.bf16.mxu1 %v7266_v22 }
0x1595   : > { %v7707_v23 = vpop.eup %7706  ;;  %7269 = vmatpush3.bf16.msra.mxu1 %v7266_v22 }
0x1596   : > { %v7709_v32 = vpop.eup %7708  ;;  %7272 = vmatprep.subr.msk.bf16.mxu1 %vm8506_vm3, %v7270_v48  ;;  %v3404_v50 = vmul.f32 %v7707_v23, %v7703_v19 }
0x1597   : > { %v3403_v28 = vmul.f32 %v7709_v32, %v7705_v36 }
0x1599   : > { %6975 = vmatprep.mubr.msk.f32.mxu1 %vm1208_vm2, %v3403_v28 }
0x159a   : > { %6976 = vmatmul.mubr.msk.f32.vlgmr.msra.gmra.mrb[34].mxu1 %vm1208_vm2, %v3404_v50 }
0x159b   : > { %6982 = vmatprep.mubr.msk.f32.mxu1 %vm1208_vm2, %v3495_v20 }
0x159e   : > { %7275 = vmatpush3.bf16.xpose.msk.msra.mxu1 %vm8506_vm3, %v7270_v48 }
0x15a5   : > { %6983 = vmatmul.mubr.msk.f32.vlgmr.msra.gmra.mrb[36].mxu1 %vm1208_vm2, %v3497_v27 }
0x166d   : > { %v6977_v30 = vpop.f32.mrb[34].mxu1 }
0x166e   : > { %3493 = vst.msk [vmem:[#allocation3 + $0x58] sm:$0xff] %vm1208_vm2, %v6977_v30  ;;  %v3483_v17 = vpop.f32.mrb[35].mxu1 }
0x166f   : > { %3492 = vst.msk [vmem:[#allocation3 + $0x50] sm:$0xff] %vm1208_vm2, %v3483_v17 }
0x1678   : > { %v6984_v34 = vpop.f32.mrb[36].mxu1 }
0x1679   : > { %v3582_v24 = vadd.f32 %v6984_v34, %v6473_v52  ;;  %v3576_v37 = vpop.f32.mrb[37].mxu1 }
0x167a   : > { %v3577_v26 = vadd.f32 %v6473_v52, %v3576_v37 }
0x167b   : > { %v3588_v29 = vsel %vm1208_vm2, %v3582_v24, -inf }
0x167c   : > { %3589 = vmax.xlane.f32.xlu0 %v3588_v29  ;;  %v3585_v25 = vsel %vm1208_vm2, %v3577_v26, -inf }
0x167d   : > { %3586 = vmax.xlane.f32.xlu1 %v3585_v25 }
0x1709   : > { %v3590_v54 = vpop.xlane.xlu0 %3589 }
0x170a   : > { %v3592_v41 = vsub.f32 %v3582_v24, %v3590_v54  ;;  %v3587_v19 = vpop.xlane.xlu1 %3586  ;;  %v6487_v24 = vld [vmem:[%s8279_s19 + $0x6] ss:$0 sm:$0xff] }
0x170b   : > { %v3591_v36 = vsub.f32 %v3577_v26, %v3587_v19 }
0x170c   : > { %v3595_v31 = vmul.f32 1.442695, %v3592_v41 }
0x170d   : > { %v3593_v39 = vmul.f32 1.442695, %v3591_v36 }
0x170e   : > { %7710 = vpow2.f32 %v3595_v31 }
0x170f   : > { %7712 = vpow2.f32 %v3593_v39 }
0x1718   : > { %v7711_v51 = vpop.eup %7710 }
0x1719   : > { %v7713_v58 = vpop.eup %7712  ;;  %v3600_v43 = vsel %vm1208_vm2, %v7711_v51, 0.0 }
0x171a   : > { %3601 = vadd.xlane.f32.xlu1 %v3600_v43  ;;  %v3597_v52 = vsel %vm1208_vm2, %v7713_v58, 0.0 }
0x171b   : > { %3598 = vadd.xlane.f32.xlu0 %v3597_v52 }
0x172b   : > { %7581 = vrot.lane.b32.xlu1 %v8832_v53, %s8018_s2 }
0x1731   : > { %7576 = vrot.lane.b32.xlu0 %v8785_v57, %s8022_s3 }
0x17a7   : > { %v3602_v33 = vpop.xlane.xlu1 %3601 }
0x17a8   : > { %7714 = vrcp.f32 %v3602_v33  ;;  %v3599_v60 = vpop.xlane.xlu0 %3598 }
0x17a9   : > { %7716 = vrcp.f32 %v3599_v60 }
0x17ab   : > { %v7582_v22 = vpop.permute.xlu1 %7581 }
0x17ac   : > { %v7577_v48 = vpop.permute.xlu0 %7576  ;;  %v7584_v23 = vunpack.i.h.bf16 %v7582_v22  ;;  %v7583_v32 = vunpack.i.l.bf16 %v7582_v22 }
0x17ad   : > { %v7579_v61 = vunpack.i.h.bf16 %v7577_v48  ;;  %v7578_v28 = vunpack.i.l.bf16 %v7577_v48 }
0x17ae   : > { %v7280_v62 = vpack.c.bf16 %v7584_v23, %v7583_v32 }
0x17af   : > { %v7276_v50 = vpack.c.bf16 %v7579_v61, %v7578_v28 }
0x17b1   : > { %7277 = vmatprep.subr.bf16.mxu0 %v7276_v50 }
0x17b2   : > { %v7715_v20 = vpop.eup %7714  ;;  %7279 = vmatpush3.bf16.msra.mxu0 %v7276_v50 }
0x17b3   : > { %v7717_v27 = vpop.eup %7716  ;;  %7282 = vmatprep.subr.msk.bf16.mxu0 %vm8506_vm3, %v7280_v62  ;;  %v3606_v30 = vmul.f32 %v7715_v20, %v7711_v51 }
0x17b4   : > { %v3605_v57 = vmul.f32 %v7717_v27, %v7713_v58 }
0x17b6   : > { %6989 = vmatprep.mubr.msk.f32.mxu0 %vm1208_vm2, %v3605_v57 }
0x17b7   : > { %6990 = vmatmul.mubr.msk.f32.vlgmr.msra.gmra.mrb[24].mxu0 %vm1208_vm2, %v3606_v30 }
0x17b8   : > { %6996 = vmatprep.mubr.msk.f32.mxu0 %vm1208_vm2, %v1177_v59 }
0x17bb   : > { %7285 = vmatpush3.bf16.xpose.msk.msra.mxu0 %vm8506_vm3, %v7280_v62 }
0x17c2   : > { %6997 = vmatmul.mubr.msk.f32.vlgmr.msra.gmra.mrb[26].mxu0 %vm1208_vm2, %v1182_v56 }
0x188a   : > { %v8846_v17 = vpop.f32.mrb[24].mxu0 }
0x188b   : > { %v8848_v34 = vpop.f32.mrb[25].mxu0 }
0x1895   : > { %v6998_v37 = vpop.f32.mrb[26].mxu0 }
0x1896   : > { %v3798_v26 = vadd.f32 %v6998_v37, %v6487_v24  ;;  %v3792_v29 = vpop.f32.mrb[27].mxu0 }
0x1897   : > { %v3793_v25 = vadd.f32 %v6487_v24, %v3792_v29 }
0x1898   : > { %v3804_v54 = vsel %vm1208_vm2, %v3798_v26, -inf }
0x1899   : > { %3805 = vmax.xlane.f32.xlu0 %v3804_v54  ;;  %v3801_v41 = vsel %vm1208_vm2, %v3793_v25, -inf }
0x189a   : > { %3802 = vmax.xlane.f32.xlu1 %v3801_v41 }
0x1926   : > { %v3806_v19 = vpop.xlane.xlu0 %3805 }
0x1927   : > { %v3808_v36 = vsub.f32 %v3798_v26, %v3806_v19  ;;  %v3803_v31 = vpop.xlane.xlu1 %3802 }
0x1928   : > { %v3807_v39 = vsub.f32 %v3793_v25, %v3803_v31 }
0x1929   : > { %v3811_v51 = vmul.f32 1.442695, %v3808_v36 }
0x192a   : > { %v3809_v58 = vmul.f32 1.442695, %v3807_v39 }
0x192b   : > { %7718 = vpow2.f32 %v3811_v51 }
0x192c   : > { %7720 = vpow2.f32 %v3809_v58 }
0x1935   : > { %v7719_v43 = vpop.eup %7718 }
0x1936   : > { %v7721_v52 = vpop.eup %7720  ;;  %v3816_v33 = vsel %vm1208_vm2, %v7719_v43, 0.0 }
0x1937   : > { %3817 = vadd.xlane.f32.xlu1 %v3816_v33  ;;  %v3813_v60 = vsel %vm1208_vm2, %v7721_v52, 0.0 }
0x1938   : > { %3814 = vadd.xlane.f32.xlu0 %v3813_v60 }
0x1948   : > { %7591 = vrot.lane.b32.xlu1 %v8832_v53, %s8020_s25 }
0x194c   : > { %3912 = vrot.lane.b32.xlu1 %v1177_v59, %s8021_s30 }
0x194e   : > { %7586 = vrot.lane.b32.xlu0 %v8832_v53, %s8019_s8 }
0x1952   : > { %3914 = vrot.lane.b32.xlu0 %v1182_v56, %s8021_s30 }
0x19c4   : > { %v3818_v22 = vpop.xlane.xlu1 %3817 }
0x19c5   : > { %7722 = vrcp.f32 %v3818_v22  ;;  %v3815_v48 = vpop.xlane.xlu0 %3814 }
0x19c6   : > { %7724 = vrcp.f32 %v3815_v48 }
0x19c8   : > { %v7592_v23 = vpop.permute.xlu1 %7591 }
0x19c9   : > { %v7587_v32 = vpop.permute.xlu0 %7586  ;;  %v7594_v61 = vunpack.i.h.bf16 %v7592_v23  ;;  %v7593_v28 = vunpack.i.l.bf16 %v7592_v23 }
0x19ca   : > { %v7589_v50 = vunpack.i.h.bf16 %v7587_v32  ;;  %v7588_v62 = vunpack.i.l.bf16 %v7587_v32  ;;  %v1192_v32 = vadd.f32 %v8779_v18, %v8500_v63 }
0x19cb   : > { %v7290_v27 = vpack.c.bf16 %v7594_v61, %v7593_v28  ;;  %v1187_v61 = vadd.f32 %v8779_v18, %v8502_v16 }
0x19cc   : > { %v7286_v20 = vpack.c.bf16 %v7589_v50, %v7588_v62  ;;  %v3913_v37 = vpop.permute.xlu1 %3912 }
0x19cd   : > { %v3915_v26 = vpop.permute.xlu0 %3914  ;;  %v8879_v28 = vpack.i.bf16 %v1192_v32, %v1187_v61 }
0x19ce   : > { %7287 = vmatprep.subr.bf16.mxu1 %v7286_v20 }
0x19cf   : > { %v7723_v57 = vpop.eup %7722  ;;  %7289 = vmatpush3.bf16.msra.mxu1 %v7286_v20 }
0x19d0   : > { %v7725_v59 = vpop.eup %7724  ;;  %7292 = vmatprep.subr.msk.bf16.mxu1 %vm8506_vm3, %v7290_v27  ;;  %v3822_v30 = vmul.f32 %v7723_v57, %v7719_v43 }
0x19d1   : > { %v3821_v56 = vmul.f32 %v7725_v59, %v7721_v52 }
0x19d3   : > { %7003 = vmatprep.mubr.msk.f32.mxu1 %vm1208_vm2, %v3821_v56 }
0x19d4   : > { %7004 = vmatmul.mubr.msk.f32.vlgmr.msra.gmra.mrb[38].mxu1 %vm1208_vm2, %v3822_v30 }
0x19d5   : > { %7010 = vmatprep.mubr.msk.f32.mxu1 %vm1208_vm2, %v3913_v37 }
0x19d8   : > { %7295 = vmatpush3.bf16.xpose.msk.msra.mxu1 %vm8506_vm3, %v7290_v27 }
0x19df   : > { %7011 = vmatmul.mubr.msk.f32.vlgmr.msra.gmra.mrb[40].mxu1 %vm1208_vm2, %v3915_v26 }
0x1aa7   : > { %v7005_v29 = vpop.f32.mrb[38].mxu1 }
0x1aa8   : > { %3911 = vst.msk [vmem:[#allocation3 + $0x68] sm:$0xff] %vm1208_vm2, %v7005_v29  ;;  %v3901_v25 = vpop.f32.mrb[39].mxu1 }
0x1aa9   : > { %3910 = vst.msk [vmem:[#allocation3 + $0x60] sm:$0xff] %vm1208_vm2, %v3901_v25 }
0x1ab2   : > { %v7012_v54 = vpop.f32.mrb[40].mxu1 }
0x1ab3   : > { %v4000_v41 = vadd.f32 %v7012_v54, %v6487_v24  ;;  %v3994_v19 = vpop.f32.mrb[41].mxu1  ;;  %v6501_v54 = vld [vmem:[%s8279_s19 + $0x7] ss:$0 sm:$0xff]  ;;  %s8023_s19 = smov 16  }
0x1ab4   : > { %v3995_v36 = vadd.f32 %v6487_v24, %v3994_v19 }
0x1ab5   : > { %v4006_v31 = vsel %vm1208_vm2, %v4000_v41, -inf }
0x1ab6   : > { %4007 = vmax.xlane.f32.xlu0 %v4006_v31  ;;  %v4003_v39 = vsel %vm1208_vm2, %v3995_v36, -inf }
0x1ab7   : > { %4004 = vmax.xlane.f32.xlu1 %v4003_v39 }
0x1b43   : > { %v4008_v51 = vpop.xlane.xlu0 %4007 }
0x1b44   : > { %v4010_v58 = vsub.f32 %v4000_v41, %v4008_v51  ;;  %v4005_v43 = vpop.xlane.xlu1 %4004 }
0x1b45   : > { %v4009_v52 = vsub.f32 %v3995_v36, %v4005_v43 }
0x1b46   : > { %v4013_v33 = vmul.f32 1.442695, %v4010_v58 }
0x1b47   : > { %v4011_v60 = vmul.f32 1.442695, %v4009_v52 }
0x1b48   : > { %7726 = vpow2.f32 %v4013_v33 }
0x1b49   : > { %7728 = vpow2.f32 %v4011_v60 }
0x1b52   : > { %v7727_v22 = vpop.eup %7726 }
0x1b53   : > { %v7729_v48 = vpop.eup %7728  ;;  %v4018_v23 = vsel %vm1208_vm2, %v7727_v22, 0.0 }
0x1b54   : > { %4019 = vadd.xlane.f32.xlu1 %v4018_v23  ;;  %v4015_v24 = vsel %vm1208_vm2, %v7729_v48, 0.0 }
0x1b55   : > { %4016 = vadd.xlane.f32.xlu0 %v4015_v24 }
0x1b65   : > { %7601 = vrot.lane.b32.xlu1 %v8879_v28, %s8018_s2 }
0x1b6b   : > { %7596 = vrot.lane.b32.xlu0 %v8832_v53, %s8022_s3 }
0x1be1   : > { %v4020_v50 = vpop.xlane.xlu1 %4019 }
0x1be2   : > { %7730 = vrcp.f32 %v4020_v50  ;;  %v4017_v62 = vpop.xlane.xlu0 %4016 }
0x1be3   : > { %7732 = vrcp.f32 %v4017_v62 }
0x1be5   : > { %v7602_v20 = vpop.permute.xlu1 %7601 }
0x1be6   : > { %v7597_v27 = vpop.permute.xlu0 %7596  ;;  %v7604_v57 = vunpack.i.h.bf16 %v7602_v20  ;;  %v7603_v59 = vunpack.i.l.bf16 %v7602_v20 }
0x1be7   : > { %v7599_v63 = vunpack.i.h.bf16 %v7597_v27  ;;  %v7598_v56 = vunpack.i.l.bf16 %v7597_v27 }
0x1be8   : > { %v7300_v16 = vpack.c.bf16 %v7604_v57, %v7603_v59 }
0x1be9   : > { %v7296_v30 = vpack.c.bf16 %v7599_v63, %v7598_v56 }
0x1beb   : > { %7297 = vmatprep.subr.bf16.mxu0 %v7296_v30 }
0x1bec   : > { %v7731_v18 = vpop.eup %7730  ;;  %7299 = vmatpush3.bf16.msra.mxu0 %v7296_v30 }
0x1bed   : > { %v7733_v37 = vpop.eup %7732  ;;  %7302 = vmatprep.subr.msk.bf16.mxu0 %vm8506_vm3, %v7300_v16  ;;  %v4024_v26 = vmul.f32 %v7731_v18, %v7727_v22 }
0x1bee   : > { %v4023_v53 = vmul.f32 %v7733_v37, %v7729_v48 }
0x1bf0   : > { %7017 = vmatprep.mubr.msk.f32.mxu0 %vm1208_vm2, %v4023_v53 }
0x1bf1   : > { %7018 = vmatmul.mubr.msk.f32.vlgmr.msra.gmra.mrb[28].mxu0 %vm1208_vm2, %v4024_v26 }
0x1bf2   : > { %7024 = vmatprep.mubr.msk.f32.mxu0 %vm1208_vm2, %v1187_v61 }
0x1bf5   : > { %7305 = vmatpush3.bf16.xpose.msk.msra.mxu0 %vm8506_vm3, %v7300_v16 }
0x1bfc   : > { %7025 = vmatmul.mubr.msk.f32.vlgmr.msra.gmra.mrb[30].mxu0 %vm1208_vm2, %v1192_v32 }
0x1cc4   : > { %v8893_v29 = vpop.f32.mrb[28].mxu0 }
0x1cc5   : > { %v8895_v25 = vpop.f32.mrb[29].mxu0 }
0x1ccf   : > { %v7026_v41 = vpop.f32.mrb[30].mxu0 }
0x1cd0   : > { %v4216_v19 = vadd.f32 %v7026_v41, %v6501_v54  ;;  %v4210_v36 = vpop.f32.mrb[31].mxu0 }
0x1cd1   : > { %v4211_v31 = vadd.f32 %v6501_v54, %v4210_v36 }
0x1cd2   : > { %v4222_v39 = vsel %vm1208_vm2, %v4216_v19, -inf }
0x1cd3   : > { %4223 = vmax.xlane.f32.xlu0 %v4222_v39  ;;  %v4219_v51 = vsel %vm1208_vm2, %v4211_v31, -inf }
0x1cd4   : > { %4220 = vmax.xlane.f32.xlu1 %v4219_v51 }
0x1d60   : > { %v4224_v58 = vpop.xlane.xlu0 %4223 }
0x1d61   : > { %v4226_v43 = vsub.f32 %v4216_v19, %v4224_v58  ;;  %v4221_v52 = vpop.xlane.xlu1 %4220 }
0x1d62   : > { %v4225_v33 = vsub.f32 %v4211_v31, %v4221_v52 }
0x1d63   : > { %v4229_v60 = vmul.f32 1.442695, %v4226_v43 }
0x1d64   : > { %v4227_v22 = vmul.f32 1.442695, %v4225_v33 }
0x1d65   : > { %7734 = vpow2.f32 %v4229_v60 }
0x1d66   : > { %7736 = vpow2.f32 %v4227_v22 }
0x1d6f   : > { %v7735_v48 = vpop.eup %7734 }
0x1d70   : > { %v7737_v23 = vpop.eup %7736  ;;  %v4234_v24 = vsel %vm1208_vm2, %v7735_v48, 0.0 }
0x1d71   : > { %4235 = vadd.xlane.f32.xlu1 %v4234_v24  ;;  %v4231_v50 = vsel %vm1208_vm2, %v7737_v23, 0.0 }
0x1d72   : > { %4232 = vadd.xlane.f32.xlu0 %v4231_v50 }
0x1d82   : > { %7611 = vrot.lane.b32.xlu1 %v8879_v28, %s8020_s25 }
0x1d86   : > { %4330 = vrot.lane.b32.xlu1 %v1187_v61, %s8021_s30 }
0x1d88   : > { %7606 = vrot.lane.b32.xlu0 %v8879_v28, %s8019_s8  ;;  %s9906_s8 = scalar_lea.vmem %s9818_s10, %s8313_s20 }
0x1d8c   : > { %4332 = vrot.lane.b32.xlu0 %v1192_v32, %s8021_s30 }
0x1dfe   : > { %v4236_v62 = vpop.xlane.xlu1 %4235 }
0x1dff   : > { %7738 = vrcp.f32 %v4236_v62  ;;  %v4233_v20 = vpop.xlane.xlu0 %4232 }
0x1e00   : > { %7740 = vrcp.f32 %v4233_v20 }
0x1e02   : > { %v7612_v27 = vpop.permute.xlu1 %7611 }
0x1e03   : > { %v7607_v57 = vpop.permute.xlu0 %7606  ;;  %v7614_v59 = vunpack.i.h.bf16 %v7612_v27  ;;  %v7613_v63 = vunpack.i.l.bf16 %v7612_v27 }
0x1e04   : > { %v7609_v56 = vunpack.i.h.bf16 %v7607_v57  ;;  %v7608_v30 = vunpack.i.l.bf16 %v7607_v57 }
0x1e05   : > { %v7310_v18 = vpack.c.bf16 %v7614_v59, %v7613_v63 }
0x1e06   : > { %v7306_v16 = vpack.c.bf16 %v7609_v56, %v7608_v30  ;;  %v4331_v26 = vpop.permute.xlu1 %4330 }
0x1e07   : > { %v4333_v41 = vpop.permute.xlu0 %4332 }
0x1e08   : > { %7307 = vmatprep.subr.bf16.mxu1 %v7306_v16 }
0x1e09   : > { %v7739_v37 = vpop.eup %7738  ;;  %7309 = vmatpush3.bf16.msra.mxu1 %v7306_v16 }
0x1e0a   : > { %v7741_v61 = vpop.eup %7740  ;;  %7312 = vmatprep.subr.msk.bf16.mxu1 %vm8506_vm3, %v7310_v18  ;;  %v4240_v53 = vmul.f32 %v7739_v37, %v7735_v48 }
0x1e0b   : > { %v4239_v32 = vmul.f32 %v7741_v61, %v7737_v23 }
0x1e0d   : > { %7031 = vmatprep.mubr.msk.f32.mxu1 %vm1208_vm2, %v4239_v32 }
0x1e0e   : > { %7032 = vmatmul.mubr.msk.f32.vlgmr.msra.gmra.mrb[42].mxu1 %vm1208_vm2, %v4240_v53 }
0x1e0f   : > { %7038 = vmatprep.mubr.msk.f32.mxu1 %vm1208_vm2, %v4331_v26 }
0x1e12   : > { %7315 = vmatpush3.bf16.xpose.msk.msra.mxu1 %vm8506_vm3, %v7310_v18 }
0x1e19   : > { %7039 = vmatmul.mubr.msk.f32.vlgmr.msra.gmra.mrb[44].mxu1 %vm1208_vm2, %v4333_v41 }
0x1ee1   : > { %v7033_v19 = vpop.f32.mrb[42].mxu1 }
0x1ee2   : > { %4329 = vst.msk [vmem:[#allocation3 + $0x78] sm:$0xff] %vm1208_vm2, %v7033_v19  ;;  %v4319_v36 = vpop.f32.mrb[43].mxu1 }
0x1ee3   : > { %4328 = vst.msk [vmem:[#allocation3 + $0x70] sm:$0xff] %vm1208_vm2, %v4319_v36 }
0x1eec   : > { %v7040_v31 = vpop.f32.mrb[44].mxu1 }
0x1eed   : > { %v4418_v39 = vadd.f32 %v7040_v31, %v6501_v54  ;;  %v4412_v51 = vpop.f32.mrb[45].mxu1 }
0x1eee   : > { %v4413_v58 = vadd.f32 %v6501_v54, %v4412_v51 }
0x1eef   : > { %v4424_v43 = vsel %vm1208_vm2, %v4418_v39, -inf }
0x1ef0   : > { %4425 = vmax.xlane.f32.xlu0 %v4424_v43  ;;  %v4421_v52 = vsel %vm1208_vm2, %v4413_v58, -inf }
0x1ef1   : > { %4422 = vmax.xlane.f32.xlu1 %v4421_v52 }
0x1f7d   : > { %v4426_v21 = vpop.xlane.xlu0 %4425 }
0x1f7e   : > { %v4428_v33 = vsub.f32 %v4418_v39, %v4426_v21  ;;  %v4423_v60 = vpop.xlane.xlu1 %4422 }
0x1f7f   : > { %v4427_v22 = vsub.f32 %v4413_v58, %v4423_v60 }
0x1f80   : > { %v4431_v48 = vmul.f32 1.442695, %v4428_v33 }
0x1f81   : > { %v4429_v23 = vmul.f32 1.442695, %v4427_v22 }
0x1f82   : > { %7742 = vpow2.f32 %v4431_v48 }
0x1f83   : > { %7744 = vpow2.f32 %v4429_v23 }
0x1f8c   : > { %v7743_v24 = vpop.eup %7742 }
0x1f8d   : > { %v7745_v50 = vpop.eup %7744  ;;  %v4436_v62 = vsel %vm1208_vm2, %v7743_v24, 0.0 }
0x1f8e   : > { %4437 = vadd.xlane.f32.xlu1 %v4436_v62  ;;  %v4433_v54 = vsel %vm1208_vm2, %v7745_v50, 0.0 }
0x1f8f   : > { %4434 = vadd.xlane.f32.xlu0 %v4433_v54 }
0x1f9f   : > { %1605 = vrot.lane.b32.xlu1 %v8614_v45, %s8023_s19 }
0x1fa3   : > { %1607 = vrot.lane.b32.xlu1 %v8612_v44, %s8023_s19 }
0x1fa5   : > { %7616 = vrot.lane.b32.xlu0 %v8879_v28, %s8022_s3 }
0x1fa7   : > { %2026 = vrot.lane.b32.xlu1 %v8672_v38, %s8023_s19 }
0x1fa9   : > { %2024 = vrot.lane.b32.xlu0 %v8674_v55, %s8023_s19 }
0x1fab   : > { %2444 = vrot.lane.b32.xlu1 %v8702_v40, %s8023_s19  ;;  %v4556_v40 = vld [vmem:[%s8348_s1] sm:$0xff] }
0x1fad   : > { %2442 = vrot.lane.b32.xlu0 %v8704_v42, %s8023_s19  ;;  %v4557_v42 = vld [vmem:[%s8348_s1 + $0x8] sm:$0xff] }
0x1faf   : > { %2862 = vrot.lane.b32.xlu1 %v8749_v46, %s8023_s19 }
0x1fb1   : > { %2860 = vrot.lane.b32.xlu0 %v8751_v47, %s8023_s19 }
0x1fb3   : > { %3280 = vrot.lane.b32.xlu1 %v8799_v35, %s8023_s19 }
0x1fb5   : > { %3278 = vrot.lane.b32.xlu0 %v8801_v49, %s8023_s19 }
0x1fb7   : > { %3698 = vrot.lane.b32.xlu1 %v8846_v17, %s8023_s19  ;;  %v7320_v17 = vpack.c.bf16 %v4557_v42, %v4556_v40 }
0x1fb9   : > { %3696 = vrot.lane.b32.xlu0 %v8848_v34, %s8023_s19 }
0x1fbb   : > { %4116 = vrot.lane.b32.xlu1 %v8893_v29, %s8023_s19  ;;  %v4558_v29 = vld [vmem:[%s8348_s1 + $0x10] sm:$0xff] }
0x1fbd   : > { %4114 = vrot.lane.b32.xlu0 %v8895_v25, %s8023_s19  ;;  %v4559_v25 = vld [vmem:[%s8348_s1 + $0x18] sm:$0xff] }
0x1fbe   : > { %v7324_v56 = vpack.c.bf16 %v4559_v25, %v4558_v29  ;;  %v7817_v25 = vld [vmem:[#allocation2 + $0x10] sm:$0xff] }
0x201b   : > { %v4438_v44 = vpop.xlane.xlu1 %4437 }
0x201c   : > { %7746 = vrcp.f32 %v4438_v44  ;;  %v4435_v45 = vpop.xlane.xlu0 %4434 }
0x201d   : > { %7748 = vrcp.f32 %v4435_v45 }
0x201f   : > { %v1606_v38 = vpop.permute.xlu1 %1605 }
0x2020   : > { %1612 = vst.msk [vmem:[#allocation3] sm:$0xff] %vm1611_vm4, %v1606_v38  ;;  %v7617_v55 = vpop.permute.xlu0 %7616 }
0x2021   : > { %v7619_v46 = vunpack.i.h.bf16 %v7617_v55  ;;  %v7618_v47 = vunpack.i.l.bf16 %v7617_v55 }
0x2023   : > { %v7316_v35 = vpack.c.bf16 %v7619_v46, %v7618_v47  ;;  %v1608_v49 = vpop.permute.xlu1 %1607  ;;  %v7815_v46 = vld [vmem:[#allocation2] sm:$0xff] }
0x2024   : > { %1613 = vst.msk [vmem:[#allocation3 + $0x8] sm:$0xff] %vm1611_vm4, %v1608_v49  ;;  %v2025_v34 = vpop.permute.xlu0 %2024  ;;  %v8993_v49 = vld [vmem:[%s9899_s17] ss:$0 sm:$0xff] }
0x2025   : > { %2030 = vst.msk [vmem:[#allocation3 + $0x10] sm:$0xff] %vm1611_vm4, %v2025_v34  ;;  %7317 = vmatprep.subr.bf16.mxu0 %v7316_v35  ;;  %v7816_v34 = vld [vmem:[#allocation2 + $0x8] sm:$0xff] }
0x2026   : > { %v7747_v28 = vpop.eup %7746  ;;  %7319 = vmatpush3.bf16.msra.mxu0 %v7316_v35 }
0x2027   : > { %v7749_v20 = vpop.eup %7748  ;;  %v2027_v27 = vpop.permute.xlu1 %2026  ;;  %7321 = vmatprep.subr.bf16.mxu0 %v7320_v17  ;;  %v4442_v63 = vmul.f32 %v7747_v28, %v7743_v24  ;;  %v4540_v16 = vld [vmem:[#allocation3] sm:$0xff] }
0x2028   : > { %2031 = vst.msk [vmem:[#allocation3 + $0x18] sm:$0xff] %vm1611_vm4, %v2027_v27  ;;  %v2443_v57 = vpop.permute.xlu0 %2442  ;;  %v4441_v59 = vmul.f32 %v7749_v20, %v7745_v50 }
0x2029   : > { %2448 = vst.msk [vmem:[#allocation3 + $0x20] sm:$0xff] %vm1611_vm4, %v2443_v57 }
0x202a   : > { %7045 = vmatprep.mubr.msk.f32.mxu0 %vm1208_vm2, %v4441_v59 }
0x202b   : > { %7046 = vmatmul.mubr.msk.f32.vlgmr.msra.gmra.mrb[32].mxu0 %vm1208_vm2, %v4442_v63  ;;  %v2445_v30 = vpop.permute.xlu1 %2444  ;;  %v4541_v32 = vld [vmem:[#allocation3 + $0x8] sm:$0xff]  ;;  %v7818_v63 = vld [vmem:[#allocation2 + $0x18] sm:$0xff] }
0x202c   : > { %7323 = vmatpush3.bf16.msra.mxu0 %v7320_v17  ;;  %2449 = vst.msk [vmem:[#allocation3 + $0x28] sm:$0xff] %vm1611_vm4, %v2445_v30  ;;  %v2861_v18 = vpop.permute.xlu0 %2860  ;;  %7056 = vmatprep.mubr.msk.f32.mxu0 %vm1001_vm1, %v4540_v16  ;;  %v4542_v53 = vld [vmem:[#allocation3 + $0x10] sm:$0xff]  ;;  %v7819_v16 = vld [vmem:[#allocation2 + $0x20] sm:$0xff] }
0x202d   : > { %2866 = vst.msk [vmem:[#allocation3 + $0x30] sm:$0xff] %vm1611_vm4, %v2861_v18  ;;  %7325 = vmatprep.subr.bf16.mxu0 %v7324_v56 }
0x202f   : > { %v2863_v37 = vpop.permute.xlu1 %2862  ;;  %v4543_v19 = vld [vmem:[#allocation3 + $0x18] sm:$0xff] }
0x2030   : > { %7327 = vmatpush3.bf16.msra.mxu0 %v7324_v56  ;;  %2867 = vst.msk [vmem:[#allocation3 + $0x38] sm:$0xff] %vm1611_vm4, %v2863_v37  ;;  %v3279_v61 = vpop.permute.xlu0 %3278  ;;  %v4544_v31 = vld [vmem:[#allocation3 + $0x20] sm:$0xff] }
0x2031   : > { %3284 = vst.msk [vmem:[#allocation3 + $0x40] sm:$0xff] %vm1611_vm4, %v3279_v61 }
0x2033   : > { %7057 = vmatmul.mubr.msk.f32.vlgmr.msra.gmra.mrb[34].mxu0 %vm1001_vm1, %v4541_v32  ;;  %v3281_v26 = vpop.permute.xlu1 %3280  ;;  %v4545_v51 = vld [vmem:[#allocation3 + $0x28] sm:$0xff] }
0x2034   : > { %7059 = vmatprep.mubr.msk.f32.mxu0 %vm1001_vm1, %v4542_v53  ;;  %3285 = vst.msk [vmem:[#allocation3 + $0x48] sm:$0xff] %vm1611_vm4, %v3281_v26  ;;  %v3697_v41 = vpop.permute.xlu0 %3696  ;;  %v4546_v43 = vld [vmem:[#allocation3 + $0x30] sm:$0xff] }
0x2035   : > { %3702 = vst.msk [vmem:[#allocation3 + $0x50] sm:$0xff] %vm1611_vm4, %v3697_v41  ;;  %v7820_v41 = vld [vmem:[#allocation2 + $0x28] sm:$0xff] }
0x2037   : > { %7060 = vmatmul.mubr.msk.f32.gmra.mrb[36].mxu0 %vm1001_vm1, %v4543_v19  ;;  %v3699_v36 = vpop.permute.xlu1 %3698  ;;  %v4547_v52 = vld [vmem:[#allocation3 + $0x38] sm:$0xff] }
0x2038   : > { %3703 = vst.msk [vmem:[#allocation3 + $0x58] sm:$0xff] %vm1611_vm4, %v3699_v36  ;;  %7062 = vmatprep.mubr.msk.f32.mxu0 %vm1001_vm1, %v4544_v31  ;;  %v4115_v39 = vpop.permute.xlu0 %4114  ;;  %v4548_v21 = vld [vmem:[#allocation3 + $0x40] sm:$0xff]  ;;  %v7821_v31 = vld [vmem:[#allocation2 + $0x30] sm:$0xff] }
0x2039   : > { %4120 = vst.msk [vmem:[#allocation3 + $0x60] sm:$0xff] %vm1611_vm4, %v4115_v39 }
0x203b   : > { %7063 = vmatmul.mubr.msk.f32.gmra.mrb[38].mxu0 %vm1001_vm1, %v4545_v51  ;;  %v4117_v58 = vpop.permute.xlu1 %4116  ;;  %v4549_v33 = vld [vmem:[#allocation3 + $0x48] sm:$0xff] }
0x203c   : > { %4121 = vst.msk [vmem:[#allocation3 + $0x68] sm:$0xff] %vm1611_vm4, %v4117_v58  ;;  %7065 = vmatprep.mubr.msk.f32.mxu0 %vm1001_vm1, %v4546_v43  ;;  %v4550_v60 = vld [vmem:[#allocation3 + $0x50] sm:$0xff]  ;;  %v7822_v58 = vld [vmem:[#allocation2 + $0x38] sm:$0xff] }
0x203f   : > { %7066 = vmatmul.mubr.msk.f32.gmra.mrb[40].mxu0 %vm1001_vm1, %v4547_v52  ;;  %v4551_v22 = vld [vmem:[#allocation3 + $0x58] sm:$0xff] }
0x2040   : > { %7068 = vmatprep.mubr.msk.f32.mxu0 %vm1001_vm1, %v4548_v21  ;;  %v4552_v48 = vld [vmem:[#allocation3 + $0x60] sm:$0xff] }
0x2043   : > { %7069 = vmatmul.mubr.msk.f32.gmra.mrb[42].mxu0 %vm1001_vm1, %v4549_v33  ;;  %v4553_v23 = vld [vmem:[#allocation3 + $0x68] sm:$0xff] }
0x2044   : > { %7071 = vmatprep.mubr.msk.f32.mxu0 %vm1001_vm1, %v4550_v60  ;;  %v7823_v60 = vld [vmem:[#allocation2 + $0x40] sm:$0xff] }
0x2047   : > { %7072 = vmatmul.mubr.msk.f32.gmra.mrb[44].mxu0 %vm1001_vm1, %v4551_v22 }
0x2048   : > { %7074 = vmatprep.mubr.msk.f32.mxu0 %vm1001_vm1, %v4552_v48 }
0x204b   : > { %7075 = vmatmul.mubr.msk.f32.gmra.mrb[46].mxu0 %vm1001_vm1, %v4553_v23 }
0x20fe   : > { %v7047_v24 = vpop.f32.mrb[32].mxu0 }
0x20ff   : > { %4534 = vrot.lane.b32.xlu1 %v7047_v24, %s8023_s19  ;;  %v4521_v50 = vpop.f32.mrb[33].mxu0  ;;  %v7824_v24 = vld [vmem:[#allocation2 + $0x48] sm:$0xff] }
0x2100   : > { %4532 = vrot.lane.b32.xlu0 %v4521_v50, %s8023_s19 }
0x2106   : > { %v7058_v62 = vpop.f32.mrb[34].mxu0 }
0x2107   : > { %v4674_v54 = vpop.f32.mrb[35].mxu0  ;;  %v4754_v28 = vadd.f32 %v7816_v34, %v7058_v62 }
0x2108   : > { %v4753_v47 = vadd.f32 %v7815_v46, %v4674_v54  ;;  %v7825_v54 = vld [vmem:[#allocation2 + $0x50] sm:$0xff] }
0x2109   : > { %v8999_v59 = vadd.f32 %v8993_v49, %v4754_v28 }
0x210a   : > { %v7061_v44 = vpop.f32.mrb[36].mxu0  ;;  %v8996_v29 = vadd.f32 %v8993_v49, %v4753_v47 }
0x210b   : > { %v4684_v45 = vpop.f32.mrb[37].mxu0  ;;  %v4756_v56 = vadd.f32 %v7818_v63, %v7061_v44  ;;  %v4797_v26 = vsel %vm1001_vm1, %v8999_v59, 0.0 }
0x210c   : > { %v4755_v20 = vadd.f32 %v7817_v25, %v4684_v45  ;;  %v4794_v61 = vsel %vm1001_vm1, %v8996_v29, 0.0 }
0x210d   : > { %v9007_v53 = vadd.f32 %v8993_v49, %v4756_v56 }
0x210e   : > { %v7064_v38 = vpop.f32.mrb[38].mxu0  ;;  %v9002_v30 = vadd.f32 %v8993_v49, %v4755_v20  ;;  %v7828_v20 = vld [vmem:[#allocation2 + $0x68] sm:$0xff] }
0x210f   : > { %v4694_v55 = vpop.f32.mrb[39].mxu0  ;;  %v4758_v19 = vadd.f32 %v7820_v41, %v7064_v38  ;;  %v4803_v52 = vsel %vm1001_vm1, %v9007_v53, 0.0 }
0x2110   : > { %v4757_v18 = vadd.f32 %v7819_v16, %v4694_v55  ;;  %v4800_v51 = vsel %vm1001_vm1, %v9002_v30, 0.0 }
0x2111   : > { %v9019_v21 = vadd.f32 %v8993_v49, %v4758_v19 }
0x2112   : > { %v7067_v40 = vpop.f32.mrb[40].mxu0  ;;  %v9012_v36 = vadd.f32 %v8993_v49, %v4757_v18 }
0x2113   : > { %v4704_v42 = vpop.f32.mrb[41].mxu0  ;;  %v4760_v43 = vadd.f32 %v7822_v58, %v7067_v40  ;;  %v4809_v45 = vsel %vm1001_vm1, %v9019_v21, 0.0 }
0x2114   : > { %v4759_v39 = vadd.f32 %v7821_v31, %v4704_v42  ;;  %v4806_v48 = vsel %vm1001_vm1, %v9012_v36, 0.0  ;;  %v7826_v42 = vld [vmem:[#allocation2 + $0x58] sm:$0xff] }
0x2115   : > { %v9027_v23 = vadd.f32 %v8993_v49, %v4760_v43 }
0x2116   : > { %v7070_v35 = vpop.f32.mrb[42].mxu0  ;;  %v9022_v33 = vadd.f32 %v8993_v49, %v4759_v39 }
0x2117   : > { %v4714_v17 = vpop.f32.mrb[43].mxu0  ;;  %v4762_v50 = vadd.f32 %v7824_v24, %v7070_v35  ;;  %v4815_v40 = vsel %vm1001_vm1, %v9027_v23, 0.0  ;;  %v7827_v35 = vld [vmem:[#allocation2 + $0x60] sm:$0xff] }
0x2118   : > { %v4761_v22 = vadd.f32 %v7823_v60, %v4714_v17  ;;  %v4812_v38 = vsel %vm1001_vm1, %v9022_v33, 0.0 }
0x2119   : > { %v9037_v55 = vadd.f32 %v8993_v49, %v4762_v50 }
0x211a   : > { %v7073_v27 = vpop.f32.mrb[44].mxu0  ;;  %v9030_v62 = vadd.f32 %v8993_v49, %v4761_v22 }
0x211b   : > { %v4724_v57 = vpop.f32.mrb[45].mxu0  ;;  %v4764_v46 = vadd.f32 %v7826_v42, %v7073_v27  ;;  %v4821_v28 = vsel %vm1001_vm1, %v9037_v55, 0.0 }
0x211c   : > { %v4763_v44 = vadd.f32 %v7825_v54, %v4724_v57  ;;  %v4818_v34 = vsel %vm1001_vm1, %v9030_v62, 0.0 }
0x211d   : > { %v9049_v25 = vadd.f32 %v8993_v49, %v4764_v46  ;;  %v7830_v46 = vld [vmem:[#allocation2 + $0x70] sm:$0xff] }
0x211e   : > { %v7076_v37 = vpop.f32.mrb[46].mxu0  ;;  %v9042_v47 = vadd.f32 %v8993_v49, %v4763_v44  ;;  %v7829_v44 = vld [vmem:[#allocation2 + $0x78] sm:$0xff] }
0x211f   : > { %v4734_v32 = vpop.f32.mrb[47].mxu0  ;;  %4795 = vadd.xlane.f32.xlu0 %v4794_v61  ;;  %v4766_v57 = vadd.f32 %v7828_v20, %v7076_v37  ;;  %v4827_v16 = vsel %vm1001_vm1, %v9049_v25, 0.0 }
0x2120   : > { %v4765_v17 = vadd.f32 %v7827_v35, %v4734_v32  ;;  %v4824_v63 = vsel %vm1001_vm1, %v9042_v47, 0.0 }
0x2121   : > { %v9057_v56 = vadd.f32 %v8993_v49, %v4766_v57 }
0x2122   : > { %v9052_v27 = vadd.f32 %v8993_v49, %v4765_v17 }
0x2123   : > { %4798 = vadd.xlane.f32.xlu1 %v4797_v26  ;;  %4801 = vadd.xlane.f32.xlu0 %v4800_v51  ;;  %v4833_v37 = vsel %vm1001_vm1, %v9057_v56, 0.0 }
0x2124   : > { %v4830_v18 = vsel %vm1001_vm1, %v9052_v27, 0.0 }
0x2127   : > { %4804 = vadd.xlane.f32.xlu0 %v4803_v52  ;;  %4807 = vadd.xlane.f32.xlu1 %v4806_v48 }
0x212b   : > { %4810 = vadd.xlane.f32.xlu0 %v4809_v45  ;;  %4813 = vadd.xlane.f32.xlu1 %v4812_v38 }
0x212f   : > { %4816 = vadd.xlane.f32.xlu0 %v4815_v40  ;;  %4819 = vadd.xlane.f32.xlu1 %v4818_v34 }
0x2133   : > { %4822 = vadd.xlane.f32.xlu0 %v4821_v28  ;;  %4825 = vadd.xlane.f32.xlu1 %v4824_v63 }
0x2137   : > { %4828 = vadd.xlane.f32.xlu0 %v4827_v16  ;;  %4831 = vadd.xlane.f32.xlu1 %v4830_v18 }
0x213b   : > { %4834 = vadd.xlane.f32.xlu0 %v4833_v37 }
0x2171   : > { %v4535_v61 = vpop.permute.xlu1 %4534 }
0x2172   : > { %4539 = vst.msk [vmem:[#allocation3 + $0x78] sm:$0xff] %vm1611_vm4, %v4535_v61  ;;  %v4533_v32 = vpop.permute.xlu0 %4532 }
0x2173   : > { %4538 = vst.msk [vmem:[#allocation3 + $0x70] sm:$0xff] %vm1611_vm4, %v4533_v32 }
0x2179   : > { %v4555_v41 = vld [vmem:[#allocation3 + $0x78] sm:$0xff] }
0x217a   : > { %v4554_v26 = vld [vmem:[#allocation3 + $0x70] sm:$0xff] }
0x217b   : > { %7077 = vmatprep.mubr.msk.f32.mxu0 %vm1001_vm1, %v4554_v26 }
0x217c   : > { %7078 = vmatmul.mubr.msk.f32.gmra.mrb[48].mxu0 %vm1001_vm1, %v4555_v41 }
0x21ac   : > { %v4796_v19 = vpop.xlane.xlu0 %4795 }
0x21ad   : > { %v4843_v60 = vmul.f32 0.03125, %v4796_v19 }
0x21af   : > { %v9073_v40 = vsub.f32 %v8996_v29, %v4843_v60 }
0x21b0   : > { %v4802_v31 = vpop.xlane.xlu0 %4801  ;;  %v4799_v51 = vpop.xlane.xlu1 %4798 }
0x21b1   : > { %v4844_v52 = vmul.f32 0.03125, %v4799_v51  ;;  %v4845_v42 = vmul.f32 0.03125, %v4802_v31 }
0x21b3   : > { %v9070_v24 = vsub.f32 %v8999_v59, %v4844_v52  ;;  %v9089_v57 = vsub.f32 %v9002_v30, %v4845_v42 }
0x21b4   : > { %v4805_v39 = vpop.xlane.xlu0 %4804  ;;  %v4808_v43 = vpop.xlane.xlu1 %4807 }
0x21b5   : > { %v4846_v50 = vmul.f32 0.03125, %v4805_v39  ;;  %v4876_v29 = vmul.f32 %v9070_v24, %v9070_v24  ;;  %v4847_v63 = vmul.f32 0.03125, %v4808_v43  ;;  %v4877_v31 = vmul.f32 %v9089_v57, %v9089_v57 }
0x21b7   : > { %v9082_v59 = vsub.f32 %v9007_v53, %v4846_v50  ;;  %v4875_v53 = vmul.f32 %v9073_v40, %v9073_v40  ;;  %v4894_v32 = vsel %vm1001_vm1, %v4876_v29, 0.0  ;;  %v9102_v26 = vsub.f32 %v9012_v36, %v4847_v63 }
0x21b8   : > { %v4811_v58 = vpop.xlane.xlu0 %4810  ;;  %v4814_v54 = vpop.xlane.xlu1 %4813 }
0x21b9   : > { %v4848_v28 = vmul.f32 0.03125, %v4811_v58  ;;  %v4878_v30 = vmul.f32 %v9082_v59, %v9082_v59  ;;  %v4849_v41 = vmul.f32 0.03125, %v4814_v54  ;;  %v4891_v19 = vsel %vm1001_vm1, %v4875_v53, 0.0 }
0x21bb   : > { %v9096_v37 = vsub.f32 %v9019_v21, %v4848_v28  ;;  %v4900_v43 = vsel %vm1001_vm1, %v4878_v30, 0.0  ;;  %v9114_v52 = vsub.f32 %v9022_v33, %v4849_v41 }
0x21bc   : > { %v4817_v22 = vpop.xlane.xlu0 %4816  ;;  %v4820_v18 = vpop.xlane.xlu1 %4819 }
0x21bd   : > { %v4850_v61 = vmul.f32 0.03125, %v4817_v22  ;;  %v4880_v36 = vmul.f32 %v9096_v37, %v9096_v37  ;;  %v4851_v60 = vmul.f32 0.03125, %v4820_v18  ;;  %v4897_v22 = vsel %vm1001_vm1, %v4877_v31, 0.0 }
0x21bf   : > { %v9108_v21 = vsub.f32 %v9027_v23, %v4850_v61  ;;  %v4906_v54 = vsel %vm1001_vm1, %v4880_v36, 0.0  ;;  %v9126_v33 = vsub.f32 %v9030_v62, %v4851_v60  ;;  %v5050_v36 = vld [vmem:[%s8375_s18 + $0x18] sm:$0xff] }
0x21c0   : > { %v4823_v16 = vpop.xlane.xlu0 %4822  ;;  %v4826_v58 = vpop.xlane.xlu1 %4825 }
0x21c1   : > { %v4852_v51 = vmul.f32 0.03125, %v4823_v16 }
0x21c3   : > { %v9120_v23 = vsub.f32 %v9037_v55, %v4852_v51  ;;  %v5048_v51 = vld [vmem:[%s8375_s18 + $0x8] sm:$0xff] }
0x21c4   : > { %v4829_v39 = vpop.xlane.xlu0 %4828 }
0x21c5   : > { %v4854_v50 = vmul.f32 0.03125, %v4829_v39  ;;  %v4884_v62 = vmul.f32 %v9120_v23, %v9120_v23  ;;  %v5047_v39 = vld [vmem:[%s8375_s18] sm:$0xff] }
0x21c7   : > { %v9132_v55 = vsub.f32 %v9049_v25, %v4854_v50  ;;  %v4918_v53 = vsel %vm1001_vm1, %v4884_v62, 0.0 }
0x21c9   : > { %v4886_v18 = vmul.f32 %v9132_v55, %v9132_v55 }
0x224f   : > { %v7079_v48 = vpop.f32.mrb[48].mxu0 }
0x2250   : > { %v4768_v45 = vadd.f32 %v7829_v44, %v7079_v48  ;;  %v4744_v38 = vpop.f32.mrb[49].mxu0  ;;  %v4879_v48 = vmul.f32 %v9102_v26, %v9102_v26  ;;  %v4882_v44 = vmul.f32 %v9108_v21, %v9108_v21 }
0x2251   : > { %v4767_v35 = vadd.f32 %v7830_v46, %v4744_v38  ;;  %v4835_v38 = vpop.xlane.xlu0 %4834  ;;  %v4881_v46 = vmul.f32 %v9114_v52, %v9114_v52 }
0x2252   : > { %v9076_v17 = vadd.f32 %v8993_v49, %v4768_v45  ;;  %v4853_v45 = vmul.f32 0.03125, %v4826_v58  ;;  %v4903_v42 = vsel %vm1001_vm1, %v4879_v48, 0.0  ;;  %v4856_v28 = vmul.f32 0.03125, %v4835_v38 }
0x2253   : > { %v9079_v34 = vadd.f32 %v8993_v49, %v4767_v35  ;;  %v4832_v35 = vpop.xlane.xlu1 %4831  ;;  %v4909_v16 = vsel %vm1001_vm1, %v4881_v46, 0.0  ;;  %v7328_v58 = vpack.c.bf16 %v5048_v51, %v5047_v39 }
0x2254   : > { %v4839_v20 = vsel %vm1001_vm1, %v9076_v17, 0.0  ;;  %v9138_v29 = vsub.f32 %v9042_v47, %v4853_v45  ;;  %v4855_v63 = vmul.f32 0.03125, %v4832_v35  ;;  %v9144_v25 = vsub.f32 %v9057_v56, %v4856_v28 }
0x2255   : > { %4840 = vadd.xlane.f32.xlu0 %v4839_v20  ;;  %v4836_v49 = vsel %vm1001_vm1, %v9079_v34, 0.0  ;;  %v4912_v20 = vsel %vm1001_vm1, %v4882_v44, 0.0  ;;  %v4924_v56 = vsel %vm1001_vm1, %v4886_v18, 0.0  ;;  %7329 = vmatprep.subr.bf16.mxu1 %v7328_v58 }
0x2256   : > { %4837 = vadd.xlane.f32.xlu1 %v4836_v49  ;;  %v4883_v49 = vmul.f32 %v9126_v33, %v9126_v33  ;;  %v9150_v47 = vsub.f32 %v9052_v27, %v4855_v63  ;;  %v4888_v30 = vmul.f32 %v9144_v25, %v9144_v25  ;;  %7331 = vmatpush3.bf16.msra.mxu1 %v7328_v58 }
0x2258   : > { %v4915_v61 = vsel %vm1001_vm1, %v4883_v49, 0.0  ;;  %v4887_v27 = vmul.f32 %v9150_v47, %v9150_v47 }
0x2259   : > { %4895 = vadd.xlane.f32.xlu0 %v4894_v32  ;;  %v4885_v32 = vmul.f32 %v9138_v29, %v9138_v29 }
0x225a   : > { %4892 = vadd.xlane.f32.xlu1 %v4891_v19  ;;  %v4930_v19 = vsel %vm1001_vm1, %v4888_v30, 0.0  ;;  %v4927_v31 = vsel %vm1001_vm1, %v4887_v27, 0.0 }
0x225b   : > { %v4921_v41 = vsel %vm1001_vm1, %v4885_v32, 0.0 }
0x225d   : > { %4901 = vadd.xlane.f32.xlu0 %v4900_v43  ;;  %v5049_v43 = vld [vmem:[%s8375_s18 + $0x10] sm:$0xff] }
0x225e   : > { %4898 = vadd.xlane.f32.xlu1 %v4897_v22  ;;  %v7332_v60 = vpack.c.bf16 %v5050_v36, %v5049_v43 }
0x2260   : > { %7333 = vmatprep.subr.bf16.mxu1 %v7332_v60 }
0x2261   : > { %4907 = vadd.xlane.f32.xlu0 %v4906_v54  ;;  %7335 = vmatpush3.bf16.msra.mxu1 %v7332_v60 }
0x2262   : > { %4904 = vadd.xlane.f32.xlu1 %v4903_v42 }
0x2265   : > { %4913 = vadd.xlane.f32.xlu0 %v4912_v20 }
0x2266   : > { %4910 = vadd.xlane.f32.xlu1 %v4909_v16 }
0x2269   : > { %4919 = vadd.xlane.f32.xlu0 %v4918_v53 }
0x226a   : > { %4916 = vadd.xlane.f32.xlu1 %v4915_v61 }
0x226d   : > { %4925 = vadd.xlane.f32.xlu0 %v4924_v56 }
0x226e   : > { %4922 = vadd.xlane.f32.xlu1 %v4921_v41 }
0x2271   : > { %4931 = vadd.xlane.f32.xlu0 %v4930_v19 }
0x2272   : > { %4928 = vadd.xlane.f32.xlu1 %v4927_v31 }
0x22e2   : > { %v4841_v22 = vpop.xlane.xlu0 %4840 }
0x22e3   : > { %v4858_v48 = vmul.f32 0.03125, %v4841_v22  ;;  %v4838_v50 = vpop.xlane.xlu1 %4837  ;;  %v9184_v22 = vld [vmem:[%s9901_s16] ss:$0 sm:$0xff] }
0x22e4   : > { %v4857_v54 = vmul.f32 0.03125, %v4838_v50 }
0x22e5   : > { %v9168_v44 = vsub.f32 %v9076_v17, %v4858_v48 }
0x22e6   : > { %v9171_v45 = vsub.f32 %v9079_v34, %v4857_v54  ;;  %v4896_v38 = vpop.xlane.xlu0 %4895 }
0x22e7   : > { %v4940_v42 = vmul.f32 0.03125, %v4896_v38  ;;  %v4893_v46 = vpop.xlane.xlu1 %4892  ;;  %v4890_v35 = vmul.f32 %v9168_v44, %v9168_v44 }
0x22e8   : > { %v4939_v28 = vmul.f32 0.03125, %v4893_v46  ;;  %v4889_v20 = vmul.f32 %v9171_v45, %v9171_v45 }
0x22e9   : > { %v4956_v62 = vadd.f32 1e-05, %v4940_v42  ;;  %v4936_v63 = vsel %vm1001_vm1, %v4890_v35, 0.0 }
0x22ea   : > { %v4955_v16 = vadd.f32 1e-05, %v4939_v28  ;;  %4937 = vadd.xlane.f32.xlu0 %v4936_v63  ;;  %v4902_v17 = vpop.xlane.xlu0 %4901  ;;  %v4933_v49 = vsel %vm1001_vm1, %v4889_v20, 0.0  ;;  %v9193_v20 = vld [vmem:[%s9903_s22] ss:$0 sm:$0xff] }
0x22eb   : > { %7750 = vrsqrt.f32 %v4956_v62  ;;  %v4942_v34 = vmul.f32 0.03125, %v4902_v17  ;;  %4934 = vadd.xlane.f32.xlu1 %v4933_v49  ;;  %v4899_v53 = vpop.xlane.xlu1 %4898 }
0x22ec   : > { %7752 = vrsqrt.f32 %v4955_v16  ;;  %v4941_v18 = vmul.f32 0.03125, %v4899_v53 }
0x22ed   : > { %v4958_v61 = vadd.f32 1e-05, %v4942_v34 }
0x22ee   : > { %v4957_v32 = vadd.f32 1e-05, %v4941_v18  ;;  %v4908_v56 = vpop.xlane.xlu0 %4907 }
0x22ef   : > { %7754 = vrsqrt.f32 %v4958_v61  ;;  %v4944_v30 = vmul.f32 0.03125, %v4908_v56  ;;  %v4905_v41 = vpop.xlane.xlu1 %4904 }
0x22f0   : > { %7756 = vrsqrt.f32 %v4957_v32  ;;  %v4943_v27 = vmul.f32 0.03125, %v4905_v41 }
0x22f1   : > { %v4960_v19 = vadd.f32 1e-05, %v4944_v30 }
0x22f2   : > { %v4959_v31 = vadd.f32 1e-05, %v4943_v27  ;;  %v4914_v39 = vpop.xlane.xlu0 %4913 }
0x22f3   : > { %7758 = vrsqrt.f32 %v4960_v19  ;;  %v4946_v51 = vmul.f32 0.03125, %v4914_v39  ;;  %v4911_v58 = vpop.xlane.xlu1 %4910 }
0x22f4   : > { %7760 = vrsqrt.f32 %v4959_v31  ;;  %v4945_v43 = vmul.f32 0.03125, %v4911_v58 }
0x22f5   : > { %v7751_v36 = vpop.eup %7750  ;;  %v4962_v60 = vadd.f32 1e-05, %v4946_v51 }
0x22f6   : > { %v7753_v48 = vpop.eup %7752  ;;  %v4988_v50 = vmul.f32 %v7751_v36, %v9070_v24  ;;  %v4961_v54 = vadd.f32 1e-05, %v4945_v43  ;;  %v4920_v38 = vpop.xlane.xlu0 %4919 }
0x22f7   : > { %7762 = vrsqrt.f32 %v4962_v60  ;;  %v4948_v42 = vmul.f32 0.03125, %v4920_v38  ;;  %v4917_v46 = vpop.xlane.xlu1 %4916  ;;  %v4987_v35 = vmul.f32 %v7753_v48, %v9073_v40 }
0x22f8   : > { %7764 = vrsqrt.f32 %v4961_v54  ;;  %v4947_v28 = vmul.f32 0.03125, %v4917_v46  ;;  %v5010_v62 = vmul.f32 %v9184_v22, %v4988_v50 }
0x22f9   : > { %v7755_v63 = vpop.eup %7754  ;;  %v4964_v16 = vadd.f32 1e-05, %v4948_v42  ;;  %v5009_v24 = vmul.f32 %v9184_v22, %v4987_v35 }
0x22fa   : > { %v7757_v17 = vpop.eup %7756  ;;  %v4963_v49 = vadd.f32 1e-05, %v4947_v28  ;;  %v4926_v34 = vpop.xlane.xlu0 %4925  ;;  %v4990_v53 = vmul.f32 %v7755_v63, %v9082_v59  ;;  %v9203_v30 = vadd.f32 %v9193_v20, %v5010_v62 }
0x22fb   : > { %7766 = vrsqrt.f32 %v4964_v16  ;;  %v4950_v40 = vmul.f32 0.03125, %v4926_v34  ;;  %v4923_v18 = vpop.xlane.xlu1 %4922  ;;  %v9199_v61 = vadd.f32 %v9193_v20, %v5009_v24  ;;  %v4989_v32 = vmul.f32 %v7757_v17, %v9089_v57 }
0x22fc   : > { %7768 = vrsqrt.f32 %v4963_v49  ;;  %v4949_v56 = vmul.f32 0.03125, %v4923_v18  ;;  %v5012_v41 = vmul.f32 %v9184_v22, %v4990_v53 }
0x22fd   : > { %v7759_v27 = vpop.eup %7758  ;;  %v4966_v19 = vadd.f32 1e-05, %v4950_v40  ;;  %7088 = vmatprep.mubr.msk.f32.mxu1 %vm1001_vm1, %v9199_v61  ;;  %v5011_v59 = vmul.f32 %v9184_v22, %v4989_v32 }
0x22fe   : > { %v7761_v31 = vpop.eup %7760  ;;  %v4965_v39 = vadd.f32 1e-05, %v4949_v56  ;;  %v4932_v51 = vpop.xlane.xlu0 %4931  ;;  %7089 = vmatmul.mubr.msk.f32.vlgmr.msra.gmra.mrb[46].mxu1 %vm1001_vm1, %v9203_v30  ;;  %v4992_v57 = vmul.f32 %v7759_v27, %v9096_v37  ;;  %v9217_v50 = vadd.f32 %v9193_v20, %v5012_v41 }
0x22ff   : > { %7770 = vrsqrt.f32 %v4966_v19  ;;  %v4952_v58 = vmul.f32 0.03125, %v4932_v51  ;;  %v4929_v43 = vpop.xlane.xlu1 %4928  ;;  %v9213_v36 = vadd.f32 %v9193_v20, %v5011_v59  ;;  %v4991_v60 = vmul.f32 %v7761_v31, %v9102_v26 }
0x2300   : > { %7772 = vrsqrt.f32 %v4965_v39  ;;  %v4951_v48 = vmul.f32 0.03125, %v4929_v43  ;;  %v5014_v54 = vmul.f32 %v9184_v22, %v4992_v57  ;;  %v5267_v57 = vld [vmem:[%s8385_s9] sm:$0xff]  ;;  %v5269_v43 = vld [vmem:[%s8385_s9 + $0x10] sm:$0xff] }
0x2301   : > { %v7763_v38 = vpop.eup %7762  ;;  %v4968_v42 = vadd.f32 1e-05, %v4952_v58  ;;  %7091 = vmatprep.mubr.msk.f32.mxu1 %vm1001_vm1, %v9213_v36  ;;  %v5013_v37 = vmul.f32 %v9184_v22, %v4991_v60  ;;  %v5268_v58 = vld [vmem:[%s8385_s9 + $0x8] sm:$0xff] }
0x2302   : > { %v7765_v46 = vpop.eup %7764  ;;  %v4967_v35 = vadd.f32 1e-05, %v4951_v48  ;;  %7092 = vmatmul.mubr.msk.f32.gmra.mrb[48].mxu1 %vm1001_vm1, %v9217_v50  ;;  %v4994_v26 = vmul.f32 %v7763_v38, %v9108_v21  ;;  %v9231_v63 = vadd.f32 %v9193_v20, %v5014_v54  ;;  %v7336_v54 = vpack.c.bf16 %v5268_v58, %v5267_v57  ;;  %v5270_v38 = vld [vmem:[%s8385_s9 + $0x18] sm:$0xff] }
0x2303   : > { %7774 = vrsqrt.f32 %v4968_v42  ;;  %v9227_v28 = vadd.f32 %v9193_v20, %v5013_v37  ;;  %v4993_v62 = vmul.f32 %v7765_v46, %v9114_v52  ;;  %v7340_v42 = vpack.c.bf16 %v5270_v38, %v5269_v43  ;;  %v5271_v37 = vld [vmem:[%s8385_s9 + $0x20] sm:$0xff] }
0x2304   : > { %7776 = vrsqrt.f32 %v4967_v35  ;;  %v5016_v16 = vmul.f32 %v9184_v22, %v4994_v26  ;;  %7337 = vmatprep.subr.bf16.mxu0 %v7336_v54 }
0x2305   : > { %v7767_v24 = vpop.eup %7766  ;;  %7094 = vmatprep.mubr.msk.f32.mxu1 %vm1001_vm1, %v9227_v28  ;;  %v5015_v17 = vmul.f32 %v9184_v22, %v4993_v62  ;;  %7339 = vmatpush3.bf16.msra.mxu0 %v7336_v54  ;;  %v5273_v62 = vld [vmem:[%s8385_s9 + $0x30] sm:$0xff] }
0x2306   : > { %v7769_v49 = vpop.eup %7768  ;;  %7095 = vmatmul.mubr.msk.f32.gmra.mrb[50].mxu1 %vm1001_vm1, %v9231_v63  ;;  %v4996_v21 = vmul.f32 %v7767_v24, %v9120_v23  ;;  %v9245_v53 = vadd.f32 %v9193_v20, %v5016_v16  ;;  %7341 = vmatprep.subr.bf16.mxu0 %v7340_v42  ;;  %v5274_v16 = vld [vmem:[%s8385_s9 + $0x38] sm:$0xff] }
0x2307   : > { %v9241_v52 = vadd.f32 %v9193_v20, %v5015_v17  ;;  %v4995_v34 = vmul.f32 %v7769_v49, %v9126_v33  ;;  %v7348_v24 = vpack.c.bf16 %v5274_v16, %v5273_v62 }
0x2308   : > { %v5018_v40 = vmul.f32 %v9184_v22, %v4996_v21 }
0x2309   : > { %v7771_v18 = vpop.eup %7770  ;;  %7097 = vmatprep.mubr.msk.f32.mxu1 %vm1001_vm1, %v9241_v52  ;;  %v5017_v32 = vmul.f32 %v9184_v22, %v4995_v34  ;;  %7343 = vmatpush3.bf16.msra.mxu0 %v7340_v42 }
0x230a   : > { %v7773_v56 = vpop.eup %7772  ;;  %7098 = vmatmul.mubr.msk.f32.gmra.mrb[52].mxu1 %vm1001_vm1, %v9245_v53  ;;  %v4998_v23 = vmul.f32 %v7771_v18, %v9132_v55  ;;  %v9259_v27 = vadd.f32 %v9193_v20, %v5018_v40 }
0x230b   : > { %v9255_v33 = vadd.f32 %v9193_v20, %v5017_v32  ;;  %v4997_v41 = vmul.f32 %v7773_v56, %v9138_v29 }
0x230c   : > { %v5020_v19 = vmul.f32 %v9184_v22, %v4998_v23 }
0x230d   : > { %v7775_v59 = vpop.eup %7774  ;;  %7100 = vmatprep.mubr.msk.f32.mxu1 %vm1001_vm1, %v9255_v33  ;;  %v5019_v31 = vmul.f32 %v9184_v22, %v4997_v41 }
0x230e   : > { %v7777_v39 = vpop.eup %7776  ;;  %7101 = vmatmul.mubr.msk.f32.gmra.mrb[54].mxu1 %vm1001_vm1, %v9259_v27  ;;  %v5000_v55 = vmul.f32 %v7775_v59, %v9144_v25  ;;  %v9276_v60 = vadd.f32 %v9193_v20, %v5020_v19 }
0x230f   : > { %v9269_v29 = vadd.f32 %v9193_v20, %v5019_v31  ;;  %v4999_v51 = vmul.f32 %v7777_v39, %v9150_v47  ;;  %v5272_v47 = vld [vmem:[%s8385_s9 + $0x28] sm:$0xff] }
0x2310   : > { %v5022_v48 = vmul.f32 %v9184_v22, %v5000_v55  ;;  %v7344_v26 = vpack.c.bf16 %v5272_v47, %v5271_v37 }
0x2311   : > { %7103 = vmatprep.mubr.msk.f32.mxu1 %vm1001_vm1, %v9269_v29  ;;  %v5021_v25 = vmul.f32 %v9184_v22, %v4999_v51 }
0x2312   : > { %7104 = vmatmul.mubr.msk.f32.gmra.mrb[56].mxu1 %vm1001_vm1, %v9276_v60  ;;  %v9291_v35 = vadd.f32 %v9193_v20, %v5022_v48  ;;  %7345 = vmatprep.subr.bf16.mxu0 %v7344_v26 }
0x2313   : > { %v9288_v46 = vadd.f32 %v9193_v20, %v5021_v25  ;;  %7347 = vmatpush3.bf16.msra.mxu0 %v7344_v26 }
0x2314   : > { %7349 = vmatprep.subr.bf16.mxu0 %v7348_v24 }
0x2315   : > { %7106 = vmatprep.mubr.msk.f32.mxu1 %vm1001_vm1, %v9288_v46 }
0x2316   : > { %7107 = vmatmul.mubr.msk.f32.gmra.mrb[58].mxu1 %vm1001_vm1, %v9291_v35 }
0x2317   : > { %7351 = vmatpush3.bf16.msra.mxu0 %v7348_v24 }
0x2377   : > { %v4938_v17 = vpop.xlane.xlu0 %4937 }
0x2378   : > { %v4954_v49 = vmul.f32 0.03125, %v4938_v17  ;;  %v4935_v21 = vpop.xlane.xlu1 %4934 }
0x2379   : > { %v4953_v34 = vmul.f32 0.03125, %v4935_v21 }
0x237a   : > { %v4970_v40 = vadd.f32 1e-05, %v4954_v49 }
0x237b   : > { %v4969_v18 = vadd.f32 1e-05, %v4953_v34 }
0x237c   : > { %7778 = vrsqrt.f32 %v4970_v40 }
0x237d   : > { %7780 = vrsqrt.f32 %v4969_v18 }
0x2386   : > { %v7779_v32 = vpop.eup %7778 }
0x2387   : > { %v7781_v56 = vpop.eup %7780  ;;  %v5002_v23 = vmul.f32 %v7779_v32, %v9168_v44  ;;  %v6533_v44 = vld [vmem:[%s798_s26] ss:$0 sm:$0xff] }
0x2388   : > { %v5001_v41 = vmul.f32 %v7781_v56, %v9171_v45 }
0x2389   : > { %v5024_v19 = vmul.f32 %v9184_v22, %v5002_v23 }
0x238a   : > { %v5023_v59 = vmul.f32 %v9184_v22, %v5001_v41 }
0x238b   : > { %v9307_v39 = vadd.f32 %v9193_v20, %v5024_v19 }
0x238c   : > { %v9304_v31 = vadd.f32 %v9193_v20, %v5023_v59 }
0x238e   : > { %7109 = vmatprep.mubr.msk.f32.mxu1 %vm1001_vm1, %v9304_v31 }
0x238f   : > { %7110 = vmatmul.mubr.msk.f32.gmra.mrb[60].mxu1 %vm1001_vm1, %v9307_v39 }
0x23d1   : > { %v7090_v45 = vpop.f32.mrb[46].mxu1 }
0x23d2   : > { %v5178_v55 = vadd.f32 %v7090_v45, %v6533_v44  ;;  %v5172_v22 = vpop.f32.mrb[47].mxu1 }
0x23d3   : > { %v5173_v51 = vadd.f32 %v6533_v44, %v5172_v22 }
0x23d4   : > { %v5252_v20 = vmax.f32 %v5178_v55, 0.0 }
0x23d5   : > { %v5251_v57 = vmax.f32 %v5173_v51, 0.0  ;;  %v7093_v58 = vpop.f32.mrb[48].mxu1 }
0x23d6   : > { %v5188_v43 = vadd.f32 %v7093_v58, %v6533_v44  ;;  %v5182_v48 = vpop.f32.mrb[49].mxu1 }
0x23d7   : > { %v5183_v54 = vadd.f32 %v6533_v44, %v5182_v48  ;;  %7128 = vmatprep.mubr.msk.f32.mxu0 %vm5275_vm5, %v5251_v57 }
0x23d8   : > { %7129 = vmatmul.mubr.msk.f32.vlgmr.msra.gmra.mrb[50].mxu0 %vm5275_vm5, %v5252_v20  ;;  %v5254_v42 = vmax.f32 %v5188_v43, 0.0 }
0x23d9   : > { %v5253_v38 = vmax.f32 %v5183_v54, 0.0  ;;  %v7096_v25 = vpop.f32.mrb[50].mxu1 }
0x23da   : > { %v5198_v37 = vadd.f32 %v7096_v25, %v6533_v44  ;;  %v5192_v47 = vpop.f32.mrb[51].mxu1 }
0x23db   : > { %v5193_v26 = vadd.f32 %v6533_v44, %v5192_v47  ;;  %7131 = vmatprep.mubr.msk.f32.mxu0 %vm5275_vm5, %v5253_v38 }
0x23dc   : > { %7132 = vmatmul.mubr.msk.f32.gmra.mrb[52].mxu0 %vm5275_vm5, %v5254_v42  ;;  %v5256_v24 = vmax.f32 %v5198_v37, 0.0 }
0x23dd   : > { %v5255_v62 = vmax.f32 %v5193_v26, 0.0  ;;  %v7099_v16 = vpop.f32.mrb[52].mxu1 }
0x23de   : > { %v5208_v17 = vadd.f32 %v7099_v16, %v6533_v44  ;;  %v5202_v49 = vpop.f32.mrb[53].mxu1 }
0x23df   : > { %v5203_v21 = vadd.f32 %v6533_v44, %v5202_v49  ;;  %7134 = vmatprep.mubr.msk.f32.mxu0 %vm5275_vm5, %v5255_v62 }
0x23e0   : > { %7135 = vmatmul.mubr.msk.f32.gmra.mrb[54].mxu0 %vm5275_vm5, %v5256_v24  ;;  %v5258_v18 = vmax.f32 %v5208_v17, 0.0  ;;  %v9339_v24 = vld [vmem:[%s806_s6] ss:$0 sm:$0xff] }
0x23e1   : > { %v5257_v34 = vmax.f32 %v5203_v21, 0.0  ;;  %v7102_v40 = vpop.f32.mrb[54].mxu1 }
0x23e2   : > { %v5218_v32 = vadd.f32 %v7102_v40, %v6533_v44  ;;  %v5212_v56 = vpop.f32.mrb[55].mxu1 }
0x23e3   : > { %v5213_v23 = vadd.f32 %v6533_v44, %v5212_v56  ;;  %7137 = vmatprep.mubr.msk.f32.mxu0 %vm5275_vm5, %v5257_v34 }
0x23e4   : > { %7138 = vmatmul.mubr.msk.f32.gmra.mrb[56].mxu0 %vm5275_vm5, %v5258_v18  ;;  %v5260_v59 = vmax.f32 %v5218_v32, 0.0 }
0x23e5   : > { %v5259_v41 = vmax.f32 %v5213_v23, 0.0  ;;  %v7105_v19 = vpop.f32.mrb[56].mxu1 }
0x23e6   : > { %v5228_v45 = vadd.f32 %v7105_v19, %v6533_v44  ;;  %v5222_v55 = vpop.f32.mrb[57].mxu1 }
0x23e7   : > { %v5223_v22 = vadd.f32 %v6533_v44, %v5222_v55  ;;  %7140 = vmatprep.mubr.msk.f32.mxu0 %vm5275_vm5, %v5259_v41 }
0x23e8   : > { %7141 = vmatmul.mubr.msk.f32.gmra.mrb[58].mxu0 %vm5275_vm5, %v5260_v59  ;;  %v5262_v58 = vmax.f32 %v5228_v45, 0.0 }
0x23e9   : > { %v5261_v51 = vmax.f32 %v5223_v22, 0.0  ;;  %v7108_v57 = vpop.f32.mrb[58].mxu1 }
0x23ea   : > { %v5238_v20 = vadd.f32 %v7108_v57, %v6533_v44  ;;  %v5232_v43 = vpop.f32.mrb[59].mxu1 }
0x23eb   : > { %v5233_v48 = vadd.f32 %v6533_v44, %v5232_v43  ;;  %7143 = vmatprep.mubr.msk.f32.mxu0 %vm5275_vm5, %v5261_v51 }
0x23ec   : > { %7144 = vmatmul.mubr.msk.f32.gmra.mrb[60].mxu0 %vm5275_vm5, %v5262_v58  ;;  %v5264_v38 = vmax.f32 %v5238_v20, 0.0 }
0x23ed   : > { %v5263_v54 = vmax.f32 %v5233_v48, 0.0 }
0x23ef   : > { %7146 = vmatprep.mubr.msk.f32.mxu0 %vm5275_vm5, %v5263_v54 }
0x23f0   : > { %7147 = vmatmul.mubr.msk.f32.gmra.mrb[62].mxu0 %vm5275_vm5, %v5264_v38 }
0x2462   : > { %v7111_v25 = vpop.f32.mrb[60].mxu1 }
0x2463   : > { %v5248_v42 = vadd.f32 %v7111_v25, %v6533_v44  ;;  %v5242_v37 = vpop.f32.mrb[61].mxu1 }
0x2464   : > { %v5243_v47 = vadd.f32 %v6533_v44, %v5242_v37 }
0x2465   : > { %v5266_v62 = vmax.f32 %v5248_v42, 0.0 }
0x2466   : > { %v5265_v26 = vmax.f32 %v5243_v47, 0.0 }
0x2468   : > { %7149 = vmatprep.mubr.msk.f32.mxu0 %vm5275_vm5, %v5265_v26 }
0x2469   : > { %7150 = vmatmul.mubr.msk.f32.gmra.mrb[64].mxu0 %vm5275_vm5, %v5266_v62 }
0x24ab   : > { %v7130_v16 = vpop.f32.mrb[50].mxu0 }
0x24ac   : > { %v5470_v17 = vadd.f32 %v7130_v16, %v9203_v30  ;;  %v5390_v49 = vpop.f32.mrb[51].mxu0 }
0x24ad   : > { %v5469_v21 = vadd.f32 %v5390_v49, %v9199_v61 }
0x24ae   : > { %v9344_v44 = vadd.f32 %v9339_v24, %v5470_v17 }
0x24af   : > { %v9347_v34 = vadd.f32 %v9339_v24, %v5469_v21  ;;  %v7133_v40 = vpop.f32.mrb[52].mxu0 }
0x24b0   : > { %v5472_v18 = vadd.f32 %v7133_v40, %v9217_v50  ;;  %v5400_v32 = vpop.f32.mrb[53].mxu0  ;;  %v5513_v56 = vsel %vm1001_vm1, %v9344_v44, 0.0 }
0x24b1   : > { %v5471_v23 = vadd.f32 %v5400_v32, %v9213_v36  ;;  %5514 = vadd.xlane.f32.xlu0 %v5513_v56  ;;  %v5510_v30 = vsel %vm1001_vm1, %v9347_v34, 0.0 }
0x24b2   : > { %v9356_v61 = vadd.f32 %v9339_v24, %v5472_v18  ;;  %5511 = vadd.xlane.f32.xlu1 %v5510_v30 }
0x24b3   : > { %v9359_v41 = vadd.f32 %v9339_v24, %v5471_v23  ;;  %v7136_v19 = vpop.f32.mrb[54].mxu0 }
0x24b4   : > { %v5474_v50 = vadd.f32 %v7136_v19, %v9231_v63  ;;  %v5410_v59 = vpop.f32.mrb[55].mxu0  ;;  %v5519_v45 = vsel %vm1001_vm1, %v9356_v61, 0.0 }
0x24b5   : > { %v5473_v36 = vadd.f32 %v5410_v59, %v9227_v28  ;;  %5520 = vadd.xlane.f32.xlu0 %v5519_v45  ;;  %v5516_v55 = vsel %vm1001_vm1, %v9359_v41, 0.0 }
0x24b6   : > { %v9368_v22 = vadd.f32 %v9339_v24, %v5474_v50  ;;  %5517 = vadd.xlane.f32.xlu1 %v5516_v55 }
0x24b7   : > { %v9371_v51 = vadd.f32 %v9339_v24, %v5473_v36  ;;  %v7139_v57 = vpop.f32.mrb[56].mxu0 }
0x24b8   : > { %v5476_v63 = vadd.f32 %v7139_v57, %v9245_v53  ;;  %v5420_v58 = vpop.f32.mrb[57].mxu0  ;;  %v5525_v20 = vsel %vm1001_vm1, %v9368_v22, 0.0 }
0x24b9   : > { %v5475_v28 = vadd.f32 %v5420_v58, %v9241_v52  ;;  %5526 = vadd.xlane.f32.xlu0 %v5525_v20  ;;  %v5522_v43 = vsel %vm1001_vm1, %v9371_v51, 0.0 }
0x24ba   : > { %v9380_v48 = vadd.f32 %v9339_v24, %v5476_v63  ;;  %5523 = vadd.xlane.f32.xlu1 %v5522_v43 }
0x24bb   : > { %v9383_v54 = vadd.f32 %v9339_v24, %v5475_v28  ;;  %v7142_v38 = vpop.f32.mrb[58].mxu0 }
0x24bc   : > { %v5478_v53 = vadd.f32 %v7142_v38, %v9259_v27  ;;  %v5430_v25 = vpop.f32.mrb[59].mxu0  ;;  %v5531_v42 = vsel %vm1001_vm1, %v9380_v48, 0.0 }
0x24bd   : > { %v5477_v52 = vadd.f32 %v5430_v25, %v9255_v33  ;;  %5532 = vadd.xlane.f32.xlu0 %v5531_v42  ;;  %v5528_v37 = vsel %vm1001_vm1, %v9383_v54, 0.0 }
0x24be   : > { %v9392_v47 = vadd.f32 %v9339_v24, %v5478_v53  ;;  %5529 = vadd.xlane.f32.xlu1 %v5528_v37 }
0x24bf   : > { %v9395_v26 = vadd.f32 %v9339_v24, %v5477_v52  ;;  %v7145_v62 = vpop.f32.mrb[60].mxu0 }
0x24c0   : > { %v5480_v27 = vadd.f32 %v7145_v62, %v9276_v60  ;;  %v5440_v16 = vpop.f32.mrb[61].mxu0  ;;  %v5537_v17 = vsel %vm1001_vm1, %v9392_v47, 0.0 }
0x24c1   : > { %v5479_v33 = vadd.f32 %v5440_v16, %v9269_v29  ;;  %5538 = vadd.xlane.f32.xlu0 %v5537_v17  ;;  %v5534_v49 = vsel %vm1001_vm1, %v9395_v26, 0.0 }
0x24c2   : > { %v9404_v21 = vadd.f32 %v9339_v24, %v5480_v27  ;;  %5535 = vadd.xlane.f32.xlu1 %v5534_v49 }
0x24c3   : > { %v9407_v40 = vadd.f32 %v9339_v24, %v5479_v33  ;;  %v7148_v18 = vpop.f32.mrb[62].mxu0 }
0x24c4   : > { %v5482_v60 = vadd.f32 %v7148_v18, %v9291_v35  ;;  %v5450_v32 = vpop.f32.mrb[63].mxu0  ;;  %v5543_v56 = vsel %vm1001_vm1, %v9404_v21, 0.0 }
0x24c5   : > { %v5481_v29 = vadd.f32 %v5450_v32, %v9288_v46  ;;  %5544 = vadd.xlane.f32.xlu0 %v5543_v56  ;;  %v5540_v23 = vsel %vm1001_vm1, %v9407_v40, 0.0  ;;  %v8024_v46 = vmov 0  }
0x24c6   : > { %v9416_v30 = vadd.f32 %v9339_v24, %v5482_v60  ;;  %5541 = vadd.xlane.f32.xlu1 %v5540_v23  ;;  %7621 = vset.pattern.permute.xlu0 %v8024_v46 }
0x24c7   : > { %v9419_v19 = vadd.f32 %v9339_v24, %v5481_v29  ;;  %7620 = vset.pattern.permute.xlu1 %v8024_v46 }
0x24c8   : > { %v5549_v35 = vsel %vm1001_vm1, %v9416_v30, 0.0 }
0x24c9   : > { %5550 = vadd.xlane.f32.xlu0 %v5549_v35  ;;  %v5546_v50 = vsel %vm1001_vm1, %v9419_v19, 0.0 }
0x24ca   : > { %5547 = vadd.xlane.f32.xlu1 %v5546_v50 }
0x253c   : > { %v7151_v59 = vpop.f32.mrb[64].mxu0 }
0x253d   : > { %v9425_v45 = vpop.f32.mrb[65].mxu0  ;;  %v5484_v49 = vadd.f32 %v7151_v59, %v9307_v39 }
0x253e   : > { %v5515_v36 = vpop.xlane.xlu0 %5514 }
0x253f   : > { %v5559_v55 = vmul.f32 0.03125, %v5515_v36  ;;  %v5512_v57 = vpop.xlane.xlu1 %5511 }
0x2540   : > { %v5558_v63 = vmul.f32 0.03125, %v5512_v57 }
0x2541   : > { %v9428_v58 = vsub.f32 %v9344_v44, %v5559_v55 }
0x2542   : > { %v9431_v20 = vsub.f32 %v9347_v34, %v5558_v63  ;;  %v5521_v28 = vpop.xlane.xlu0 %5520 }
0x2543   : > { %v5561_v43 = vmul.f32 0.03125, %v5521_v28  ;;  %v5518_v38 = vpop.xlane.xlu1 %5517  ;;  %v5591_v53 = vmul.f32 %v9428_v58, %v9428_v58 }
0x2544   : > { %v5560_v25 = vmul.f32 0.03125, %v5518_v38  ;;  %v5590_v42 = vmul.f32 %v9431_v20, %v9431_v20 }
0x2545   : > { %v9438_v52 = vsub.f32 %v9356_v61, %v5561_v43  ;;  %v5609_v37 = vsel %vm1001_vm1, %v5591_v53, 0.0 }
0x2546   : > { %v9442_v44 = vsub.f32 %v9359_v41, %v5560_v25  ;;  %v5527_v34 = vpop.xlane.xlu0 %5526  ;;  %5610 = vadd.xlane.f32.xlu0 %v5609_v37  ;;  %v5606_v62 = vsel %vm1001_vm1, %v5590_v42, 0.0 }
0x2547   : > { %v5563_v27 = vmul.f32 0.03125, %v5527_v34  ;;  %5607 = vadd.xlane.f32.xlu1 %v5606_v62  ;;  %v5524_v16 = vpop.xlane.xlu1 %5523  ;;  %v5593_v17 = vmul.f32 %v9438_v52, %v9438_v52 }
0x2548   : > { %v5562_v33 = vmul.f32 0.03125, %v5524_v16  ;;  %v5592_v61 = vmul.f32 %v9442_v44, %v9442_v44 }
0x2549   : > { %v9451_v18 = vsub.f32 %v9368_v22, %v5563_v27  ;;  %v5615_v41 = vsel %vm1001_vm1, %v5593_v17, 0.0  ;;  %v9463_v22 = vadd.f32 %v9339_v24, %v5484_v49 }
0x254a   : > { %v9455_v60 = vsub.f32 %v9371_v51, %v5562_v33  ;;  %v5533_v32 = vpop.xlane.xlu0 %5532  ;;  %5616 = vadd.xlane.f32.xlu0 %v5615_v41  ;;  %v5612_v56 = vsel %vm1001_vm1, %v5592_v61, 0.0 }
0x254b   : > { %v5565_v29 = vmul.f32 0.03125, %v5533_v32  ;;  %5613 = vadd.xlane.f32.xlu1 %v5612_v56  ;;  %v5530_v23 = vpop.xlane.xlu1 %5529  ;;  %v5595_v35 = vmul.f32 %v9451_v18, %v9451_v18 }
0x254c   : > { %v5564_v50 = vmul.f32 0.03125, %v5530_v23  ;;  %v5594_v39 = vmul.f32 %v9455_v60, %v9455_v60 }
0x254d   : > { %v9466_v51 = vsub.f32 %v9380_v48, %v5565_v29  ;;  %v5621_v46 = vsel %vm1001_vm1, %v5595_v35, 0.0  ;;  %v5555_v48 = vsel %vm1001_vm1, %v9463_v22, 0.0 }
0x254e   : > { %v9470_v59 = vsub.f32 %v9383_v54, %v5564_v50  ;;  %v5539_v36 = vpop.xlane.xlu0 %5538  ;;  %5622 = vadd.xlane.f32.xlu0 %v5621_v46  ;;  %v5618_v55 = vsel %vm1001_vm1, %v5594_v39, 0.0 }
0x254f   : > { %v5567_v57 = vmul.f32 0.03125, %v5539_v36  ;;  %5619 = vadd.xlane.f32.xlu1 %v5618_v55  ;;  %v5536_v63 = vpop.xlane.xlu1 %5535  ;;  %v5597_v54 = vmul.f32 %v9466_v51, %v9466_v51 }
0x2550   : > { %v5566_v28 = vmul.f32 0.03125, %v5536_v63  ;;  %v5596_v43 = vmul.f32 %v9470_v59, %v9470_v59 }
0x2551   : > { %v9476_v38 = vsub.f32 %v9392_v47, %v5567_v57  ;;  %v5627_v16 = vsel %vm1001_vm1, %v5597_v54, 0.0 }
0x2552   : > { %v9483_v53 = vsub.f32 %v9395_v26, %v5566_v28  ;;  %v5545_v25 = vpop.xlane.xlu0 %5544  ;;  %5556 = vadd.xlane.f32.xlu0 %v5555_v48  ;;  %v5624_v42 = vsel %vm1001_vm1, %v5596_v43, 0.0 }
0x2553   : > { %v5569_v37 = vmul.f32 0.03125, %v5545_v25  ;;  %5625 = vadd.xlane.f32.xlu1 %v5624_v42  ;;  %v5542_v34 = vpop.xlane.xlu1 %5541  ;;  %v5599_v26 = vmul.f32 %v9476_v38, %v9476_v38 }
0x2554   : > { %v5568_v62 = vmul.f32 0.03125, %v5542_v34  ;;  %v5598_v47 = vmul.f32 %v9483_v53, %v9483_v53 }
0x2555   : > { %v9489_v27 = vsub.f32 %v9404_v21, %v5569_v37  ;;  %v5633_v29 = vsel %vm1001_vm1, %v5599_v26, 0.0 }
0x2556   : > { %v9495_v17 = vsub.f32 %v9407_v40, %v5568_v62  ;;  %v5551_v33 = vpop.xlane.xlu0 %5550  ;;  %5628 = vadd.xlane.f32.xlu0 %v5627_v16  ;;  %v5630_v61 = vsel %vm1001_vm1, %v5598_v47, 0.0 }
0x2557   : > { %v5571_v49 = vmul.f32 0.03125, %v5551_v33  ;;  %5631 = vadd.xlane.f32.xlu1 %v5630_v61  ;;  %v5548_v41 = vpop.xlane.xlu1 %5547  ;;  %v5601_v40 = vmul.f32 %v9489_v27, %v9489_v27 }
0x2558   : > { %v5570_v32 = vmul.f32 0.03125, %v5548_v41  ;;  %v5600_v21 = vmul.f32 %v9495_v17, %v9495_v17 }
0x2559   : > { %v9501_v56 = vsub.f32 %v9416_v30, %v5571_v49  ;;  %v5639_v39 = vsel %vm1001_vm1, %v5601_v40, 0.0 }
0x255a   : > { %v9507_v23 = vsub.f32 %v9419_v19, %v5570_v32  ;;  %5634 = vadd.xlane.f32.xlu0 %v5633_v29  ;;  %v5636_v35 = vsel %vm1001_vm1, %v5600_v21, 0.0  ;;  %v5483_v19 = vadd.f32 %v9425_v45, %v9304_v31 }
0x255b   : > { %5637 = vadd.xlane.f32.xlu1 %v5636_v35  ;;  %v5603_v30 = vmul.f32 %v9501_v56, %v9501_v56 }
0x255c   : > { %v5602_v50 = vmul.f32 %v9507_v23, %v9507_v23  ;;  %v9528_v55 = vadd.f32 %v9339_v24, %v5483_v19  ;;  %v9558_v19 = vld [vmem:[%s9906_s8] ss:$0 sm:$0xff] }
0x255d   : > { %v5645_v36 = vsel %vm1001_vm1, %v5603_v30, 0.0 }
0x255e   : > { %5640 = vadd.xlane.f32.xlu0 %v5639_v39  ;;  %v5642_v46 = vsel %vm1001_vm1, %v5602_v50, 0.0  ;;  %v5552_v57 = vsel %vm1001_vm1, %v9528_v55, 0.0 }
0x255f   : > { %5643 = vadd.xlane.f32.xlu1 %v5642_v46 }
0x2562   : > { %5646 = vadd.xlane.f32.xlu0 %v5645_v36 }
0x2570   : > { %5764 = vperm.xlu1 %7620, %v8295_v0  }
0x2574   : > { %5774 = vperm.xlu1 %7620, %v8299_v2  }
0x2578   : > { %5769 = vperm.xlu0 %7621, %v8297_v1   ;;  %5779 = vperm.xlu1 %7620, %v8306_v3  }
0x257c   : > { %5784 = vperm.xlu1 %7620, %v8308_v4   ;;  %5814 = vperm.xlu0 %7621, %v8323_v10  }
0x2580   : > { %5789 = vperm.xlu1 %7620, %v8310_v5   ;;  %5824 = vperm.xlu0 %7621, %v8334_v12  }
0x25a4   : > { %5553 = vadd.xlane.f32.xlu1 %v5552_v57 }
0x25b5   : > { %5794 = vperm.xlu1 %7620, %v8315_v6  }
0x25b9   : > { %5799 = vperm.xlu1 %7620, %v8317_v7  }
0x25bd   : > { %5804 = vperm.xlu1 %7620, %v8319_v8  }
0x25c1   : > { %5809 = vperm.xlu1 %7620, %v8321_v9  }
0x25c5   : > { %5819 = vperm.xlu1 %7620, %v8325_v11  }
0x25c9   : > { %5829 = vperm.xlu1 %7620, %v8336_v13  }
0x25d3   : > { %v5611_v31 = vpop.xlane.xlu0 %5610 }
0x25d4   : > { %v5608_v45 = vpop.xlane.xlu1 %5607  ;;  %v5655_v48 = vmul.f32 0.03125, %v5611_v31 }
0x25d5   : > { %v5654_v24 = vmul.f32 0.03125, %v5608_v45 }
0x25d6   : > { %v5671_v62 = vadd.f32 1e-05, %v5655_v48 }
0x25d7   : > { %v5670_v63 = vadd.f32 1e-05, %v5654_v24  ;;  %v5617_v28 = vpop.xlane.xlu0 %5616 }
0x25d8   : > { %v5614_v43 = vpop.xlane.xlu1 %5613  ;;  %v5657_v25 = vmul.f32 0.03125, %v5617_v28 }
0x25d9   : > { %v5656_v54 = vmul.f32 0.03125, %v5614_v43  ;;  %7782 = vrsqrt.f32 %v5670_v63 }
0x25da   : > { %v5673_v47 = vadd.f32 1e-05, %v5657_v25 }
0x25db   : > { %v5672_v42 = vadd.f32 1e-05, %v5656_v54  ;;  %v5623_v37 = vpop.xlane.xlu0 %5622 }
0x25dc   : > { %v5620_v34 = vpop.xlane.xlu1 %5619  ;;  %v5659_v49 = vmul.f32 0.03125, %v5623_v37 }
0x25dd   : > { %7784 = vrsqrt.f32 %v5672_v42  ;;  %v5658_v16 = vmul.f32 0.03125, %v5620_v34 }
0x25de   : > { %7786 = vrsqrt.f32 %v5671_v62  ;;  %v5675_v50 = vadd.f32 1e-05, %v5659_v49 }
0x25df   : > { %v5557_v26 = vpop.xlane.xlu0 %5556  ;;  %7788 = vrsqrt.f32 %v5673_v47  ;;  %v5674_v41 = vadd.f32 1e-05, %v5658_v16 }
0x25e0   : > { %v5573_v33 = vmul.f32 0.03125, %v5557_v26  ;;  %v9538_v61 = vpop.xlane.xlu1 %5625 }
0x25e1   : > { %7790 = vrsqrt.f32 %v5674_v41 }
0x25e2   : > { %v9541_v32 = vsub.f32 %v9463_v22, %v5573_v33  ;;  %7792 = vrsqrt.f32 %v5675_v50 }
0x25e3   : > { %v9543_v21 = vpop.xlane.xlu0 %5628  ;;  %v7783_v29 = vpop.eup %7782 }
0x25e4   : > { %v9545_v40 = vpop.xlane.xlu1 %5631  ;;  %v5605_v35 = vmul.f32 %v9541_v32, %v9541_v32  ;;  %v5702_v46 = vmul.f32 %v7783_v29, %v9431_v20  ;;  %v9567_v20 = vld [vmem:[%s790_s28] ss:$0 sm:$0xff] }
0x25e6   : > { %v5651_v39 = vsel %vm1001_vm1, %v5605_v35, 0.0  ;;  %v5724_v24 = vmul.f32 %v9558_v19, %v5702_v46 }
0x25e7   : > { %5652 = vadd.xlane.f32.xlu0 %v5651_v39  ;;  %v9550_v30 = vpop.xlane.xlu0 %5634  ;;  %v7785_v22 = vpop.eup %7784 }
0x25e8   : > { %v5638_v36 = vpop.xlane.xlu1 %5637  ;;  %v7787_v31 = vpop.eup %7786  ;;  %v5704_v63 = vmul.f32 %v7785_v22, %v9442_v44  ;;  %v5746_v37 = vadd.f32 %v9567_v20, %v5724_v24 }
0x25e9   : > { %v5664_v57 = vmul.f32 0.03125, %v5638_v36  ;;  %v7789_v28 = vpop.eup %7788  ;;  %v5703_v25 = vmul.f32 %v7787_v31, %v9428_v58 }
0x25ea   : > { %v5726_v34 = vmul.f32 %v9558_v19, %v5704_v63  ;;  %v5705_v44 = vmul.f32 %v7789_v28, %v9438_v52 }
0x25eb   : > { %v5680_v45 = vadd.f32 1e-05, %v5664_v57  ;;  %v9569_v48 = vpop.xlane.xlu0 %5640  ;;  %v7791_v62 = vpop.eup %7790  ;;  %v5725_v26 = vmul.f32 %v9558_v19, %v5703_v25 }
0x25ec   : > { %v5644_v43 = vpop.xlane.xlu1 %5643  ;;  %v5748_v58 = vadd.f32 %v9567_v20, %v5726_v34  ;;  %v5727_v49 = vmul.f32 %v9558_v19, %v5705_v44  ;;  %v5706_v41 = vmul.f32 %v7791_v62, %v9455_v60  ;;  %v7793_v29 = vpop.eup %7792 }
0x25ed   : > { %7794 = vrsqrt.f32 %v5680_v45  ;;  %v5666_v54 = vmul.f32 0.03125, %v5644_v43  ;;  %v5747_v50 = vadd.f32 %v9567_v20, %v5725_v26  ;;  %v5707_v57 = vmul.f32 %v7793_v29, %v9451_v18 }
0x25ee   : > { %v5749_v22 = vadd.f32 %v9567_v20, %v5727_v49  ;;  %v5728_v36 = vmul.f32 %v9558_v19, %v5706_v41  ;;  %v5660_v41 = vmul.f32 0.03125, %v9538_v61 }
0x25ef   : > { %v5682_v42 = vadd.f32 1e-05, %v5666_v54  ;;  %v5647_v33 = vpop.xlane.xlu0 %5646  ;;  %v5729_v18 = vmul.f32 %v9558_v19, %v5707_v57  ;;  %v5665_v57 = vmul.f32 0.03125, %v9569_v48 }
0x25f0   : > { %v5765_v47 = vpop.permute.xlu1 %5764  ;;  %v5750_v43 = vadd.f32 %v9567_v20, %v5728_v36  ;;  %v5676_v29 = vadd.f32 1e-05, %v5660_v41 }
0x25f1   : > { %7796 = vrsqrt.f32 %v5682_v42  ;;  %v9575_v16 = vmul.f32 %v5765_v47, %v5746_v37  ;;  %v5751_v62 = vadd.f32 %v9567_v20, %v5729_v18 }
0x25f2   : > { %7798 = vrsqrt.f32 %v5676_v29 }
0x25f3   : > { %5858 = vst.msk [vmem:[#allocation2] sm:$0xff] %vm1001_vm1, %v9575_v16 }
0x25f4   : > { %v5775_v35 = vpop.permute.xlu1 %5774 }
0x25f5   : > { %v9583_v52 = vmul.f32 %v5775_v35, %v5748_v58  ;;  %v5661_v35 = vmul.f32 0.03125, %v9543_v21 }
0x25f7   : > { %v7795_v39 = vpop.eup %7794  ;;  %5860 = vst.msk [vmem:[#allocation2 + $0x10] sm:$0xff] %vm1001_vm1, %v9583_v52  ;;  %v5770_v46 = vpop.permute.xlu0 %5769 }
0x25f8   : > { %v9591_v31 = vmul.f32 %v5770_v46, %v5747_v50  ;;  %v5780_v60 = vpop.permute.xlu1 %5779  ;;  %v5712_v45 = vmul.f32 %v7795_v39, %v9495_v17  ;;  %v5677_v50 = vadd.f32 1e-05, %v5661_v35  ;;  %v5662_v39 = vmul.f32 0.03125, %v9545_v40 }
0x25f9   : > { %v9594_v24 = vmul.f32 %v5780_v60, %v5749_v22  ;;  %v5663_v22 = vmul.f32 0.03125, %v9550_v30 }
0x25fa   : > { %5859 = vst.msk [vmem:[#allocation2 + $0x8] sm:$0xff] %vm1001_vm1, %v9591_v31  ;;  %v5734_v63 = vmul.f32 %v9558_v19, %v5712_v45  ;;  %7800 = vrsqrt.f32 %v5677_v50  ;;  %v5678_v46 = vadd.f32 1e-05, %v5662_v39  ;;  %v5681_v45 = vadd.f32 1e-05, %v5665_v57 }
0x25fb   : > { %v7797_v28 = vpop.eup %7796  ;;  %5861 = vst.msk [vmem:[#allocation2 + $0x18] sm:$0xff] %vm1001_vm1, %v9594_v24  ;;  %v5815_v54 = vpop.permute.xlu0 %5814  ;;  %v5679_v36 = vadd.f32 1e-05, %v5663_v22 }
0x25fc   : > { %v5785_v25 = vpop.permute.xlu1 %5784  ;;  %v5756_v42 = vadd.f32 %v9567_v20, %v5734_v63  ;;  %v5714_v17 = vmul.f32 %v7797_v28, %v9507_v23  ;;  %7802 = vrsqrt.f32 %v5678_v46  ;;  %v7799_v60 = vpop.eup %7798  ;;  %v5667_v63 = vmul.f32 0.03125, %v5647_v33 }
0x25fd   : > { %v9605_v37 = vmul.f32 %v5785_v25, %v5750_v43  ;;  %5834 = vperm.xlu0 %7621, %v8338_v14   ;;  %7804 = vrsqrt.f32 %v5679_v36  ;;  %v5708_v61 = vmul.f32 %v7799_v60, %v9470_v59 }
0x25fe   : > { %v9608_v34 = vmul.f32 %v5815_v54, %v5756_v42  ;;  %v5736_v44 = vmul.f32 %v9558_v19, %v5714_v17  ;;  %7806 = vrsqrt.f32 %v5681_v45  ;;  %v5683_v21 = vadd.f32 1e-05, %v5667_v63 }
0x25ff   : > { %5862 = vst.msk [vmem:[#allocation2 + $0x20] sm:$0xff] %vm1001_vm1, %v9605_v37  ;;  %v5825_v47 = vpop.permute.xlu0 %5824  ;;  %v5730_v43 = vmul.f32 %v9558_v19, %v5708_v61 }
0x2600   : > { %5868 = vst.msk [vmem:[#allocation2 + $0x50] sm:$0xff] %vm1001_vm1, %v9608_v34  ;;  %v5790_v26 = vpop.permute.xlu1 %5789  ;;  %v5758_v23 = vadd.f32 %v9567_v20, %v5736_v44  ;;  %7808 = vrsqrt.f32 %v5683_v21 }
0x2601   : > { %v9617_v58 = vmul.f32 %v5790_v26, %v5751_v62  ;;  %v5752_v48 = vadd.f32 %v9567_v20, %v5730_v43 }
0x2602   : > { %v9619_v49 = vmul.f32 %v5825_v47, %v5758_v23 }
0x2603   : > { %5863 = vst.msk [vmem:[#allocation2 + $0x28] sm:$0xff] %vm1001_vm1, %v9617_v58 }
0x2604   : > { %5870 = vst.msk [vmem:[#allocation2 + $0x60] sm:$0xff] %vm1001_vm1, %v9619_v49  ;;  %v7801_v28 = vpop.eup %7800 }
0x2605   : > { %v5709_v40 = vmul.f32 %v7801_v28, %v9466_v51 }
0x2606   : > { %v7803_v54 = vpop.eup %7802 }
0x2607   : > { %v5731_v42 = vmul.f32 %v9558_v19, %v5709_v40  ;;  %v5710_v33 = vmul.f32 %v7803_v54, %v9483_v53  ;;  %v7805_v59 = vpop.eup %7804 }
0x2608   : > { %v5711_v26 = vmul.f32 %v7805_v59, %v9476_v38  ;;  %v7807_v23 = vpop.eup %7806 }
0x2609   : > { %v5753_v47 = vadd.f32 %v9567_v20, %v5731_v42  ;;  %v5713_v50 = vmul.f32 %v7807_v23, %v9489_v27 }
0x260a   : > { %v5733_v35 = vmul.f32 %v9558_v19, %v5711_v26  ;;  %v7809_v39 = vpop.eup %7808 }
0x260b   : > { %v5735_v36 = vmul.f32 %v9558_v19, %v5713_v50  ;;  %v5715_v57 = vmul.f32 %v7809_v39, %v9501_v56  ;;  %v5880_v50 = vsel (!%p6569_p13), %vm5878_vm6, %v8297_v1, 0.0 }
0x260c   : > { %v5755_v38 = vadd.f32 %v9567_v20, %v5733_v35  ;;  %v8025_v35 = vmov (!%p6569_p13), 0  }
0x260d   : > { %v5757_v27 = vadd.f32 %v9567_v20, %v5735_v36  ;;  %v5737_v63 = vmul.f32 %v9558_v19, %v5715_v57  ;;  %7831 = vset.pattern.permute.xlu0 (!%p6569_p13), %v8025_v35  ;;  %v5907_v36 = vsel (!%p6569_p13), %vm5878_vm6, %v8317_v7, 0.0  ;;  %v5915_v7 = vsel (!%p6569_p13), %vm5878_vm6, %v8319_v8, 0.0 }
0x260f   : > { %v5759_v21 = vadd.f32 %v9567_v20, %v5737_v63  ;;  %v5925_v63 = vsel (!%p6569_p13), %vm5878_vm6, %v8325_v11, 0.0  ;;  %v5943_v11 = vsel (!%p6569_p13), %vm5878_vm6, %v8350_v15, 0.0 }
0x2631   : > { %v5554_v18 = vpop.xlane.xlu1 %5553 }
0x2632   : > { %v5572_v30 = vmul.f32 0.03125, %v5554_v18 }
0x2634   : > { %v5588_v25 = vsub.f32 %v9528_v55, %v5572_v30  ;;  %v5732_v55 = vmul.f32 %v9558_v19, %v5710_v33 }
0x2635   : > { %v5795_v17 = vpop.permute.xlu1 %5794 }
0x2636   : > { %v9637_v44 = vmul.f32 %v5795_v17, %v5752_v48  ;;  %v5604_v62 = vmul.f32 %v5588_v25, %v5588_v25  ;;  %v5754_v29 = vadd.f32 %v9567_v20, %v5732_v55 }
0x2638   : > { %5864 = vst.msk [vmem:[#allocation2 + $0x30] sm:$0xff] %vm1001_vm1, %v9637_v44  ;;  %v5648_v51 = vsel %vm1001_vm1, %v5604_v62, 0.0 }
0x2639   : > { %5649 = vadd.xlane.f32.xlu1 %v5648_v51  ;;  %v5800_v41 = vpop.permute.xlu1 %5799 }
0x263a   : > { %v9645_v53 = vmul.f32 %v5800_v41, %v5753_v47 }
0x263c   : > { %5865 = vst.msk [vmem:[#allocation2 + $0x38] sm:$0xff] %vm1001_vm1, %v9645_v53 }
0x263d   : > { %v5805_v46 = vpop.permute.xlu1 %5804 }
0x263e   : > { %v9652_v22 = vmul.f32 %v5805_v46, %v5754_v29 }
0x2640   : > { %5866 = vst.msk [vmem:[#allocation2 + $0x40] sm:$0xff] %vm1001_vm1, %v9652_v22 }
0x2641   : > { %v5810_v60 = vpop.permute.xlu1 %5809 }
0x2642   : > { %v9659_v45 = vmul.f32 %v5810_v60, %v5755_v38  ;;  %v5906_v38 = vsel (!%p6569_p13), %vm5878_vm6, %v8315_v6, 0.0 }
0x2643   : > { %v5908_v57 = vadd.f32 (!%p6569_p13), %v5907_v36, %v5906_v38 }
0x2644   : > { %5867 = vst.msk [vmem:[#allocation2 + $0x48] sm:$0xff] %vm1001_vm1, %v9659_v45 }
0x2645   : > { %v5820_v61 = vpop.permute.xlu1 %5819  ;;  %v5909_v6 = vrot.slane (!%p6569_p13), %v5908_v57, 4 }
0x2646   : > { %v9665_v28 = vmul.f32 %v5820_v61, %v5757_v27 }
0x2648   : > { %5869 = vst.msk [vmem:[#allocation2 + $0x58] sm:$0xff] %vm1001_vm1, %v9665_v28 }
0x2649   : > { %v5830_v43 = vpop.permute.xlu1 %5829 }
0x264a   : > { %v9670_v56 = vmul.f32 %v5830_v43, %v5759_v21  ;;  %5839 = vperm.xlu1 %7620, %v8350_v15   ;;  %v5934_v15 = vsel (!%p6569_p13), %vm5878_vm6, %v8336_v13, 0.0 }
0x264c   : > { %5871 = vst.msk [vmem:[#allocation2 + $0x68] sm:$0xff] %vm1001_vm1, %v9670_v56 }
0x264e   : > { %7832 = vset.pattern.permute.xlu1 (!%p6569_p13), %v8025_v35 }
0x2674   : > { %v5653_v40 = vpop.xlane.xlu0 %5652 }
0x2675   : > { %v5669_v54 = vmul.f32 0.03125, %v5653_v40 }
0x2677   : > { %v5685_v18 = vadd.f32 1e-05, %v5669_v54  ;;  %v5910_v54 = vadd.f32 (!%p6569_p13), %v5909_v6, %v5908_v57 }
0x2679   : > { %7810 = vrsqrt.f32 %v5685_v18  ;;  %v5942_v18 = vsel (!%p6569_p13), %vm5878_vm6, %v8338_v14, 0.0  ;;  %v5911_v8 = vrot.slane (!%p6569_p13), %v5910_v54, 2 }
0x267c   : > { %v5835_v41 = vpop.permute.xlu0 %5834 }
0x2683   : > { %v7811_v30 = vpop.eup %7810 }
0x2684   : > { %v5717_v48 = vmul.f32 %v7811_v30, %v9541_v32 }
0x2686   : > { %v5739_v42 = vmul.f32 %v9558_v19, %v5717_v48 }
0x2688   : > { %v5761_v62 = vadd.f32 %v9567_v20, %v5739_v42 }
0x26c6   : > { %v5650_v33 = vpop.xlane.xlu1 %5649 }
0x26c7   : > { %v5668_v59 = vmul.f32 0.03125, %v5650_v33 }
0x26c9   : > { %v5684_v17 = vadd.f32 1e-05, %v5668_v59 }
0x26ca   : > { %v5840_v51 = vpop.permute.xlu1 %5839 }
0x26cb   : > { %7812 = vrsqrt.f32 %v5684_v17  ;;  %v9678_v47 = vmul.f32 %v5840_v51, %v5761_v62  ;;  %v5944_v17 = vadd.f32 (!%p6569_p13), %v5943_v11, %v5942_v18 }
0x26cd   : > { %5873 = vst.msk [vmem:[#allocation2 + $0x78] sm:$0xff] %vm1001_vm1, %v9678_v47  ;;  %v5945_v14 = vrot.slane (!%p6569_p13), %v5944_v17, 4 }
0x26d5   : > { %v7813_v55 = vpop.eup %7812 }
0x26d6   : > { %v5716_v26 = vmul.f32 %v7813_v55, %v5588_v25  ;;  %v5897_v25 = vsel (!%p6569_p13), %vm5878_vm6, %v8308_v4, 0.0  ;;  %v5888_v4 = vsel (!%p6569_p13), %vm5878_vm6, %v8299_v2, 0.0  ;;  %v5916_v2 = vsel (!%p6569_p13), %vm5878_vm6, %v8321_v9, 0.0 }
0x26d7   : > { %v5917_v40 = vadd.f32 (!%p6569_p13), %v5916_v2, %v5915_v7  ;;  %v5933_v9 = vsel (!%p6569_p13), %vm5878_vm6, %v8334_v12, 0.0 }
0x26d8   : > { %v5738_v23 = vmul.f32 %v9558_v19, %v5716_v26  ;;  %5877 = sbr.rel (%p6569_p13) target bundleno = 10119 (0x2787), region = 100  ;;  %v5898_v19 = vsel (!%p6569_p13), %vm5878_vm6, %v8310_v5, 0.0  ;;  %v5889_v5 = vsel (!%p6569_p13), %vm5878_vm6, %v8306_v3, 0.0 }
0x26d9   : > { %v5899_v39 = vadd.f32 (!%p6569_p13), %v5898_v19, %v5897_v25  ;;  %v5890_v27 = vadd.f32 (!%p6569_p13), %v5889_v5, %v5888_v4  ;;  %v5918_v33 = vrot.slane (!%p6569_p13), %v5917_v40, 4 }
0x26da   : > { %v5760_v32 = vadd.f32 %v9567_v20, %v5738_v23  ;;  %v5879_v20 = vsel (!%p6569_p13), %vm5878_vm6, %v8295_v0, 0.0  ;;  %v5924_v0 = vsel (!%p6569_p13), %vm5878_vm6, %v8323_v10, 0.0  ;;  %v5912_v23 = vadd.f32 (!%p6569_p13), %v5911_v8, %v5910_v54 }
0x26db   : > { %v5881_v46 = vadd.f32 (!%p6569_p13), %v5880_v50, %v5879_v20  ;;  %v5900_v60 = vrot.slane (!%p6569_p13), %v5899_v39, 4  ;;  %v5926_v61 = vadd.f32 (!%p6569_p13), %v5925_v63, %v5924_v0  ;;  %v5891_v3 = vrot.slane (!%p6569_p13), %v5890_v27, 4 }
0x26dc   : > { %v9684_v29 = vmul.f32 %v5835_v41, %v5760_v32  ;;  %v5919_v26 = vadd.f32 (!%p6569_p13), %v5918_v33, %v5917_v40  ;;  %v5913_v20 = vrot.slane (!%p6569_p13), %v5912_v23, 1  ;;  %v5959_v8 = vsel (!%p6569_p13), %vm1001_vm1, %v9575_v16, 0.0 }
0x26dd   : > { %v5882_v1 = vrot.slane (!%p6569_p13), %v5881_v46, 4  ;;  %v5901_v21 = vadd.f32 (!%p6569_p13), %v5900_v60, %v5899_v39  ;;  %v5927_v10 = vrot.slane (!%p6569_p13), %v5926_v61, 4  ;;  %v5892_v42 = vadd.f32 (!%p6569_p13), %v5891_v3, %v5890_v27 }
0x26de   : > { %5872 = vst.msk [vmem:[#allocation2 + $0x70] sm:$0xff] %vm1001_vm1, %v9684_v29  ;;  %v5920_v19 = vrot.slane (!%p6569_p13), %v5919_v26, 2  ;;  %v5946_v39 = vadd.f32 (!%p6569_p13), %v5945_v14, %v5944_v17  ;;  %v5914_v4 = vadd.f32 (!%p6569_p13), %v5913_v20, %v5912_v23  ;;  %v5968_v17 = vsel (!%p6569_p13), %vm1001_vm1, %v9583_v52, 0.0 }
0x26df   : > { %v5883_v43 = vadd.f32 %v5882_v1, %v5881_v46  ;;  %v5902_v30 = vrot.slane %v5901_v21, 2  ;;  %v5928_v59 = vadd.f32 %v5927_v10, %v5926_v61  ;;  %v5893_v55 = vrot.slane %v5892_v42, 2 }
0x26e0   : > { %v5935_v46 = vadd.f32 %v5934_v15, %v5933_v9  ;;  %v5921_v57 = vadd.f32 %v5920_v19, %v5919_v26  ;;  %v5947_v0 = vrot.slane %v5946_v39, 2  ;;  %v5954_v7 = vmax.f32 %v5914_v4, 1e-20 }
0x26e1   : > { %v5884_v48 = vrot.slane %v5883_v43, 2  ;;  %v5903_v62 = vadd.f32 %v5902_v30, %v5901_v21  ;;  %v5929_v32 = vrot.slane %v5928_v59, 2  ;;  %v5894_v25 = vadd.f32 %v5893_v55, %v5892_v42 }
0x26e2   : > { %v5936_v60 = vrot.slane %v5935_v46, 4  ;;  %v5922_v13 = vrot.slane %v5921_v57, 1  ;;  %v5948_v6 = vadd.f32 %v5947_v0, %v5946_v39  ;;  %v5969_v9 = vsel %vm1001_vm1, %v9594_v24, 0.0 }
0x26e3   : > { %v5885_v51 = vadd.f32 %v5884_v48, %v5883_v43  ;;  %v5904_v41 = vrot.slane %v5903_v62, 1  ;;  %v5930_v50 = vadd.f32 %v5929_v32, %v5928_v59  ;;  %v5895_v36 = vrot.slane %v5894_v25, 1 }
0x26e4   : > { %v5937_v61 = vadd.f32 %v5936_v60, %v5935_v46  ;;  %v5923_v43 = vadd.f32 %v5922_v13, %v5921_v57  ;;  %v5949_v3 = vrot.slane %v5948_v6, 1  ;;  %v5960_v59 = vsel %vm1001_vm1, %v9591_v31, 0.0 }
0x26e5   : > { %v5886_v35 = vrot.slane %v5885_v51, 1  ;;  %v5905_v38 = vadd.f32 %v5904_v41, %v5903_v62  ;;  %v5931_v5 = vrot.slane %v5930_v50, 1  ;;  %v5896_v63 = vadd.f32 %v5895_v36, %v5894_v25 }
0x26e6   : > { %v5938_v40 = vrot.slane %v5937_v61, 2  ;;  %v5955_v18 = vmax.f32 %v5923_v43, 1e-20  ;;  %v5950_v11 = vadd.f32 %v5949_v3, %v5948_v6  ;;  %v5977_v62 = vsel %vm1001_vm1, %v9605_v37, 0.0 }
0x26e7   : > { %v5887_v12 = vadd.f32 %v5886_v35, %v5885_v51  ;;  %v5953_v1 = vmax.f32 %v5905_v38, 1e-20  ;;  %v5952_v2 = vmax.f32 %v5896_v63, 1e-20  ;;  %v5932_v21 = vadd.f32 %v5931_v5, %v5930_v50 }
0x26e8   : > { %v5939_v54 = vadd.f32 %v5938_v40, %v5937_v61  ;;  %v5958_v42 = vmax.f32 %v5950_v11, 1e-20  ;;  %v5978_v51 = vsel %vm1001_vm1, %v9617_v58, 0.0  ;;  %v5961_v55 = vadd.f32 %v5960_v59, %v5959_v8 }
0x26e9   : > { %v5951_v27 = vmax.f32 %v5887_v12, 1e-20  ;;  %6043 = vperm.xlu1 %7832, %v5953_v1   ;;  %v5956_v10 = vmax.f32 %v5932_v21, 1e-20  ;;  %v5986_v26 = vsel %vm1001_vm1, %v9637_v44, 0.0  ;;  %v5987_v16 = vsel %vm1001_vm1, %v9645_v53, 0.0 }
0x26ea   : > { %v5940_v30 = vrot.slane %v5939_v54, 1  ;;  %v5970_v31 = vadd.f32 %v5969_v9, %v5968_v17  ;;  %v5979_v23 = vadd.f32 %v5978_v51, %v5977_v62  ;;  %v5995_v52 = vsel %vm1001_vm1, %v9652_v22, 0.0 }
0x26eb   : > { %6033 = vperm.xlu0 %7831, %v5951_v27   ;;  %v5996_v24 = vsel %vm1001_vm1, %v9659_v45, 0.0  ;;  %v5988_v32 = vadd.f32 %v5987_v16, %v5986_v26  ;;  %v6004_v37 = vsel %vm1001_vm1, %v9608_v34, 0.0  ;;  %v6005_v58 = vsel %vm1001_vm1, %v9665_v28, 0.0 }
0x26ec   : > { %v5941_v48 = vadd.f32 %v5940_v30, %v5939_v54  ;;  %v5962_v14 = vrot.slane %v5961_v55, 4  ;;  %v5971_v44 = vrot.slane %v5970_v31, 4  ;;  %v5997_v15 = vadd.f32 %v5996_v24, %v5995_v52 }
0x26ed   : > { %6048 = vperm.xlu1 %7832, %v5954_v7   ;;  %v6022_v53 = vsel %vm1001_vm1, %v9684_v29, 0.0  ;;  %v6023_v41 = vsel %vm1001_vm1, %v9678_v47, 0.0  ;;  %v5980_v22 = vrot.slane %v5979_v23, 4  ;;  %v6006_v35 = vadd.f32 %v6005_v58, %v6004_v37 }
0x26ee   : > { %v5957_v33 = vmax.f32 %v5941_v48, 1e-20  ;;  %v6013_v45 = vsel %vm1001_vm1, %v9619_v49, 0.0  ;;  %v6014_v34 = vsel %vm1001_vm1, %v9670_v56, 0.0  ;;  %v5989_v25 = vrot.slane %v5988_v32, 4 }
0x26ef   : > { %6038 = vperm.xlu0 %7831, %v5952_v2   ;;  %v5963_v19 = vadd.f32 %v5962_v14, %v5961_v55  ;;  %v6024_v28 = vadd.f32 %v6023_v41, %v6022_v53  ;;  %v5972_v20 = vadd.f32 %v5971_v44, %v5970_v31  ;;  %v5998_v50 = vrot.slane %v5997_v15, 4 }
0x26f0   : > { %v6015_v39 = vadd.f32 %v6014_v34, %v6013_v45  ;;  %v5981_v46 = vadd.f32 %v5980_v22, %v5979_v23  ;;  %v6007_v38 = vrot.slane %v6006_v35, 4  ;;  %v5990_v29 = vadd.f32 %v5989_v25, %v5988_v32 }
0x26f1   : > { %6058 = vperm.xlu1 %7832, %v5956_v10   ;;  %v5964_v36 = vrot.slane %v5963_v19, 2  ;;  %v6025_v57 = vrot.slane %v6024_v28, 4  ;;  %v5973_v4 = vrot.slane %v5972_v20, 2  ;;  %v5999_v5 = vadd.f32 %v5998_v50, %v5997_v15 }
0x26f2   : > { %v6016_v0 = vrot.slane %v6015_v39, 4  ;;  %v5982_v49 = vrot.slane %v5981_v46, 2  ;;  %v6008_v60 = vadd.f32 %v6007_v38, %v6006_v35  ;;  %v5991_v56 = vrot.slane %v5990_v29, 2 }
0x26f3   : > { %6053 = vperm.xlu0 %7831, %v5955_v18   ;;  %v5965_v1 = vadd.f32 %v5964_v36, %v5963_v19  ;;  %v6026_v13 = vadd.f32 %v6025_v57, %v6024_v28  ;;  %v5974_v6 = vadd.f32 %v5973_v4, %v5972_v20  ;;  %v6000_v61 = vrot.slane %v5999_v5, 2 }
0x26f4   : > { %v6017_v7 = vadd.f32 %v6016_v0, %v6015_v39  ;;  %v5983_v2 = vadd.f32 %v5982_v49, %v5981_v46  ;;  %v6009_v21 = vrot.slane %v6008_v60, 2  ;;  %v5992_v43 = vadd.f32 %v5991_v56, %v5990_v29 }
0x26f5   : > { %6068 = vperm.xlu1 %7832, %v5958_v42   ;;  %v5966_v3 = vrot.slane %v5965_v1, 1  ;;  %v6027_v10 = vrot.slane %v6026_v13, 2  ;;  %v5975_v18 = vrot.slane %v5974_v6, 1  ;;  %v6001_v11 = vadd.f32 %v6000_v61, %v5999_v5 }
0x26f6   : > { %v6018_v30 = vrot.slane %v6017_v7, 2  ;;  %v5984_v48 = vrot.slane %v5983_v2, 1  ;;  %v6010_v42 = vadd.f32 %v6009_v21, %v6008_v60 }
0x26f7   : > { %6063 = vperm.xlu0 %7831, %v5957_v33   ;;  %v5993_v33 = vrot.slane %v5992_v43, 1  ;;  %v5967_v8 = vadd.f32 %v5966_v3, %v5965_v1  ;;  %v6028_v59 = vadd.f32 %v6027_v10, %v6026_v13  ;;  %v5976_v51 = vadd.f32 %v5975_v18, %v5974_v6 }
0x26f8   : > { %v6002_v55 = vrot.slane %v6001_v11, 1  ;;  %v6019_v26 = vadd.f32 %v6018_v30, %v6017_v7  ;;  %v5985_v31 = vadd.f32 %v5984_v48, %v5983_v2  ;;  %v6011_v23 = vrot.slane %v6010_v42, 1 }
0x26f9   : > { %v5994_v24 = vadd.f32 %v5993_v33, %v5992_v43  ;;  %v6029_v37 = vrot.slane %v6028_v59, 1 }
0x26fa   : > { %v6003_v44 = vadd.f32 %v6002_v55, %v6001_v11  ;;  %v6020_v15 = vrot.slane %v6019_v26, 1  ;;  %v6012_v41 = vadd.f32 %v6011_v23, %v6010_v42 }
0x26fb   : > { %v6030_v19 = vadd.f32 %v6029_v37, %v6028_v59 }
0x26fc   : > { %v6021_v50 = vadd.f32 %v6020_v15, %v6019_v26 }
0x2768   : > { %v6044_v12 = vpop.permute.xlu1 %6043 }
0x2769   : > { %7833 = vrcp.f32 %v6044_v12 }
0x276a   : > { %v6034_v47 = vpop.permute.xlu0 %6033 }
0x276b   : > { %7835 = vrcp.f32 %v6034_v47 }
0x276c   : > { %v6049_v27 = vpop.permute.xlu1 %6048 }
0x276d   : > { %7837 = vrcp.f32 %v6049_v27 }
0x276e   : > { %v6039_v63 = vpop.permute.xlu0 %6038 }
0x276f   : > { %7839 = vrcp.f32 %v6039_v63 }
0x2770   : > { %v6059_v40 = vpop.permute.xlu1 %6058 }
0x2771   : > { %7841 = vrcp.f32 %v6059_v40 }
0x2772   : > { %v6054_v54 = vpop.permute.xlu0 %6053 }
0x2773   : > { %7843 = vrcp.f32 %v6054_v54  ;;  %v7834_v62 = vpop.eup %7833 }
0x2774   : > { %v6069_v17 = vpop.permute.xlu1 %6068  ;;  %v6076_v53 = vmul.f32 %v7834_v62, %v5985_v31 }
0x2775   : > { %7845 = vrcp.f32 %v6069_v17  ;;  %v7836_v16 = vpop.eup %7835 }
0x2776   : > { %v6064_v9 = vpop.permute.xlu0 %6063  ;;  %v6072_v58 = vmul.f32 %v7836_v16, %v5967_v8 }
0x2777   : > { %7847 = vrcp.f32 %v6064_v9  ;;  %v7838_v52 = vpop.eup %7837 }
0x2778   : > { %v6078_v35 = vmul.f32 %v7838_v52, %v5994_v24 }
0x2779   : > { %v7840_v32 = vpop.eup %7839 }
0x277a   : > { %v6074_v14 = vmul.f32 %v7840_v32, %v5976_v51 }
0x277b   : > { %v7842_v22 = vpop.eup %7841 }
0x277c   : > { %v6096_v45 = vsel %vm6095_vm7, %v6074_v14, %v6072_v58  ;;  %v6082_v39 = vmul.f32 %v7842_v22, %v6012_v41 }
0x277d   : > { %v7844_v34 = vpop.eup %7843  ;;  %v6098_v25 = vsel %vm6097_vm8, %v6076_v53, %v6096_v45 }
0x277e   : > { %v6100_v28 = vsel %vm6099_vm9, %v6078_v35, %v6098_v25  ;;  %v6080_v20 = vmul.f32 %v7844_v34, %v6003_v44 }
0x277f   : > { %v7846_v46 = vpop.eup %7845 }
0x2780   : > { %v6102_v38 = vsel %vm6101_vm10, %v6080_v20, %v6100_v28  ;;  %v6086_v12 = vmul.f32 %v7846_v46, %v6030_v19 }
0x2781   : > { %v7848_v29 = vpop.eup %7847  ;;  %v6104_v47 = vsel %vm6103_vm11, %v6082_v39, %v6102_v38 }
0x2782   : > { %v6084_v36 = vmul.f32 %v7848_v29, %v6021_v50 }
0x2784   : > { %v6106_v57 = vsel %vm6105_vm12, %v6084_v36, %v6104_v47 }
0x2785   : > { %v6108_v4 = vsel %vm6107_vm13, %v6086_v12, %v6106_v57 }
0x2786   : > { %6110 = vst.msk [vmem:[%s8393_s13] sm:$0xff] %vm1001_vm1, %v6108_v4 }
0x2787 PF: > { %s9908_s24 = sld [smem:[#allocation16_spill]]  ;;  %s9910_s11 = sld [smem:[#allocation39_spill]] }
0x2788   : > { %s6125_s12 = sshll.u32 %s8393_s13, 4  ;;  %s6112_s14 = scalar_lea.sflag [#allocation6], %s8273_s15  ;;  %s6126_s12 = int_to_ptr.vmem [resolvable:$true] %s6125_s12 }
0x2789   : > { %s7907_s21 = scalar_lea.vmem %s6126_s12, 128  ;;  %s8026_s16 = smov [#allocation9]  }
0x278a   : > { %p7908_p3 = scmp.ne.s32.totalorder %s6126_s12, %s7907_s21  ;;  %s7911_s18 = sshll.u32 %s8026_s16, 4  ;;  %s7912_s18 = int_to_ptr.vmem [resolvable:$false] %s7911_s18 }
0x278b   : > { %s7913_s5 = scalar_lea.vmem %s7912_s18, 256  ;;  %p7914_p2 = scmp.lt.s32.totalorder %s6126_s12, %s7912_s18 }
0x278c   : > { %p7909_p7 = pnand %p7908_p3, %p8215_p8  ;;  %p7915_p4 = scmp.lt.s32.totalorder %s7913_s5, %s7907_s21 }
0x278d   : > { %s6571_s20 = sshll.u32 %s9908_s24, 7 }
0x278e   : > { %s9759_s17 = scalar_lea.hbm %s9910_s11, %s6571_s20  ;;  %p7910_p1 = pneg %p7909_p7 }
0x278f   : > { %p7916_p5 = por %p7915_p4, %p7914_p2 }
0x2791   : > { %p7917_p9 = pnand %p7916_p5, %p7910_p1 }
0x2793   : > { %7920 = shalt.err (!%p7917_p9)
}
0x2794   : > { %s7921_s15 = scalar_lea.hbm %s9759_s17, 128  ;;  %s7925_s22 = scalar_lea.hbm %s9910_s11, 256 }
0x2795   : > { %p7922_p0 = scmp.ne.s32.totalorder %s9759_s17, %s7921_s15  ;;  %p7926_p10 = scmp.lt.u32.totalorder %s9759_s17, %s9910_s11 }
0x2796   : > { %p7927_p12 = scmp.lt.u32.totalorder %s7925_s22, %s7921_s15  ;;  %p7929_p3 = scmp.lt.u32.totalorder %s7921_s15, %s9759_s17 }
0x2797   : > { %p7923_p6 = pnand %p7922_p0, %p8215_p8 }
0x2798   : > { %p7928_p13 = por %p7927_p12, %p7926_p10 }
0x2799   : > { %p7924_p11 = pneg %p7923_p6 }
0x279a   : > { %p7930_p7 = por %p7929_p3, %p7928_p13 }
0x279c   : > { %p7931_p1 = pnand %p7930_p7, %p7924_p11 }
0x279e   : > { %7934 = shalt.err (!%p7931_p1)
}
0x279f   : > { %7362 = dma.vmem_to_hbm [thread:$0]  (%p8215_p8), %s6126_s12, 128, %s9759_s17, %s6112_s14  }
0x27a0 PF: > { %s9911_s4 = sld [smem:[#allocation19_spill]]  ;;  %s9912_s26 = sld [smem:[#allocation13_spill]] }
0x27a1   : > { %s9913_s0 = sld [smem:[#allocation20_spill]] }
0x27a6   : > { %p7379_p2 = scmp.ge.s32.totalorder %s9911_s4, 2  ;;  %s6137_s29 = sand.u32 1, %s9912_s26  }
0x27a7   : > { %p9914_p4 = scmp.ne.s32.totalorder %s9913_s0, 0  ;;  %s6138_s6 = scalar_lea.sflag [#allocation6], %s6137_s29 }
0x27a9   : > { %p7373_p5 = pnand %p7379_p2, %p9914_p4 }
0x27ab   : > { %7976 = dma.done.wait (!%p7373_p5), %s6138_s6, 128  }
0x27ac   : > { %7978 = vsyncadd (!%p7373_p5), %s6138_s6, 4294967168  ;;  %s33_s28 = sadd.s32 1, %s9911_s4   ;;  %s9915_s21 = sld [smem:[#allocation14_spill]] }
0x27ad   : > { %p30_p9 = scmp.ge.s32.totalorder %s33_s28, 6   ;;  %s9916_s22 = sld [smem:[#allocation15_spill]] }
0x27ae   : > { %s9917_s23 = sld [smem:[#allocation24_spill]]  ;;  %s9918_s24 = sld [smem:[#allocation17_spill]] }
0x27af   : > { %s9919_s25 = sld [smem:[#allocation18_spill]]  ;;  %s9920_s26 = sld [smem:[#allocation21_spill]] }
0x27b0   : > { %s9921_s27 = sld [smem:[#allocation23_spill]]  ;;  %32 = sbr.rel (!%p30_p9) target bundleno = 24 (0x18), region = 190 }
0x27b7   :  { %6143 = vsyncpa [#allocation5], 1 }
0x27b8   :  { %6145 = vsyncpa [#allocation5 + $0x1], 1 }
0x27b9   :  { %6146 = vsyncpa [#allocation8], 1 }
0x27ba   :  { %6147 = vsyncpa [#allocation6], 1 }
0x27bb   :  { %6149 = vsyncpa [#allocation6 + $0x1], 1 }

</bundles_post_ra>
